<compile_context>
chip_gen: v6e
topology: v6e:2x2x1
jax: 0.10.0
libtpu: 0.0.40
codegen_flags: <defaults>
</compile_context>

<pallas_src>
import jax
import jax.numpy as jnp
from jax.experimental import pallas as pl
from jax.experimental.pallas import tpu as pltpu

# Layer sizes from Simple_NN.__init__ :  20 -> 64 -> 128 -> 1024 -> 256 -> 128 -> 64
SIZES = [20, 64, 128, 1024, 256, 128, 64]
K0_PAD = 32      # first-layer K padded to a sublane-friendly size
OUT_PAD = 128    # final layer padded to a full 128-lane output slab


def _mlp_kernel(x_ref,
                w0, b0, w1, b1, w2, b2, w3, b3, w4, b4, w5, b5,
                out_ref):
    """Fused 6-layer MLP: 5x (Linear + ReLU) + Linear + Sigmoid.

    Weights arrive as bf16 (MXU-friendly), biases/activations stay f32.
    """
    h = x_ref[...]                                   # (bt, 32) f32

    def dense(h, w_ref, b_ref, *, relu):
        y = jnp.dot(h.astype(jnp.bfloat16), w_ref[...],
                    preferred_element_type=jnp.float32)
        y = y + b_ref[...]
        return jnp.maximum(y, 0.0) if relu else y

    h = dense(h, w0, b0, relu=True)         # 32   -> 64   (rows 20..31 of w0 are zero)
    h = dense(h, w1, b1, relu=True)         # 64   -> 128
    h = dense(h, w2, b2, relu=True)         # 128  -> 1024
    h = dense(h, w3, b3, relu=True)         # 1024 -> 256
    h = dense(h, w4, b4, relu=True)         # 256  -> 128
    logits = dense(h, w5, b5, relu=False)   # 128  -> 128 (cols 64..127 are padding)

    out_ref[...] = jax.nn.sigmoid(logits).astype(out_ref.dtype)


def simple_nn_forward(x, params, *, batch_tile=256):
    """params: list of (W, b) with W shape (in, out), b shape (1, out), f32."""
    B, in_dim = x.shape
    assert in_dim == SIZES[0]

    # --- pad input: features 20 -> 32, batch -> multiple of batch_tile ----------
    B_pad = pl.cdiv(B, batch_tile) * batch_tile
    x_pad = jnp.pad(x.astype(jnp.float32),
                    ((0, B_pad - B), (0, K0_PAD - in_dim)))

    # --- prepare weights: pad first K / last N, cast weights to bf16 ------------
    kernel_params = []
    n_layers = len(params)
    for i, (w, b) in enumerate(params):
        w = w.astype(jnp.float32)
        b = b.astype(jnp.float32)
        if i == 0:
            w = jnp.pad(w, ((0, K0_PAD - w.shape[0]), (0, 0)))          # zero rows
        if i == n_layers - 1:
            w = jnp.pad(w, ((0, 0), (0, OUT_PAD - w.shape[1])))         # zero cols
            b = jnp.pad(b, ((0, 0), (0, OUT_PAD - b.shape[1])))
        kernel_params.append((w.astype(jnp.bfloat16), b))               # W bf16, b f32

    # --- block specs -------------------------------------------------------------
    x_spec = pl.BlockSpec((batch_tile, K0_PAD), lambda i: (i, 0))
    param_specs = []
    flat_params = []
    for (w, b) in kernel_params:
        # Full-array blocks with a constant index_map: DMA'd once, resident after.
        param_specs.append(pl.BlockSpec(w.shape, lambda i: (0, 0)))
        param_specs.append(pl.BlockSpec(b.shape, lambda i: (0, 0)))
        flat_params += [w, b]
    out_spec = pl.BlockSpec((batch_tile, OUT_PAD), lambda i: (i, 0))

    # --- cost estimate (helps XLA schedule around the custom call) ---------------
    layer_dims = [(K0_PAD, 64), (64, 128), (128, 1024),
                  (1024, 256), (256, 128), (128, OUT_PAD)]
    flops = 2 * B_pad * sum(a * b for a, b in layer_dims)
    bytes_params = sum(w.size * w.dtype.itemsize + b.size * b.dtype.itemsize
                       for w, b in kernel_params)
    cost = pl.CostEstimate(
        flops=flops,
        transcendentals=B_pad * OUT_PAD,                       # sigmoid exp per output
        bytes_accessed=x_pad.size * 4 + bytes_params + B_pad * OUT_PAD * 4,
    )

    out = pl.pallas_call(
        _mlp_kernel,
        out_shape=jax.ShapeDtypeStruct((B_pad, OUT_PAD), jnp.float32),
        grid_spec=pltpu.PrefetchScalarGridSpec(
            num_scalar_prefetch=0,
            grid=(B_pad // batch_tile,),
            in_specs=[x_spec] + param_specs,
            out_specs=out_spec,
        ),
        compiler_params=pltpu.CompilerParams(
            dimension_semantics=("parallel",),     # batch tiles shard across TCs
            vmem_limit_bytes=64 << 20,             # headroom; actual footprint ~3 MiB
        ),
        cost_estimate=cost,
    )(x_pad, *flat_params)

    # Strip batch padding and the 64 zero-padded output columns.
    return out[:B, :SIZES[-1]]


def init_params(key):
    """Deterministic init mimicking PyTorch Linear's U(-1/sqrt(in), 1/sqrt(in))."""
    params = []
    for i in range(len(SIZES) - 1):
        fan_in, fan_out = SIZES[i], SIZES[i + 1]
        key, kw, kb = jax.random.split(key, 3)
        bound = 1.0 / jnp.sqrt(jnp.float32(fan_in))
        w = jax.random.uniform(kw, (fan_in, fan_out), jnp.float32, -bound, bound)
        b = jax.random.uniform(kb, (1, fan_out), jnp.float32, -bound, bound)
        params.append((w, b))
    return params


def reference_forward(x, params):
    """Pure-JAX reference using the same bf16-operand / f32-accumulate matmuls."""
    h = x.astype(jnp.float32)
    for i, (w, b) in enumerate(params):
        h = jnp.dot(h.astype(jnp.bfloat16), w.astype(jnp.bfloat16),
                    preferred_element_type=jnp.float32) + b
        if i < len(params) - 1:
            h = jnp.maximum(h, 0.0)
    return jax.nn.sigmoid(h)


if __name__ == "__main__":
    key = jax.random.PRNGKey(0)
    kx, kp = jax.random.split(key)

    # B deliberately not a multiple of batch_tile to exercise the padding path;
    # padded grid has 2 steps so both v7x TensorCores get work.
    B = 500
    x = jax.random.normal(kx, (B, SIZES[0]), jnp.float32)
    params = init_params(kp)

    out = simple_nn_forward(x, params, batch_tile=256)
    out = jax.block_until_ready(out)

    ref = reference_forward(x, params)
    assert out.shape == (B, SIZES[-1])
    max_err = float(jnp.max(jnp.abs(out - ref)))
    assert max_err < 2e-3, f"mismatch vs reference: max abs err {max_err}"

    print("KERNEL_OK")
</pallas_src>

<mosaic_0001>
module attributes {stable_mosaic.version = 11 : i64} {
  func.func @_mlp_kernel(%arg0: i32, %arg1: memref<256x32xf32, #tpu.memory_space<vmem>>, %arg2: memref<32x64xbf16, #tpu.memory_space<vmem>>, %arg3: memref<1x64xf32, #tpu.memory_space<vmem>>, %arg4: memref<64x128xbf16, #tpu.memory_space<vmem>>, %arg5: memref<1x128xf32, #tpu.memory_space<vmem>>, %arg6: memref<128x1024xbf16, #tpu.memory_space<vmem>>, %arg7: memref<1x1024xf32, #tpu.memory_space<vmem>>, %arg8: memref<1024x256xbf16, #tpu.memory_space<vmem>>, %arg9: memref<1x256xf32, #tpu.memory_space<vmem>>, %arg10: memref<256x128xbf16, #tpu.memory_space<vmem>>, %arg11: memref<1x128xf32, #tpu.memory_space<vmem>>, %arg12: memref<128x128xbf16, #tpu.memory_space<vmem>>, %arg13: memref<1x128xf32, #tpu.memory_space<vmem>>, %arg14: memref<256x128xf32, #tpu.memory_space<vmem>>) attributes {dimension_semantics = [#tpu.dimension_semantics<parallel>], iteration_bounds = array<i64: 2>, scalar_prefetch = 0 : i64, scratch_operands = 0 : i64, tpu.core_type = #tpu.core_type<tc>, window_params = [{transform_indices = @transform_0, window_bounds = array<i64: 256, 32>}, {pipeline_mode = #tpu.pipeline_mode<synchronous>, transform_indices = @transform_1, window_bounds = array<i64: 32, 64>}, {pipeline_mode = #tpu.pipeline_mode<synchronous>, transform_indices = @transform_2, window_bounds = array<i64: 1, 64>}, {pipeline_mode = #tpu.pipeline_mode<synchronous>, transform_indices = @transform_3, window_bounds = array<i64: 64, 128>}, {pipeline_mode = #tpu.pipeline_mode<synchronous>, transform_indices = @transform_4, window_bounds = array<i64: 1, 128>}, {pipeline_mode = #tpu.pipeline_mode<synchronous>, transform_indices = @transform_5, window_bounds = array<i64: 128, 1024>}, {pipeline_mode = #tpu.pipeline_mode<synchronous>, transform_indices = @transform_6, window_bounds = array<i64: 1, 1024>}, {pipeline_mode = #tpu.pipeline_mode<synchronous>, transform_indices = @transform_7, window_bounds = array<i64: 1024, 256>}, {pipeline_mode = #tpu.pipeline_mode<synchronous>, transform_indices = @transform_8, window_bounds = array<i64: 1, 256>}, {pipeline_mode = #tpu.pipeline_mode<synchronous>, transform_indices = @transform_9, window_bounds = array<i64: 256, 128>}, {pipeline_mode = #tpu.pipeline_mode<synchronous>, transform_indices = @transform_10, window_bounds = array<i64: 1, 128>}, {pipeline_mode = #tpu.pipeline_mode<synchronous>, transform_indices = @transform_11, window_bounds = array<i64: 128, 128>}, {pipeline_mode = #tpu.pipeline_mode<synchronous>, transform_indices = @transform_12, window_bounds = array<i64: 1, 128>}, {transform_indices = @transform_13, window_bounds = array<i64: 256, 128>}]} {
    %c0 = arith.constant 0 : index
    %c0_0 = arith.constant 0 : index
    %0 = vector.load %arg1[%c0, %c0_0] : memref<256x32xf32, #tpu.memory_space<vmem>>, vector<256x32xf32>
    %1 = arith.truncf %0 : vector<256x32xf32> to vector<256x32xbf16>
    %c0_1 = arith.constant 0 : index
    %c0_2 = arith.constant 0 : index
    %2 = vector.load %arg2[%c0_1, %c0_2] : memref<32x64xbf16, #tpu.memory_space<vmem>>, vector<32x64xbf16>
    %cst = arith.constant dense<0.000000e+00> : vector<256x64xf32>
    %3 = tpu.matmul %1, %2, %cst {dimension_numbers = #tpu.dot_dimension_numbers<[1], [0], [0], [1], [0, 0, 1, 1], [], []>} : vector<256x32xbf16>, vector<32x64xbf16>, vector<256x64xf32> -> vector<256x64xf32>
    %c0_3 = arith.constant 0 : index
    %c0_4 = arith.constant 0 : index
    %4 = vector.load %arg3[%c0_3, %c0_4] : memref<1x64xf32, #tpu.memory_space<vmem>>, vector<1x64xf32>
    %5 = vector.broadcast %4 : vector<1x64xf32> to vector<256x64xf32>
    %6 = arith.addf %3, %5 : vector<256x64xf32>
    %cst_5 = arith.constant 0.000000e+00 : f32
    %7 = vector.broadcast %cst_5 : f32 to vector<256x64xf32>
    %8 = arith.maximumf %6, %7 : vector<256x64xf32>
    %9 = arith.truncf %8 : vector<256x64xf32> to vector<256x64xbf16>
    %c0_6 = arith.constant 0 : index
    %c0_7 = arith.constant 0 : index
    %10 = vector.load %arg4[%c0_6, %c0_7] : memref<64x128xbf16, #tpu.memory_space<vmem>>, vector<64x128xbf16>
    %cst_8 = arith.constant dense<0.000000e+00> : vector<256x128xf32>
    %11 = tpu.matmul %9, %10, %cst_8 {dimension_numbers = #tpu.dot_dimension_numbers<[1], [0], [0], [1], [0, 0, 1, 1], [], []>} : vector<256x64xbf16>, vector<64x128xbf16>, vector<256x128xf32> -> vector<256x128xf32>
    %c0_9 = arith.constant 0 : index
    %c0_10 = arith.constant 0 : index
    %12 = vector.load %arg5[%c0_9, %c0_10] : memref<1x128xf32, #tpu.memory_space<vmem>>, vector<1x128xf32>
    %13 = vector.broadcast %12 : vector<1x128xf32> to vector<256x128xf32>
    %14 = arith.addf %11, %13 : vector<256x128xf32>
    %cst_11 = arith.constant 0.000000e+00 : f32
    %15 = vector.broadcast %cst_11 : f32 to vector<256x128xf32>
    %16 = arith.maximumf %14, %15 : vector<256x128xf32>
    %17 = arith.truncf %16 : vector<256x128xf32> to vector<256x128xbf16>
    %c0_12 = arith.constant 0 : index
    %c0_13 = arith.constant 0 : index
    %18 = vector.load %arg6[%c0_12, %c0_13] : memref<128x1024xbf16, #tpu.memory_space<vmem>>, vector<128x1024xbf16>
    %cst_14 = arith.constant dense<0.000000e+00> : vector<256x1024xf32>
    %19 = tpu.matmul %17, %18, %cst_14 {dimension_numbers = #tpu.dot_dimension_numbers<[1], [0], [0], [1], [0, 0, 1, 1], [], []>} : vector<256x128xbf16>, vector<128x1024xbf16>, vector<256x1024xf32> -> vector<256x1024xf32>
    %c0_15 = arith.constant 0 : index
    %c0_16 = arith.constant 0 : index
    %20 = vector.load %arg7[%c0_15, %c0_16] : memref<1x1024xf32, #tpu.memory_space<vmem>>, vector<1x1024xf32>
    %21 = vector.broadcast %20 : vector<1x1024xf32> to vector<256x1024xf32>
    %22 = arith.addf %19, %21 : vector<256x1024xf32>
    %cst_17 = arith.constant 0.000000e+00 : f32
    %23 = vector.broadcast %cst_17 : f32 to vector<256x1024xf32>
    %24 = arith.maximumf %22, %23 : vector<256x1024xf32>
    %25 = arith.truncf %24 : vector<256x1024xf32> to vector<256x1024xbf16>
    %c0_18 = arith.constant 0 : index
    %c0_19 = arith.constant 0 : index
    %26 = vector.load %arg8[%c0_18, %c0_19] : memref<1024x256xbf16, #tpu.memory_space<vmem>>, vector<1024x256xbf16>
    %cst_20 = arith.constant dense<0.000000e+00> : vector<256x256xf32>
    %27 = tpu.matmul %25, %26, %cst_20 {dimension_numbers = #tpu.dot_dimension_numbers<[1], [0], [0], [1], [0, 0, 1, 1], [], []>} : vector<256x1024xbf16>, vector<1024x256xbf16>, vector<256x256xf32> -> vector<256x256xf32>
    %c0_21 = arith.constant 0 : index
    %c0_22 = arith.constant 0 : index
    %28 = vector.load %arg9[%c0_21, %c0_22] : memref<1x256xf32, #tpu.memory_space<vmem>>, vector<1x256xf32>
    %29 = vector.broadcast %28 : vector<1x256xf32> to vector<256x256xf32>
    %30 = arith.addf %27, %29 : vector<256x256xf32>
    %cst_23 = arith.constant 0.000000e+00 : f32
    %31 = vector.broadcast %cst_23 : f32 to vector<256x256xf32>
    %32 = arith.maximumf %30, %31 : vector<256x256xf32>
    %33 = arith.truncf %32 : vector<256x256xf32> to vector<256x256xbf16>
    %c0_24 = arith.constant 0 : index
    %c0_25 = arith.constant 0 : index
    %34 = vector.load %arg10[%c0_24, %c0_25] : memref<256x128xbf16, #tpu.memory_space<vmem>>, vector<256x128xbf16>
    %cst_26 = arith.constant dense<0.000000e+00> : vector<256x128xf32>
    %35 = tpu.matmul %33, %34, %cst_26 {dimension_numbers = #tpu.dot_dimension_numbers<[1], [0], [0], [1], [0, 0, 1, 1], [], []>} : vector<256x256xbf16>, vector<256x128xbf16>, vector<256x128xf32> -> vector<256x128xf32>
    %c0_27 = arith.constant 0 : index
    %c0_28 = arith.constant 0 : index
    %36 = vector.load %arg11[%c0_27, %c0_28] : memref<1x128xf32, #tpu.memory_space<vmem>>, vector<1x128xf32>
    %37 = vector.broadcast %36 : vector<1x128xf32> to vector<256x128xf32>
    %38 = arith.addf %35, %37 : vector<256x128xf32>
    %cst_29 = arith.constant 0.000000e+00 : f32
    %39 = vector.broadcast %cst_29 : f32 to vector<256x128xf32>
    %40 = arith.maximumf %38, %39 : vector<256x128xf32>
    %41 = arith.truncf %40 : vector<256x128xf32> to vector<256x128xbf16>
    %c0_30 = arith.constant 0 : index
    %c0_31 = arith.constant 0 : index
    %42 = vector.load %arg12[%c0_30, %c0_31] : memref<128x128xbf16, #tpu.memory_space<vmem>>, vector<128x128xbf16>
    %cst_32 = arith.constant dense<0.000000e+00> : vector<256x128xf32>
    %43 = tpu.matmul %41, %42, %cst_32 {dimension_numbers = #tpu.dot_dimension_numbers<[1], [0], [0], [1], [0, 0, 1, 1], [], []>} : vector<256x128xbf16>, vector<128x128xbf16>, vector<256x128xf32> -> vector<256x128xf32>
    %c0_33 = arith.constant 0 : index
    %c0_34 = arith.constant 0 : index
    %44 = vector.load %arg13[%c0_33, %c0_34] : memref<1x128xf32, #tpu.memory_space<vmem>>, vector<1x128xf32>
    %45 = vector.broadcast %44 : vector<1x128xf32> to vector<256x128xf32>
    %46 = arith.addf %43, %45 : vector<256x128xf32>
    %47 = arith.negf %46 : vector<256x128xf32>
    %48 = math.exp %47 : vector<256x128xf32>
    %cst_35 = arith.constant 1.000000e+00 : f32
    %49 = vector.broadcast %cst_35 : f32 to vector<256x128xf32>
    %50 = arith.addf %49, %48 : vector<256x128xf32>
    %51 = arith.divf %49, %50 : vector<256x128xf32>
    %c0_36 = arith.constant 0 : index
    %c0_37 = arith.constant 0 : index
    %52 = vector.load %arg14[%c0_36, %c0_37] : memref<256x128xf32, #tpu.memory_space<vmem>>, vector<256x128xf32>
    tpu.vector_store %arg14[%c0_36, %c0_37], %51 {strides = array<i32>} : memref<256x128xf32, #tpu.memory_space<vmem>>, vector<256x128xf32>,
    return
  }
  func.func @transform_0(%arg0: i32) -> (i32, i32) {
    %c0_i32 = arith.constant 0 : i32
    %c0_i32_0 = arith.constant 0 : i32
    return %arg0, %c0_i32 : i32, i32
  }
  func.func @transform_1(%arg0: i32) -> (i32, i32) {
    %c0_i32 = arith.constant 0 : i32
    %c0_i32_0 = arith.constant 0 : i32
    %c0_i32_1 = arith.constant 0 : i32
    return %c0_i32, %c0_i32_0 : i32, i32
  }
  func.func @transform_2(%arg0: i32) -> (i32, i32) {
    %c0_i32 = arith.constant 0 : i32
    %c0_i32_0 = arith.constant 0 : i32
    %c0_i32_1 = arith.constant 0 : i32
    return %c0_i32, %c0_i32_0 : i32, i32
  }
  func.func @transform_3(%arg0: i32) -> (i32, i32) {
    %c0_i32 = arith.constant 0 : i32
    %c0_i32_0 = arith.constant 0 : i32
    %c0_i32_1 = arith.constant 0 : i32
    return %c0_i32, %c0_i32_0 : i32, i32
  }
  func.func @transform_4(%arg0: i32) -> (i32, i32) {
    %c0_i32 = arith.constant 0 : i32
    %c0_i32_0 = arith.constant 0 : i32
    %c0_i32_1 = arith.constant 0 : i32
    return %c0_i32, %c0_i32_0 : i32, i32
  }
  func.func @transform_5(%arg0: i32) -> (i32, i32) {
    %c0_i32 = arith.constant 0 : i32
    %c0_i32_0 = arith.constant 0 : i32
    %c0_i32_1 = arith.constant 0 : i32
    return %c0_i32, %c0_i32_0 : i32, i32
  }
  func.func @transform_6(%arg0: i32) -> (i32, i32) {
    %c0_i32 = arith.constant 0 : i32
    %c0_i32_0 = arith.constant 0 : i32
    %c0_i32_1 = arith.constant 0 : i32
    return %c0_i32, %c0_i32_0 : i32, i32
  }
  func.func @transform_7(%arg0: i32) -> (i32, i32) {
    %c0_i32 = arith.constant 0 : i32
    %c0_i32_0 = arith.constant 0 : i32
    %c0_i32_1 = arith.constant 0 : i32
    return %c0_i32, %c0_i32_0 : i32, i32
  }
  func.func @transform_8(%arg0: i32) -> (i32, i32) {
    %c0_i32 = arith.constant 0 : i32
    %c0_i32_0 = arith.constant 0 : i32
    %c0_i32_1 = arith.constant 0 : i32
    return %c0_i32, %c0_i32_0 : i32, i32
  }
  func.func @transform_9(%arg0: i32) -> (i32, i32) {
    %c0_i32 = arith.constant 0 : i32
    %c0_i32_0 = arith.constant 0 : i32
    %c0_i32_1 = arith.constant 0 : i32
    return %c0_i32, %c0_i32_0 : i32, i32
  }
  func.func @transform_10(%arg0: i32) -> (i32, i32) {
    %c0_i32 = arith.constant 0 : i32
    %c0_i32_0 = arith.constant 0 : i32
    %c0_i32_1 = arith.constant 0 : i32
    return %c0_i32, %c0_i32_0 : i32, i32
  }
  func.func @transform_11(%arg0: i32) -> (i32, i32) {
    %c0_i32 = arith.constant 0 : i32
    %c0_i32_0 = arith.constant 0 : i32
    %c0_i32_1 = arith.constant 0 : i32
    return %c0_i32, %c0_i32_0 : i32, i32
  }
  func.func @transform_12(%arg0: i32) -> (i32, i32) {
    %c0_i32 = arith.constant 0 : i32
    %c0_i32_0 = arith.constant 0 : i32
    %c0_i32_1 = arith.constant 0 : i32
    return %c0_i32, %c0_i32_0 : i32, i32
  }
  func.func @transform_13(%arg0: i32) -> (i32, i32) {
    %c0_i32 = arith.constant 0 : i32
    %c0_i32_0 = arith.constant 0 : i32
    return %arg0, %c0_i32 : i32, i32
  }
}

</mosaic_0001>

<bundles_post_ra>
// kernel: tpu_custom_call.1
= control target key start
LH: loop header
LB: loop body
LE: loop exit
PB: predicated region body
PF: predicated region fallthrough
CT: control target
= control target key end

     0   :  { %18 = vsyncpa [#allocation3], 0  ;;  %s8878_s0 = inlined_call_operand.vmem [shape: f32[512,32], index: 0, kind: input, shape index: {}]   ;;  %s8879_s1 = inlined_call_operand.hbm [shape: bf16[32,64], index: 1, kind: input, shape index: {}]   ;;  %s8880_s2 = inlined_call_operand.vmem [shape: f32[1,64], index: 2, kind: input, shape index: {}]   ;;  %s8881_s3 = inlined_call_operand.hbm [shape: bf16[64,128], index: 3, kind: input, shape index: {}]   ;;  %s8882_s4 = inlined_call_operand.hbm [shape: f32[1,128], index: 4, kind: input, shape index: {}]   ;;  %s8883_s5 = inlined_call_operand.vmem [shape: bf16[128,1024], index: 5, kind: input, shape index: {}]   ;;  %s8884_s6 = inlined_call_operand.vmem [shape: f32[1,1024], index: 6, kind: input, shape index: {}]   ;;  %s8885_s7 = inlined_call_operand.hbm [shape: bf16[1024,256], index: 7, kind: input, shape index: {}]   ;;  %s8886_s8 = inlined_call_operand.vmem [shape: f32[1,256], index: 8, kind: input, shape index: {}]   ;;  %s8887_s9 = inlined_call_operand.vmem [shape: bf16[256,128], index: 9, kind: input, shape index: {}]   ;;  %s8888_s10 = inlined_call_operand.vmem [shape: f32[1,128], index: 10, kind: input, shape index: {}]   ;;  %s8889_s11 = inlined_call_operand.hbm [shape: bf16[128,128], index: 11, kind: input, shape index: {}]   ;;  %s8890_s12 = inlined_call_operand.vmem [shape: f32[1,128], index: 12, kind: input, shape index: {}]   ;;  %s8891_s13 = inlined_call_operand.hbm [shape: f32[512,128], index: 13, kind: output, shape index: {}]  }
   0x1   :  { %19 = vsyncpa [#allocation6], 0 }
   0x2   :  { %20 = vsyncpa [#allocation9], 0 }
   0x3   :  { %21 = vsyncpa [#allocation4], 0 }
   0x4   :  { %23 = vsyncpa [#allocation4 + $0x1], 0  ;;  %s6646_s25 = smov 0   ;;  %s6648_s26 = smov 0  }
   0x5   :  { %s6650_s27 = smov 0   ;;  %s6652_s28 = smov 0  }
   0x6 LB: > { %8907 = sst [smem:[#allocation16_spill]] %s6549_s25  ;;  %s6667_s29 = sadd.s32 4294967295, %s6561_s28   ;;  %s6561_s28 = sphi %s6652_s28, %s9108_s28   ;;  %s6557_s27 = sphi %s6650_s27, %s9113_s27   ;;  %s6553_s26 = sphi %s6648_s26, %s9112_s26   ;;  %s6549_s25 = sphi %s6646_s25, %s9111_s25  }
   0x7   : > { %8908 = sst [smem:[#allocation17_spill]] %s6557_s27  ;;  %s5296_s30 = sadd.s32 4294967294, %s6561_s28  }
   0x8   : > { %8909 = sst [smem:[#allocation18_spill]] %s6561_s28  ;;  %s6671_s14 = sadd.s32 1, %s6561_s28  }
   0x9   : > { %8910 = sst [smem:[#allocation19_spill]] %s6671_s14  ;;  %s314_s15 = sadd.s32 1, %s6557_s27 }
   0xa   : > { %s311_s16 = ssub.s32 %s6561_s28, %s6671_s14  ;;  %p324_p0 = scmp.ne.s32.totalorder %s6557_s27, %s6553_s26 }
   0xb   : > { %p312_p1 = scmp.eq.s32.totalorder %s311_s16, 0  ;;  %p325_p2 = scmp.eq.s32.totalorder %s6667_s29, 1 }
   0xc   : > { %p330_p3 = scmp.ne.s32.totalorder %s6553_s26, %s6549_s25  ;;  %p331_p4 = scmp.eq.s32.totalorder %s5296_s30, 1 }
   0xd   : > { %s6682_s17 = scalar_select %p312_p1, %s6557_s27, %s314_s15  }
   0xe   : > { %p6684_p5 = por %p325_p2, %p324_p0  ;;  %p6688_p6 = por %p331_p4, %p330_p3 }
   0xf   : > { %8911 = sst [smem:[#allocation20_spill]] %s6682_s17  ;;  %p5297_p7 = scmp.ge.s32.totalorder %s6561_s28, 1 }
  0x10   : > { %s8913_s19 = scalar_select %p6688_p6, 1, 0 }
  0x11   : > { %p338_p8 = scmp.lt.s32.totalorder %s6561_s28, 3  ;;  %p8902_p9 = scmp.eq.s32.totalorder %s6667_s29, 0 }
  0x12   : > { %8914 = sst [smem:[#allocation21_spill]] %s8913_s19  ;;  %s6563_s21 = smov [#allocation5]  }
  0x13   : > { %p6695_p10 = pnand %p5297_p7, %p338_p8  ;;  %s366_s22 = sshll.u32 %s6563_s21, 4  ;;  %s367_s22 = int_to_ptr.vmem [resolvable:$true] %s366_s22 }
  0x14   : > { %s6564_s24 = smov [#allocation8]   ;;  %s6370_s16 = scalar_lea.vmem %s367_s22, 512 }
  0x15   : > { %p5933_p11 = pneg %p6695_p10  ;;  %s396_s30 = sshll.u32 %s6564_s24, 4  ;;  %s397_s30 = int_to_ptr.vmem [resolvable:$true] %s396_s30 }
  0x16   : > { %p6371_p0 = scmp.ne.s32.totalorder %s367_s22, %s6370_s16  ;;  %p6378_p3 = scmp.lt.s32.totalorder %s367_s22, %s367_s22 }
  0x17   : > { %p6703_p12 = pnand %p8902_p9, %p5933_p11  ;;  %p6379_p4 = scmp.lt.s32.totalorder %s6370_s16, %s6370_s16 }
  0x19   : > { %p6709_p13 = pneg %p6703_p12  ;;  %p6380_p7 = por %p6379_p4, %p6378_p3 }
  0x1b   : > { %p6373_p1 = pnand %p6371_p0, %p6709_p13 }
  0x1d   : > { %p6374_p2 = pneg %p6373_p1 }
  0x1f   : > { %p6381_p8 = pnand %p6380_p7, %p6374_p2 }
  0x21   : > { %6384 = shalt.err (!%p6381_p8)
}
  0x22   : > { %s8898_s21 = smov 64   ;;  %s8900_s24 = smov 4  }
  0x23   : > { %5939 = dma.hbm_to_vmem [thread:$0]  (!%p6703_p12), %s8881_s3, 512, %s367_s22, [#allocation6], %s8898_s21, %s8898_s21, %s8900_s24  }
  0x24   : > { %s6396_s14 = scalar_lea.vmem %s397_s30, 16384  ;;  %p6404_p3 = scmp.lt.s32.totalorder %s397_s30, %s397_s30 }
  0x25   : > { %p6397_p11 = scmp.ne.s32.totalorder %s397_s30, %s6396_s14  ;;  %p6405_p2 = scmp.lt.s32.totalorder %s6396_s14, %s6396_s14 }
  0x27   : > { %p6399_p0 = pnand %p6397_p11, %p6709_p13  ;;  %p6406_p4 = por %p6405_p2, %p6404_p3 }
  0x29   : > { %p6400_p1 = pneg %p6399_p0 }
  0x2b   : > { %p6407_p7 = pnand %p6406_p4, %p6400_p1 }
  0x2d   : > { %6410 = shalt.err (!%p6407_p7)
}
  0x2e   : > { %s6567_s16 = smov 128   ;;  %s6568_s19 = smov 8  }
  0x2f   : > { %5945 = dma.hbm_to_vmem [thread:$0]  (!%p6703_p12), %s8885_s7, 16384, %s397_s30, [#allocation9], %s6567_s16, %s6567_s16, %s6568_s19  }
  0x30   : > { %s6569_s27 = smov [#allocation2]   ;;  %s6570_s22 = smov [#allocation7]  }
  0x31   : > { %s350_s17 = sshll.u32 %s6569_s27, 4  ;;  %s380_s21 = sshll.u32 %s6570_s22, 4  ;;  %s351_s17 = int_to_ptr.vmem [resolvable:$true] %s350_s17  ;;  %s381_s21 = int_to_ptr.vmem [resolvable:$true] %s380_s21 }
  0x32   : > { %s6422_s24 = scalar_lea.vmem %s351_s17, 256  ;;  %p6430_p1 = scmp.lt.s32.totalorder %s351_s17, %s351_s17 }
  0x33   : > { %p6423_p8 = scmp.ne.s32.totalorder %s351_s17, %s6422_s24  ;;  %p6431_p3 = scmp.lt.s32.totalorder %s6422_s24, %s6422_s24 }
  0x35   : > { %p6425_p11 = pnand %p6423_p8, %p6709_p13  ;;  %p6432_p2 = por %p6431_p3, %p6430_p1 }
  0x37   : > { %p6426_p0 = pneg %p6425_p11 }
  0x39   : > { %p6433_p4 = pnand %p6432_p2, %p6426_p0 }
  0x3b   : > { %6436 = shalt.err (!%p6433_p4)
}
  0x3c   : > { %s8918_s25 = smov 4   ;;  %s8919_s28 = smov 64  }
  0x3d   : > { %5936 = dma.hbm_to_vmem [thread:$0]  (!%p6703_p12), %s8879_s1, 256, %s351_s17, [#allocation3], %s8919_s28, %s8919_s28, %s8918_s25  }
  0x3e   : > { %s6448_s30 = scalar_lea.vmem %s381_s21, 16  ;;  %s6455_s16 = scalar_lea.vmem %s381_s21, 32 }
  0x3f   : > { %p6449_p7 = scmp.ne.s32.totalorder %s381_s21, %s6448_s30  ;;  %p6456_p9 = scmp.lt.s32.totalorder %s381_s21, %s381_s21 }
  0x40   : > { %p6457_p1 = scmp.lt.s32.totalorder %s6455_s16, %s6448_s30 }
  0x41   : > { %p6451_p8 = pnand %p6449_p7, %p6709_p13 }
  0x42   : > { %p6458_p0 = por %p6457_p1, %p6456_p9 }
  0x43   : > { %p6452_p11 = pneg %p6451_p8 }
  0x45   : > { %p6459_p3 = pnand %p6458_p0, %p6452_p11 }
  0x47   : > { %6462 = shalt.err (!%p6459_p3)
}
  0x48   : > { %5942 = dma.hbm_to_vmem [thread:$0]  (!%p6703_p12), %s8882_s4, 16, %s381_s21, [#allocation6]  }
  0x49   : > { %s6571_s22 = smov [#allocation10]  }
  0x4a   : > { %s418_s17 = sshll.u32 %s6571_s22, 4  ;;  %s419_s17 = int_to_ptr.vmem [resolvable:$true] %s418_s17 }
  0x4b   : > { %s6474_s14 = scalar_lea.vmem %s419_s17, 1024  ;;  %p6482_p8 = scmp.lt.s32.totalorder %s419_s17, %s419_s17 }
  0x4c   : > { %p6475_p2 = scmp.ne.s32.totalorder %s419_s17, %s6474_s14  ;;  %p6483_p6 = scmp.lt.s32.totalorder %s6474_s14, %s6474_s14 }
  0x4e   : > { %p6477_p4 = pnand %p6475_p2, %p6709_p13  ;;  %p6484_p9 = por %p6483_p6, %p6482_p8 }
  0x50   : > { %p6478_p7 = pneg %p6477_p4 }
  0x52   : > { %p6485_p11 = pnand %p6484_p9, %p6478_p7 }
  0x54   : > { %6488 = shalt.err (!%p6485_p11)
}
  0x55   : > { %5948 = dma.hbm_to_vmem [thread:$0]  (!%p6703_p12), %s8889_s11, 1024, %s419_s17, [#allocation9], %s8919_s28, %s8919_s28, %s8918_s25  }
  0x56   : > { %446 = sbr.rel (%p6695_p10) target bundleno = 1689 (0x699), region = 72 }
  0x5b   : > { %p8920_p13 = scmp.eq.s32.totalorder %s6667_s29, 0 }
  0x5d   : > { %6532 = dma.done.wait (%p8920_p13), [#allocation3], 256   ;;  %p8921_p1 = pmov %p8920_p13 }
  0x5f   : > { %6534 = vsyncadd (%p8921_p1), [#allocation3], 4294967040  ;;  %p8922_p6 = pmov %p8921_p1 }
  0x60   : > { %p8923_p0 = pmov %p8921_p1 }
  0x61   : > { %6536 = dma.done.wait (%p8922_p6), [#allocation6], 528  }
  0x62   : > { %6538 = vsyncadd (%p8923_p0), [#allocation6], 4294966768  ;;  %p8924_p3 = pmov %p8923_p0 }
  0x63   : > { %p8925_p12 = pmov %p8923_p0 }
  0x64   : > { %6540 = dma.done.wait (%p8924_p3), [#allocation9], 17408  }
  0x65   : > { %6542 = vsyncadd (%p8925_p12), [#allocation9], 4294949888  ;;  %s5311_s20 = sshll.u32 %s6667_s29, 5  ;;  %v6008_v0 = vld [vmem:[#allocation2 + $0x8] sm:$0xff]   ;;  %v6009_v1 = vld [vmem:[#allocation2] sm:$0xff]   ;;  %vm585_vm0 = vcmask 261120  }
  0x66   : > { %p507_p10 = scmp.lt.s32.totalorder %s5311_s20, 63  ;;  %5783 = vmatprep.subr.bf16.mxu0 %v6008_v0  ;;  %5907 = vmatprep.subr.bf16.mxu1 %v6008_v0  ;;  %v6010_v28 = vld [vmem:[#allocation5 + $0x18] sm:$0xff]   ;;  %v6011_v30 = vld [vmem:[#allocation5 + $0x10] sm:$0xff]   ;;  %v6012_v33 = vld [vmem:[#allocation5 + $0x8] sm:$0xff]   ;;  %vm882_vm1 = vcmask 523264   ;;  %s503_s22 = sand.u32 1, %s6553_s26  }
  0x67   : > { %5784 = vmatpush3.bf16.msra.mxu0 %v6008_v0  ;;  %5909 = vmatpush3.bf16.msra.mxu1 %v6008_v0  ;;  %v6013_v53 = vld [vmem:[#allocation5] sm:$0xff]   ;;  %v6828_v54 = vld [vmem:[%s8883_s5 + $0x1c8] sm:$0xff]  ;;  %v1196_v58 = vld [vmem:[%s8883_s5 + $0x1c0] sm:$0xff]  ;;  %s5310_s17 = sshll.u32 %s503_s22, 8  ;;  %s5608_s19 = sshll.u32 %s6667_s29, 12 }
  0x68   : > { %s9115_s20 = smov (!%p507_p10, %s5311_s20), 63  ;;  %5785 = vmatprep.subr.bf16.mxu0 %v6009_v1  ;;  %5908 = vmatprep.subr.bf16.mxu1 %v6009_v1  ;;  %v6833_v55 = vld [vmem:[%s8883_s5 + $0x1e8] sm:$0xff]  ;;  %v1200_v59 = vld [vmem:[%s8883_s5 + $0x1e0] sm:$0xff]  ;;  %s8770_s14 = scalar_lea.vmem [#allocation11], %s5310_s17 }
  0x69   : > { %s5312_s23 = sshll.u32 %s9115_s20, 3  ;;  %v5411_v56 = vcombine.low %v6828_v54, %v6833_v55  ;;  %v5412_v57 = vcombine.high %v6828_v54, %v6833_v55  ;;  %v5409_v60 = vcombine.low %v1196_v58, %v1200_v59  ;;  %v5410_v61 = vcombine.high %v1196_v58, %v1200_v59  ;;  %v1188_v62 = vld [vmem:[%s8883_s5 + $0x180] sm:$0xff]  ;;  %v1173_v59 = vld [vmem:[%s8883_s5 + $0x108] sm:$0xff]  ;;  %s5184_s21 = sshll.u32 %s8770_s14, 4  ;;  %s8832_s21 = int_to_ptr.vmem [resolvable:$true] %s5184_s21 }
  0x6a   : > { %s6775_s28 = scalar_lea.vmem %s8878_s0, %s5312_s23  ;;  %v1192_v63 = vld [vmem:[%s8883_s5 + $0x1a0] sm:$0xff]  ;;  %s8830_s15 = scalar_lea.hbm %s8891_s13, %s5608_s19 }
  0x6b   : > { %v514_v2 = vld [vmem:[%s6775_s28] sm:$0xff]  ;;  %v515_v3 = vld [vmem:[%s6775_s28 + $0x8] sm:$0xff]  ;;  %v516_v5 = vld [vmem:[%s6775_s28 + $0x10] sm:$0xff]  ;;  %5786 = vmatpush3.bf16.msra.mxu0 %v6009_v1  ;;  %5910 = vmatpush3.bf16.msra.mxu1 %v6009_v1  ;;  %v5402_v0 = vcombine.high %v1188_v62, %v1192_v63  ;;  %s8838_s25 = scalar_lea.sflag [#allocation4], %s503_s22  ;;  %s6489_s29 = scalar_lea.vmem %s8832_s21, 4096 }
  0x6c   : > { %v546_v4 = vpack.c.bf16 %v515_v3, %v514_v2  ;;  %v517_v6 = vld [vmem:[%s6775_s28 + $0x18] sm:$0xff]  ;;  %v518_v7 = vld [vmem:[%s6775_s28 + $0x20] sm:$0xff]  ;;  %v519_v8 = vld [vmem:[%s6775_s28 + $0x28] sm:$0xff]  ;;  %5819 = vmatprep.subr.bf16.mxu1 %v6010_v28  ;;  %1566 = vmatprep.subr.bf16.mxu0 %v5410_v61  ;;  %v5401_v3 = vcombine.low %v1188_v62, %v1192_v63  ;;  %p6490_p2 = scmp.ne.s32.totalorder %s8832_s21, %s6489_s29 }
  0x6d   : > { %v547_v9 = vpack.c.bf16 %v517_v6, %v516_v5  ;;  %v548_v10 = vpack.c.bf16 %v519_v8, %v518_v7  ;;  %v530_v11 = vld [vmem:[%s6775_s28 + $0x80] sm:$0xff]  ;;  %v531_v12 = vld [vmem:[%s6775_s28 + $0x88] sm:$0xff]  ;;  %v532_v14 = vld [vmem:[%s6775_s28 + $0x90] sm:$0xff] }
  0x6e   : > { %5787 = vmatprep.mubr.msk.bf16.mxu0 %vm585_vm0, %v546_v4  ;;  %v554_v13 = vpack.c.bf16 %v531_v12, %v530_v11  ;;  %v533_v15 = vld [vmem:[%s6775_s28 + $0x98] sm:$0xff]  ;;  %v534_v16 = vld [vmem:[%s6775_s28 + $0xa0] sm:$0xff]  ;;  %v535_v18 = vld [vmem:[%s6775_s28 + $0xa8] sm:$0xff]  ;;  %p6491_p4 = pnand %p6490_p2, %p6684_p5 }
  0x6f   : > { %v555_v17 = vpack.c.bf16 %v533_v15, %v532_v14  ;;  %5788 = vmatmul.mubr.msk.bf16.vlgmr.msra.gmra.mxu0 %vm585_vm0, %v547_v9  ;;  %v520_v19 = vld [vmem:[%s6775_s28 + $0x30] sm:$0xff]  ;;  %v521_v20 = vld [vmem:[%s6775_s28 + $0x38] sm:$0xff]  ;;  %v522_v21 = vld [vmem:[%s6775_s28 + $0x40] sm:$0xff]  ;;  %v556_v22 = vpack.c.bf16 %v535_v18, %v534_v16 }
  0x70   : > { %5803 = vmatprep.mubr.msk.bf16.mxu1 %vm585_vm0, %v554_v13  ;;  %5791 = vmatprep.mubr.msk.bf16.mxu0 %vm585_vm0, %v548_v10  ;;  %v523_v23 = vld [vmem:[%s6775_s28 + $0x48] sm:$0xff]  ;;  %v536_v24 = vld [vmem:[%s6775_s28 + $0xb0] sm:$0xff]  ;;  %v537_v25 = vld [vmem:[%s6775_s28 + $0xb8] sm:$0xff]  ;;  %v549_v29 = vpack.c.bf16 %v521_v20, %v520_v19  ;;  %p6492_p7 = pneg %p6491_p4 }
  0x71   : > { %5804 = vmatmul.mubr.msk.bf16.vlgmr.msra.gmra.mxu1 %vm585_vm0, %v555_v17  ;;  %v538_v26 = vld [vmem:[%s6775_s28 + $0xc0] sm:$0xff]  ;;  %v539_v27 = vld [vmem:[%s6775_s28 + $0xc8] sm:$0xff]  ;;  %v550_v31 = vpack.c.bf16 %v523_v23, %v522_v21  ;;  %v557_v32 = vpack.c.bf16 %v537_v25, %v536_v24  ;;  %v524_v35 = vld [vmem:[%s6775_s28 + $0x50] sm:$0xff]  ;;  %1567 = vmatpush1.bf16.msra.mxu0 %v5409_v60 }
  0x72   : > { %5807 = vmatprep.mubr.msk.bf16.mxu1 %vm585_vm0, %v556_v22  ;;  %v558_v34 = vpack.c.bf16 %v539_v27, %v538_v26  ;;  %5820 = vmatpush3.bf16.msra.mxu1 %v6010_v28  ;;  %v525_v36 = vld [vmem:[%s6775_s28 + $0x58] sm:$0xff]  ;;  %v526_v37 = vld [vmem:[%s6775_s28 + $0x60] sm:$0xff]  ;;  %v527_v38 = vld [vmem:[%s6775_s28 + $0x68] sm:$0xff] }
  0x73   : > { %5821 = vmatprep.subr.bf16.mxu1 %v6011_v30  ;;  %v540_v39 = vld [vmem:[%s6775_s28 + $0xd0] sm:$0xff]  ;;  %v541_v40 = vld [vmem:[%s6775_s28 + $0xd8] sm:$0xff]  ;;  %v542_v41 = vld [vmem:[%s6775_s28 + $0xe0] sm:$0xff]  ;;  %v551_v43 = vpack.c.bf16 %v525_v36, %v524_v35  ;;  %v552_v44 = vpack.c.bf16 %v527_v38, %v526_v37  ;;  %1568 = vmatprep.subr.bf16.mxu0 %v5402_v0 }
  0x74   : > { %v543_v42 = vld [vmem:[%s6775_s28 + $0xe8] sm:$0xff]  ;;  %v559_v45 = vpack.c.bf16 %v541_v40, %v540_v39  ;;  %v528_v47 = vld [vmem:[%s6775_s28 + $0x70] sm:$0xff]  ;;  %v529_v48 = vld [vmem:[%s6775_s28 + $0x78] sm:$0xff] }
  0x75   : > { %v560_v46 = vpack.c.bf16 %v543_v42, %v542_v41  ;;  %v544_v49 = vld [vmem:[%s6775_s28 + $0xf0] sm:$0xff]  ;;  %v545_v50 = vld [vmem:[%s6775_s28 + $0xf8] sm:$0xff]  ;;  %v553_v51 = vpack.c.bf16 %v529_v48, %v528_v47  ;;  %v1180_v1 = vld [vmem:[%s8883_s5 + $0x140] sm:$0xff]  ;;  %1569 = vmatpush1.bf16.msra.mxu0 %v5401_v3  ;;  %s6573_s28 = smov [#allocation11]  }
  0x76   : > { %5822 = vmatpush3.bf16.msra.mxu1 %v6011_v30  ;;  %v561_v52 = vpack.c.bf16 %v545_v50, %v544_v49  ;;  %v1184_v2 = vld [vmem:[%s8883_s5 + $0x160] sm:$0xff]  ;;  %v1177_v60 = vld [vmem:[%s8883_s5 + $0x128] sm:$0xff]  ;;  %s6493_s30 = sshll.u32 %s6573_s28, 4  ;;  %s6494_s30 = int_to_ptr.vmem [resolvable:$false] %s6493_s30 }
  0x77   : > { %5792 = vmatmul.mubr.msk.bf16.gmra.mxu0 %vm585_vm0, %v549_v29  ;;  %5823 = vmatprep.subr.bf16.mxu1 %v6012_v33  ;;  %v5394_v4 = vcombine.high %v1180_v1, %v1184_v2  ;;  %v1172_v5 = vld [vmem:[%s8883_s5 + $0x100] sm:$0xff]  ;;  %v5393_v7 = vcombine.low %v1180_v1, %v1184_v2  ;;  %v5388_v2 = vcombine.high %v1173_v59, %v1177_v60  ;;  %s6495_s16 = scalar_lea.vmem %s6494_s30, 8192  ;;  %p6496_p8 = scmp.lt.s32.totalorder %s8832_s21, %s6494_s30 }
  0x78   : > { %5795 = vmatprep.mubr.msk.bf16.mxu0 %vm585_vm0, %v550_v31  ;;  %v1176_v6 = vld [vmem:[%s8883_s5 + $0x120] sm:$0xff]  ;;  %p6497_p9 = scmp.lt.s32.totalorder %s6495_s16, %s6489_s29 }
  0x79   : > { %5808 = vmatmul.mubr.msk.bf16.gmra.mxu1 %vm585_vm0, %v557_v32  ;;  %1570 = vmatprep.subr.bf16.mxu0 %v5394_v4  ;;  %v5386_v8 = vcombine.high %v1172_v5, %v1176_v6  ;;  %v1164_v9 = vld [vmem:[%s8883_s5 + $0xc0] sm:$0xff]  ;;  %v5385_v11 = vcombine.low %v1172_v5, %v1176_v6  ;;  %v1189_v32 = vld [vmem:[%s8883_s5 + $0x188] sm:$0xff] }
  0x7a   : > { %5811 = vmatprep.mubr.msk.bf16.mxu1 %vm585_vm0, %v558_v34  ;;  %5824 = vmatpush3.bf16.msra.mxu1 %v6012_v33  ;;  %v1168_v10 = vld [vmem:[%s8883_s5 + $0xe0] sm:$0xff]  ;;  %v1193_v33 = vld [vmem:[%s8883_s5 + $0x1a8] sm:$0xff]  ;;  %p6498_p11 = por %p6497_p9, %p6496_p8 }
  0x7b   : > { %5825 = vmatprep.subr.bf16.mxu1 %v6013_v53  ;;  %1571 = vmatpush1.bf16.msra.mxu0 %v5393_v7  ;;  %v5378_v12 = vcombine.high %v1164_v9, %v1168_v10  ;;  %v5377_v13 = vcombine.low %v1164_v9, %v1168_v10  ;;  %v6874_v17 = vld [vmem:[%s8880_s2] ss:$0 sm:$0xff]  ;;  %v5404_v42 = vcombine.high %v1189_v32, %v1193_v33  ;;  %v1165_v4 = vld [vmem:[%s8883_s5 + $0xc8] sm:$0xff] }
  0x7c   : > { %1572 = vmatprep.subr.bf16.mxu0 %v5386_v8  ;;  %v1169_v5 = vld [vmem:[%s8883_s5 + $0xe8] sm:$0xff]  ;;  %p6499_p13 = pnand %p6498_p11, %p6492_p7 }
  0x7e   : > { %5826 = vmatpush3.bf16.msra.mxu1 %v6013_v53 }
  0x7f   : > { %5796 = vmatmul.mubr.msk.bf16.gmra.mxu0 %vm585_vm0, %v551_v43  ;;  %1759 = vmatprep.subr.bf16.mxu1 %v5412_v57 }
  0x80   : > { %5799 = vmatprep.mubr.msk.bf16.mxu0 %vm585_vm0, %v552_v44  ;;  %1573 = vmatpush1.bf16.msra.mxu0 %v5385_v11  ;;  %v1181_v44 = vld [vmem:[%s8883_s5 + $0x148] sm:$0xff] }
  0x81   : > { %5812 = vmatmul.mubr.msk.bf16.gmra.mxu1 %vm585_vm0, %v559_v45  ;;  %1574 = vmatprep.subr.bf16.mxu0 %v5378_v12  ;;  %v1185_v45 = vld [vmem:[%s8883_s5 + $0x168] sm:$0xff]  ;;  %v5387_v12 = vcombine.low %v1173_v59, %v1177_v60 }
  0x82   : > { %5815 = vmatprep.mubr.msk.bf16.mxu1 %vm585_vm0, %v560_v46  ;;  %v5396_v57 = vcombine.high %v1181_v44, %v1185_v45  ;;  %v5395_v63 = vcombine.low %v1181_v44, %v1185_v45 }
  0x84   : > { %1575 = vmatpush1.bf16.msra.mxu0 %v5377_v13 }
  0x87   : > { %5800 = vmatmul.mubr.msk.bf16.gmra.mxu0 %vm585_vm0, %v553_v51  ;;  %v5403_v51 = vcombine.low %v1189_v32, %v1193_v33  ;;  %v5379_v32 = vcombine.low %v1165_v4, %v1169_v5 }
  0x89   : > { %5816 = vmatmul.mubr.msk.bf16.gmra.mxu1 %vm585_vm0, %v561_v52 }
 0x12f   : > { %v5789_v14 = vpop.f32.mrf.mxu0 }
 0x130   : > { %v677_v23 = vadd.f32 %v5789_v14, %v6874_v17  ;;  %v5380_v14 = vcombine.high %v1165_v4, %v1169_v5 }
 0x131   : > { %v6869_v15 = vpop.f32.mrf.mxu1  ;;  %v668_v16 = vpop.f32.mrf.mxu0 }
 0x132   : > { %v669_v20 = vadd.f32 %v6874_v17, %v668_v16  ;;  %v797_v34 = vmax.f32 %v677_v23, 0.0 }
 0x133   : > { %v6876_v18 = vpop.f32.mrf.mxu1  ;;  %v5790_v19 = vpop.f32.mrf.mxu0 }
 0x134   : > { %v680_v21 = vadd.f32 %v5790_v19, %v6874_v17  ;;  %v795_v29 = vmax.f32 %v669_v20, 0.0  ;;  %v1157_v19 = vld [vmem:[%s8883_s5 + $0x88] sm:$0xff] }
 0x135   : > { %v6880_v22 = vpop.f32.mrf.mxu1  ;;  %v671_v24 = vpop.f32.mrf.mxu0  ;;  %v1161_v20 = vld [vmem:[%s8883_s5 + $0xa8] sm:$0xff] }
 0x136   : > { %v672_v25 = vadd.f32 %v6874_v17, %v671_v24  ;;  %v798_v27 = vmax.f32 %v680_v21, 0.0 }
 0x137   : > { %v6884_v26 = vpop.f32.mrf.mxu1  ;;  %v5793_v28 = vpop.f32.mrf.mxu0 }
 0x138   : > { %v796_v30 = vmax.f32 %v672_v25, 0.0  ;;  %v693_v35 = vadd.f32 %v5793_v28, %v6874_v17  ;;  %v828_v39 = vpack.c.bf16 %v798_v27, %v797_v34  ;;  %v733_v25 = vadd.f32 %v6874_v17, %v6876_v18  ;;  %v1149_v18 = vld [vmem:[%s8883_s5 + $0x48] sm:$0xff] }
 0x139   : > { %v6886_v31 = vpop.f32.mrf.mxu1  ;;  %v684_v36 = vpop.f32.mrf.mxu0  ;;  %v5372_v34 = vcombine.high %v1157_v19, %v1161_v20 }
 0x13a   : > { %v827_v37 = vpack.c.bf16 %v796_v30, %v795_v29  ;;  %v685_v38 = vadd.f32 %v6874_v17, %v684_v36  ;;  %v801_v46 = vmax.f32 %v693_v35, 0.0  ;;  %v736_v30 = vadd.f32 %v6874_v17, %v6884_v26  ;;  %v1153_v36 = vld [vmem:[%s8883_s5 + $0x68] sm:$0xff] }
 0x13b   : > { %v5794_v40 = vpop.f32.mrf.mxu0  ;;  %v6896_v41 = vpop.f32.mrf.mxu1 }
 0x13c   : > { %v696_v43 = vadd.f32 %v5794_v40, %v6874_v17  ;;  %5827 = vmatprep.mubr.msk.bf16.mxu1 %vm882_vm1, %v827_v37  ;;  %v799_v48 = vmax.f32 %v685_v38, 0.0  ;;  %v811_v38 = vmax.f32 %v733_v25, 0.0  ;;  %v5371_v40 = vcombine.low %v1157_v19, %v1161_v20 }
 0x13d   : > { %v687_v47 = vpop.f32.mrf.mxu0  ;;  %5828 = vmatmul.mubr.msk.bf16.vlgmr.msra.gmra.mxu1 %vm882_vm1, %v828_v39  ;;  %v6911_v53 = vpop.f32.mrf.mxu1  ;;  %v812_v45 = vmax.f32 %v736_v30, 0.0  ;;  %v749_v59 = vadd.f32 %v6874_v17, %v6896_v41  ;;  %v757_v41 = vadd.f32 %v6886_v31, %v6874_v17  ;;  %v1160_v30 = vld [vmem:[%s8883_s5 + $0xa0] sm:$0xff] }
 0x13e   : > { %v802_v49 = vmax.f32 %v696_v43, 0.0  ;;  %v688_v50 = vadd.f32 %v6874_v17, %v687_v47  ;;  %1760 = vmatpush1.bf16.msra.mxu1 %v5411_v56 }
 0x13f   : > { %v5797_v52 = vpop.f32.mrf.mxu0  ;;  %1761 = vmatprep.subr.bf16.mxu1 %v5404_v42  ;;  %v751_v1 = vpop.f32.mrf.mxu1  ;;  %v817_v4 = vmax.f32 %v757_v41, 0.0  ;;  %v1194_v41 = vld [vmem:[%s8883_s5 + $0x1b0] sm:$0xff] }
 0x140   : > { %v800_v58 = vmax.f32 %v688_v50, 0.0  ;;  %v830_v61 = vpack.c.bf16 %v802_v49, %v801_v46  ;;  %v709_v62 = vadd.f32 %v5797_v52, %v6874_v17  ;;  %v5364_v46 = vcombine.high %v1149_v18, %v1153_v36 }
 0x141   : > { %v700_v54 = vpop.f32.mrf.mxu0  ;;  %v6930_v8 = vpop.f32.mrf.mxu1  ;;  %v741_v49 = vadd.f32 %v6869_v15, %v6874_v17  ;;  %v744_v50 = vadd.f32 %v6880_v22, %v6874_v17  ;;  %v5363_v52 = vcombine.low %v1149_v18, %v1153_v36  ;;  %v752_v60 = vadd.f32 %v6874_v17, %v751_v1  ;;  %v1141_v36 = vld [vmem:[%s8883_s5 + $0x8] sm:$0xff] }
 0x142   : > { %v829_v55 = vpack.c.bf16 %v800_v58, %v799_v48  ;;  %v701_v56 = vadd.f32 %v6874_v17, %v700_v54  ;;  %1762 = vmatpush1.bf16.msra.mxu1 %v5403_v51  ;;  %v805_v6 = vmax.f32 %v709_v62, 0.0  ;;  %v835_v58 = vpack.c.bf16 %v812_v45, %v811_v38  ;;  %v1198_v45 = vld [vmem:[%s8883_s5 + $0x1d0] sm:$0xff] }
 0x143   : > { %v5798_v0 = vpop.f32.mrf.mxu0  ;;  %1763 = vmatprep.subr.bf16.mxu1 %v5396_v57  ;;  %v764_v27 = vpop.f32.mrf.mxu1  ;;  %v813_v15 = vmax.f32 %v741_v49, 0.0  ;;  %v814_v62 = vmax.f32 %v744_v50, 0.0  ;;  %v815_v22 = vmax.f32 %v749_v59, 0.0  ;;  %v816_v54 = vmax.f32 %v752_v60, 0.0  ;;  %v1199_v49 = vld [vmem:[%s8883_s5 + $0x1d8] sm:$0xff] }
 0x144   : > { %5831 = vmatprep.mubr.msk.bf16.mxu1 %vm882_vm1, %v829_v55  ;;  %v712_v3 = vadd.f32 %v5798_v0, %v6874_v17  ;;  %v803_v9 = vmax.f32 %v701_v56, 0.0  ;;  %v765_v1 = vadd.f32 %v6874_v17, %v764_v27  ;;  %v773_v31 = vadd.f32 %v6930_v8, %v6874_v17  ;;  %v1203_v50 = vld [vmem:[%s8883_s5 + $0x1f8] sm:$0xff]  ;;  %v7023_v59 = vld [vmem:[#allocation7] ss:$0 sm:$0xff] }
 0x145   : > { %5832 = vmatmul.mubr.msk.bf16.gmra.mxu1 %vm882_vm1, %v830_v61  ;;  %v703_v7 = vpop.f32.mrf.mxu0  ;;  %v5814_v39 = vpop.f32.mrf.mxu1  ;;  %v836_v56 = vpack.c.bf16 %v814_v62, %v813_v15  ;;  %v837_v0 = vpack.c.bf16 %v816_v54, %v815_v22  ;;  %v1190_v54 = vld [vmem:[%s8883_s5 + $0x190] sm:$0xff] }
 0x146   : > { %v806_v10 = vmax.f32 %v712_v3, 0.0  ;;  %v704_v11 = vadd.f32 %v6874_v17, %v703_v7  ;;  %1764 = vmatpush1.bf16.msra.mxu1 %v5395_v63  ;;  %v760_v63 = vadd.f32 %v6911_v53, %v6874_v17  ;;  %v776_v53 = vadd.f32 %v5814_v39, %v6874_v17  ;;  %v1144_v39 = vld [vmem:[%s8883_s5 + $0x20] sm:$0xff] }
 0x147   : > { %v5801_v13 = vpop.f32.mrf.mxu0  ;;  %1765 = vmatprep.subr.bf16.mxu1 %v5388_v2  ;;  %v767_v51 = vpop.f32.mrf.mxu1 }
 0x148   : > { %v804_v16 = vmax.f32 %v704_v11, 0.0  ;;  %v832_v21 = vpack.c.bf16 %v806_v10, %v805_v6  ;;  %v725_v23 = vadd.f32 %v5801_v13, %v6874_v17  ;;  %v768_v2 = vadd.f32 %v6874_v17, %v767_v51 }
 0x149   : > { %v716_v24 = vpop.f32.mrf.mxu0  ;;  %v5817_v61 = vpop.f32.mrf.mxu1  ;;  %v818_v5 = vmax.f32 %v760_v63, 0.0  ;;  %v819_v6 = vmax.f32 %v765_v1, 0.0  ;;  %v5415_v51 = vcombine.low %v1199_v49, %v1203_v50  ;;  %v1191_v63 = vld [vmem:[%s8883_s5 + $0x198] sm:$0xff] }
 0x14a   : > { %v831_v28 = vpack.c.bf16 %v804_v16, %v803_v9  ;;  %v717_v29 = vadd.f32 %v6874_v17, %v716_v24  ;;  %1766 = vmatpush1.bf16.msra.mxu1 %v5387_v12  ;;  %v809_v26 = vmax.f32 %v725_v23, 0.0  ;;  %v820_v7 = vmax.f32 %v768_v2, 0.0 }
 0x14b   : > { %v5802_v33 = vpop.f32.mrf.mxu0  ;;  %1767 = vmatprep.subr.bf16.mxu1 %v5380_v14  ;;  %v780_v55 = vpop.f32.mrf.mxu1  ;;  %v838_v10 = vpack.c.bf16 %v818_v5, %v817_v4  ;;  %v821_v14 = vmax.f32 %v773_v31, 0.0  ;;  %v822_v16 = vmax.f32 %v776_v53, 0.0  ;;  %v789_v23 = vadd.f32 %v5817_v61, %v6874_v17  ;;  %v1182_v4 = vld [vmem:[%s8883_s5 + $0x150] sm:$0xff]  ;;  %v1187_v31 = vld [vmem:[%s8883_s5 + $0x178] sm:$0xff] }
 0x14c   : > { %5835 = vmatprep.mubr.msk.bf16.mxu1 %vm882_vm1, %v831_v28  ;;  %v728_v35 = vadd.f32 %v5802_v33, %v6874_v17  ;;  %v807_v42 = vmax.f32 %v717_v29, 0.0  ;;  %v839_v11 = vpack.c.bf16 %v820_v7, %v819_v6  ;;  %v781_v12 = vadd.f32 %v6874_v17, %v780_v55  ;;  %v1156_v29 = vld [vmem:[%s8883_s5 + $0x80] sm:$0xff] }
 0x14d   : > { %5836 = vmatmul.mubr.msk.bf16.gmra.mxu1 %vm882_vm1, %v832_v21  ;;  %v719_v37 = vpop.f32.mrf.mxu0  ;;  %v5818_v3 = vpop.f32.mrf.mxu1  ;;  %v840_v21 = vpack.c.bf16 %v822_v16, %v821_v14  ;;  %v825_v25 = vmax.f32 %v789_v23, 0.0  ;;  %v1148_v33 = vld [vmem:[%s8883_s5 + $0x40] sm:$0xff]  ;;  %v5406_v6 = vcombine.high %v1190_v54, %v1194_v41  ;;  %v1178_v23 = vld [vmem:[%s8883_s5 + $0x130] sm:$0xff] }
 0x14e   : > { %v810_v43 = vmax.f32 %v728_v35, 0.0  ;;  %v720_v44 = vadd.f32 %v6874_v17, %v719_v37  ;;  %1768 = vmatpush1.bf16.msra.mxu1 %v5379_v32  ;;  %v823_v19 = vmax.f32 %v781_v12, 0.0  ;;  %v792_v8 = vadd.f32 %v5818_v3, %v6874_v17  ;;  %v1140_v37 = vld [vmem:[%s8883_s5] sm:$0xff] }
 0x14f   : > { %1769 = vmatprep.subr.bf16.mxu1 %v5372_v34  ;;  %v783_v9 = vpop.f32.mrf.mxu1  ;;  %v5370_v32 = vcombine.high %v1156_v29, %v1160_v30  ;;  %v1152_v34 = vld [vmem:[%s8883_s5 + $0x60] sm:$0xff] }
 0x150   : > { %v808_v47 = vmax.f32 %v720_v44, 0.0  ;;  %v834_v48 = vpack.c.bf16 %v810_v43, %v809_v26  ;;  %v784_v13 = vadd.f32 %v6874_v17, %v783_v9  ;;  %v826_v27 = vmax.f32 %v792_v8, 0.0  ;;  %v1145_v26 = vld [vmem:[%s8883_s5 + $0x28] sm:$0xff]  ;;  %v1186_v9 = vld [vmem:[%s8883_s5 + $0x170] sm:$0xff]  ;;  %v1175_v8 = vld [vmem:[%s8883_s5 + $0x118] sm:$0xff] }
 0x151   : > { %v5369_v17 = vcombine.low %v1156_v29, %v1160_v30  ;;  %1576 = vmatprep.subr.bf16.mxu0 %v5370_v32  ;;  %v5362_v35 = vcombine.high %v1148_v33, %v1152_v34  ;;  %v5361_v18 = vcombine.low %v1148_v33, %v1152_v34  ;;  %v5356_v38 = vcombine.high %v1141_v36, %v1145_v26  ;;  %v1166_v33 = vld [vmem:[%s8883_s5 + $0xd0] sm:$0xff] }
 0x152   : > { %v833_v57 = vpack.c.bf16 %v808_v47, %v807_v42  ;;  %1770 = vmatpush1.bf16.msra.mxu1 %v5371_v40  ;;  %v824_v20 = vmax.f32 %v784_v13, 0.0  ;;  %v842_v28 = vpack.c.bf16 %v826_v27, %v825_v25  ;;  %v5355_v40 = vcombine.low %v1141_v36, %v1145_v26  ;;  %v1171_v36 = vld [vmem:[%s8883_s5 + $0xf8] sm:$0xff] }
 0x153   : > { %1771 = vmatprep.subr.bf16.mxu1 %v5364_v46  ;;  %1577 = vmatpush1.bf16.msra.mxu0 %v5369_v17  ;;  %v5353_v42 = vcombine.low %v1140_v37, %v1144_v39  ;;  %v5354_v43 = vcombine.high %v1140_v37, %v1144_v39  ;;  %v6572_v44 = vmov 0   ;;  %v1202_v46 = vld [vmem:[%s8883_s5 + $0x1f0] sm:$0xff]  ;;  %v5398_v14 = vcombine.high %v1182_v4, %v1186_v9 }
 0x154   : > { %5839 = vmatprep.mubr.msk.bf16.mxu1 %vm882_vm1, %v833_v57  ;;  %v841_v24 = vpack.c.bf16 %v824_v20, %v823_v19  ;;  %1578 = vmatprep.subr.bf16.mxu0 %v5362_v35  ;;  %v5413_v47 = vcombine.low %v1198_v45, %v1202_v46  ;;  %v1174_v20 = vld [vmem:[%s8883_s5 + $0x110] sm:$0xff]  ;;  %v5397_v25 = vcombine.low %v1182_v4, %v1186_v9 }
 0x155   : > { %5840 = vmatmul.mubr.msk.bf16.gmra.mxu1 %vm882_vm1, %v834_v48  ;;  %1598 = vmatprep.mubr.bf16.mxu0 %v6572_v44  ;;  %v5414_v48 = vcombine.high %v1198_v45, %v1202_v46  ;;  %v5390_v32 = vcombine.high %v1174_v20, %v1178_v23  ;;  %v1170_v35 = vld [vmem:[%s8883_s5 + $0xf0] sm:$0xff]  ;;  %v5389_v37 = vcombine.low %v1174_v20, %v1178_v23 }
 0x156   : > { %5843 = vmatprep.mubr.msk.bf16.mxu1 %vm882_vm1, %v835_v58  ;;  %1772 = vmatpush1.bf16.msra.mxu1 %v5363_v52  ;;  %v5416_v52 = vcombine.high %v1199_v49, %v1203_v50  ;;  %v1162_v46 = vld [vmem:[%s8883_s5 + $0xb0] sm:$0xff]  ;;  %v5381_v49 = vcombine.low %v1166_v33, %v1170_v35 }
 0x157   : > { %1579 = vmatpush1.bf16.msra.mxu0 %v5361_v18  ;;  %1773 = vmatprep.subr.bf16.mxu1 %v5356_v38  ;;  %v1167_v18 = vld [vmem:[%s8883_s5 + $0xd8] sm:$0xff] }
 0x158   : > { %1580 = vmatprep.subr.bf16.mxu0 %v5354_v43  ;;  %v1158_v43 = vld [vmem:[%s8883_s5 + $0x90] sm:$0xff] }
 0x15a   : > { %1774 = vmatpush1.bf16.msra.mxu1 %v5355_v40  ;;  %v5382_v40 = vcombine.high %v1166_v33, %v1170_v35 }
 0x15b   : > { %1581 = vmatpush1.bf16.msra.mxu0 %v5353_v42  ;;  %2145 = vmatprep.subr.bf16.mxu1 %v5416_v52  ;;  %v5384_v42 = vcombine.high %v1167_v18, %v1171_v36  ;;  %v5383_v52 = vcombine.low %v1167_v18, %v1171_v36 }
 0x15c   : > { %1952 = vmatprep.subr.bf16.mxu0 %v5414_v48  ;;  %v1163_v48 = vld [vmem:[%s8883_s5 + $0xb8] sm:$0xff] }
 0x15d   : > { %5844 = vmatmul.mubr.msk.bf16.gmra.mxu1 %vm882_vm1, %v836_v56 }
 0x15e   : > { %5847 = vmatprep.mubr.msk.bf16.mxu1 %vm882_vm1, %v837_v0  ;;  %v1195_v0 = vld [vmem:[%s8883_s5 + $0x1b8] sm:$0xff] }
 0x15f   : > { %v5408_v7 = vcombine.high %v1191_v63, %v1195_v0  ;;  %v5407_v12 = vcombine.low %v1191_v63, %v1195_v0 }
 0x165   : > { %5848 = vmatmul.mubr.msk.bf16.gmra.mxu1 %vm882_vm1, %v838_v10  ;;  %v1183_v10 = vld [vmem:[%s8883_s5 + $0x158] sm:$0xff] }
 0x166   : > { %5851 = vmatprep.mubr.msk.bf16.mxu1 %vm882_vm1, %v839_v11  ;;  %v5405_v11 = vcombine.low %v1190_v54, %v1194_v41  ;;  %v5400_v16 = vcombine.high %v1183_v10, %v1187_v31  ;;  %v5399_v29 = vcombine.low %v1183_v10, %v1187_v31  ;;  %v1151_v54 = vld [vmem:[%s8883_s5 + $0x58] sm:$0xff] }
 0x16d   : > { %5852 = vmatmul.mubr.msk.bf16.gmra.mxu1 %vm882_vm1, %v840_v21 }
 0x16e   : > { %5855 = vmatprep.mubr.msk.bf16.mxu1 %vm882_vm1, %v841_v24  ;;  %v1179_v24 = vld [vmem:[%s8883_s5 + $0x138] sm:$0xff] }
 0x16f   : > { %v5392_v17 = vcombine.high %v1175_v8, %v1179_v24  ;;  %v5391_v38 = vcombine.low %v1175_v8, %v1179_v24  ;;  %v6016_v8 = vld [vmem:[#allocation8 + $0x74] ss:$8 sps:$4 sm:$0xff]  }
 0x170   : > { %v6019_v24 = vld [vmem:[#allocation8 + $0x174] ss:$8 sps:$4 sm:$0xff]  }
 0x175   : > { %5856 = vmatmul.mubr.msk.bf16.gmra.mxu1 %vm882_vm1, %v842_v28 }
 0x176   : > { %1791 = vmatprep.mubr.bf16.mxu1 %v6572_v44 }
 0x1fd   : > { %v5829_v57 = vpop.f32.mrf.mxu1 }
 0x1fe   : > { %v974_v53 = vadd.f32 %v5829_v57, %v7023_v59 }
 0x1ff   : > { %v965_v58 = vpop.f32.mrf.mxu1 }
 0x200   : > { %v966_v61 = vadd.f32 %v7023_v59, %v965_v58  ;;  %v1094_v21 = vmax.f32 %v974_v53, 0.0  ;;  %v5374_v58 = vcombine.high %v1158_v43, %v1162_v46 }
 0x201   : > { %v5830_v60 = vpop.f32.mrf.mxu1 }
 0x202   : > { %v1092_v55 = vmax.f32 %v966_v61, 0.0  ;;  %v977_v2 = vadd.f32 %v5830_v60, %v7023_v59  ;;  %v1150_v61 = vld [vmem:[%s8883_s5 + $0x50] sm:$0xff] }
 0x203   : > { %v968_v15 = vpop.f32.mrf.mxu1 }
 0x204   : > { %v969_v62 = vadd.f32 %v7023_v59, %v968_v15  ;;  %v1095_v13 = vmax.f32 %v977_v2, 0.0  ;;  %v1142_v2 = vld [vmem:[%s8883_s5 + $0x10] sm:$0xff] }
 0x205   : > { %v7027_v22 = vpop.f32.mrf.mxu1 }
 0x206   : > { %v1093_v56 = vmax.f32 %v969_v62, 0.0  ;;  %v7073_v27 = vpack.c.bf16 %v1095_v13, %v1094_v21  ;;  %v990_v15 = vadd.f32 %v7027_v22, %v7023_v59  ;;  %v1154_v62 = vld [vmem:[%s8883_s5 + $0x70] sm:$0xff] }
 0x207   : > { %v981_v1 = vpop.f32.mrf.mxu1  ;;  %v5366_v0 = vcombine.high %v1150_v61, %v1154_v62  ;;  %v5365_v9 = vcombine.low %v1150_v61, %v1154_v62 }
 0x208   : > { %v7042_v3 = vpack.c.bf16 %v1093_v56, %v1092_v55  ;;  %v982_v34 = vadd.f32 %v7023_v59, %v981_v1  ;;  %v1155_v55 = vld [vmem:[%s8883_s5 + $0x78] sm:$0xff]  ;;  %v5373_v56 = vcombine.low %v1158_v43, %v1162_v46  ;;  %v1098_v4 = vmax.f32 %v990_v15, 0.0 }
 0x209   : > { %v5834_v5 = vpop.f32.mrf.mxu1  ;;  %v5368_v1 = vcombine.high %v1151_v54, %v1155_v55  ;;  %v5367_v10 = vcombine.low %v1151_v54, %v1155_v55 }
 0x20a   : > { %1599 = vmatmul.mubr.bf16.vlgmr.msra.gmra.mxu0 %v7042_v3  ;;  %1792 = vmatmul.mubr.bf16.vlgmr.msra.gmra.mxu1 %v7042_v3  ;;  %v1096_v45 = vmax.f32 %v982_v34, 0.0  ;;  %v993_v50 = vadd.f32 %v5834_v5, %v7023_v59  ;;  %v1146_v5 = vld [vmem:[%s8883_s5 + $0x30] sm:$0xff] }
 0x20b   : > { %1953 = vmatpush1.bf16.msra.mxu0 %v5413_v47  ;;  %2146 = vmatpush1.bf16.msra.mxu1 %v5415_v51  ;;  %v984_v19 = vpop.f32.mrf.mxu1  ;;  %v1159_v47 = vld [vmem:[%s8883_s5 + $0x98] sm:$0xff]  ;;  %v5358_v13 = vcombine.high %v1142_v2, %v1146_v5  ;;  %v5357_v20 = vcombine.low %v1142_v2, %v1146_v5 }
 0x20c   : > { %1608 = vmatprep.mubr.bf16.mxu0 %v6572_v44  ;;  %1801 = vmatprep.mubr.bf16.mxu1 %v6572_v44  ;;  %v985_v28 = vadd.f32 %v7023_v59, %v984_v19  ;;  %v5376_v60 = vcombine.high %v1159_v47, %v1163_v48  ;;  %v1099_v22 = vmax.f32 %v993_v50, 0.0  ;;  %v5375_v41 = vcombine.low %v1159_v47, %v1163_v48 }
 0x20d   : > { %1954 = vmatprep.subr.bf16.mxu0 %v5406_v6  ;;  %2147 = vmatprep.subr.bf16.mxu1 %v5408_v7  ;;  %v7076_v30 = vpop.f32.mrf.mxu1  ;;  %v1143_v6 = vld [vmem:[%s8883_s5 + $0x18] sm:$0xff] }
 0x20e   : > { %v1097_v26 = vmax.f32 %v985_v28, 0.0  ;;  %v1147_v7 = vld [vmem:[%s8883_s5 + $0x38] sm:$0xff]  ;;  %v7140_v31 = vpack.c.bf16 %v1099_v22, %v1098_v4 }
 0x20f   : > { %1955 = vmatpush1.bf16.msra.mxu0 %v5405_v11  ;;  %2148 = vmatpush1.bf16.msra.mxu1 %v5407_v12  ;;  %v997_v39 = vpop.f32.mrf.mxu1  ;;  %v5359_v21 = vcombine.low %v1143_v6, %v1147_v7 }
 0x210   : > { %1956 = vmatprep.subr.bf16.mxu0 %v5398_v14  ;;  %2149 = vmatprep.subr.bf16.mxu1 %v5400_v16  ;;  %v7108_v51 = vpack.c.bf16 %v1097_v26, %v1096_v45  ;;  %v998_v53 = vadd.f32 %v7023_v59, %v997_v39  ;;  %v5360_v14 = vcombine.high %v1143_v6, %v1147_v7 }
 0x211   : > { %v5838_v57 = vpop.f32.mrf.mxu1 }
 0x212   : > { %1609 = vmatmul.mubr.bf16.gmra.mxu0 %v7073_v27  ;;  %1802 = vmatmul.mubr.bf16.gmra.mxu1 %v7073_v27  ;;  %v1100_v16 = vmax.f32 %v998_v53, 0.0  ;;  %v1009_v28 = vadd.f32 %v5838_v57, %v7023_v59 }
 0x213   : > { %1618 = vmatprep.mubr.bf16.mxu0 %v6572_v44  ;;  %1811 = vmatprep.mubr.bf16.mxu1 %v6572_v44  ;;  %v1000_v63 = vpop.f32.mrf.mxu1 }
 0x214   : > { %1957 = vmatpush1.bf16.msra.mxu0 %v5397_v25  ;;  %2150 = vmatpush1.bf16.msra.mxu1 %v5399_v29  ;;  %v1001_v11 = vadd.f32 %v7023_v59, %v1000_v63  ;;  %v1006_v25 = vadd.f32 %v7076_v30, %v7023_v59  ;;  %v1103_v33 = vmax.f32 %v1009_v28, 0.0 }
 0x215   : > { %1958 = vmatprep.subr.bf16.mxu0 %v5390_v32  ;;  %2151 = vmatprep.subr.bf16.mxu1 %v5392_v17  ;;  %v5841_v12 = vpop.f32.mrf.mxu1 }
 0x216   : > { %v1101_v19 = vmax.f32 %v1001_v11, 0.0  ;;  %v1102_v17 = vmax.f32 %v1006_v25, 0.0  ;;  %v1022_v39 = vadd.f32 %v5841_v12, %v7023_v59 }
 0x217   : > { %v1013_v23 = vpop.f32.mrf.mxu1 }
 0x218   : > { %1959 = vmatpush1.bf16.msra.mxu0 %v5389_v37  ;;  %2152 = vmatpush1.bf16.msra.mxu1 %v5391_v38  ;;  %v7151_v29 = vpack.c.bf16 %v1101_v19, %v1100_v16  ;;  %v7157_v34 = vpack.c.bf16 %v1103_v33, %v1102_v17  ;;  %v1014_v35 = vadd.f32 %v7023_v59, %v1013_v23  ;;  %v1106_v45 = vmax.f32 %v1022_v39, 0.0 }
 0x219   : > { %1960 = vmatprep.subr.bf16.mxu0 %v5382_v40  ;;  %2153 = vmatprep.subr.bf16.mxu1 %v5384_v42  ;;  %v5842_v32 = vpop.f32.mrf.mxu1 }
 0x21a   : > { %1619 = vmatmul.mubr.bf16.gmra.mxu0 %v7108_v51  ;;  %1812 = vmatmul.mubr.bf16.gmra.mxu1 %v7108_v51  ;;  %v1104_v26 = vmax.f32 %v1014_v35, 0.0  ;;  %v1025_v40 = vadd.f32 %v5842_v32, %v7023_v59 }
 0x21b   : > { %1628 = vmatprep.mubr.bf16.mxu0 %v6572_v44  ;;  %1821 = vmatprep.mubr.bf16.mxu1 %v6572_v44  ;;  %v1016_v30 = vpop.f32.mrf.mxu1 }
 0x21c   : > { %1961 = vmatpush1.bf16.msra.mxu0 %v5381_v49  ;;  %2154 = vmatpush1.bf16.msra.mxu1 %v5383_v52  ;;  %v1017_v18 = vadd.f32 %v7023_v59, %v1016_v30  ;;  %v1107_v46 = vmax.f32 %v1025_v40, 0.0 }
 0x21d   : > { %1962 = vmatprep.subr.bf16.mxu0 %v5374_v58  ;;  %2155 = vmatprep.subr.bf16.mxu1 %v5376_v60  ;;  %v5845_v36 = vpop.f32.mrf.mxu1 }
 0x21e   : > { %v1105_v37 = vmax.f32 %v1017_v18, 0.0  ;;  %v7173_v48 = vpack.c.bf16 %v1107_v46, %v1106_v45  ;;  %v1038_v61 = vadd.f32 %v5845_v36, %v7023_v59  ;;  %v6017_v46 = vld [vmem:[#allocation8 + $0x170] ss:$8 sps:$4 sm:$0xff]  }
 0x21f   : > { %v1029_v38 = vpop.f32.mrf.mxu1 }
 0x220   : > { %1963 = vmatpush1.bf16.msra.mxu0 %v5373_v56  ;;  %2156 = vmatpush1.bf16.msra.mxu1 %v5375_v41  ;;  %v7167_v42 = vpack.c.bf16 %v1105_v37, %v1104_v26  ;;  %v1030_v49 = vadd.f32 %v7023_v59, %v1029_v38  ;;  %v1110_v55 = vmax.f32 %v1038_v61, 0.0  ;;  %v6029_v61 = vld [vmem:[#allocation8 + $0x150] ss:$8 sps:$4 sm:$0xff]  }
 0x221   : > { %1964 = vmatprep.subr.bf16.mxu0 %v5366_v0  ;;  %2157 = vmatprep.subr.bf16.mxu1 %v5368_v1  ;;  %v5846_v43 = vpop.f32.mrf.mxu1 }
 0x222   : > { %1629 = vmatmul.mubr.bf16.gmra.mxu0 %v7140_v31  ;;  %1822 = vmatmul.mubr.bf16.gmra.mxu1 %v7140_v31  ;;  %v1108_v57 = vmax.f32 %v1030_v49, 0.0  ;;  %v1041_v15 = vadd.f32 %v5846_v43, %v7023_v59  ;;  %v6025_v49 = vld [vmem:[#allocation8 + $0x164] ss:$8 sps:$4 sm:$0xff]  }
 0x223   : > { %1638 = vmatprep.mubr.bf16.mxu0 %v6572_v44  ;;  %1831 = vmatprep.mubr.bf16.mxu1 %v6572_v44  ;;  %v1032_v47 = vpop.f32.mrf.mxu1 }
 0x224   : > { %1965 = vmatpush1.bf16.msra.mxu0 %v5365_v9  ;;  %2158 = vmatpush1.bf16.msra.mxu1 %v5367_v10  ;;  %v1033_v50 = vadd.f32 %v7023_v59, %v1032_v47  ;;  %v1111_v22 = vmax.f32 %v1041_v15, 0.0  ;;  %v6022_v47 = vld [vmem:[#allocation8 + $0x64] ss:$8 sps:$4 sm:$0xff]  }
 0x225   : > { %1966 = vmatprep.subr.bf16.mxu0 %v5358_v13  ;;  %2159 = vmatprep.subr.bf16.mxu1 %v5360_v14  ;;  %v5849_v52 = vpop.f32.mrf.mxu1  ;;  %v6034_v15 = vld [vmem:[#allocation8 + $0x44] ss:$8 sps:$4 sm:$0xff]  }
 0x226   : > { %v1109_v58 = vmax.f32 %v1033_v50, 0.0  ;;  %v7189_v41 = vpack.c.bf16 %v1111_v22, %v1110_v55  ;;  %v1054_v6 = vadd.f32 %v5849_v52, %v7023_v59  ;;  %v6020_v50 = vld [vmem:[#allocation8 + $0x60] ss:$8 sps:$4 sm:$0xff]   ;;  %v6040_v22 = vld [vmem:[#allocation8 + $0x34] ss:$8 sps:$4 sm:$0xff]  }
 0x227   : > { %v1045_v60 = vpop.f32.mrf.mxu1  ;;  %v6023_v52 = vld [vmem:[#allocation8 + $0x160] ss:$8 sps:$4 sm:$0xff]  }
 0x228   : > { %1967 = vmatpush1.bf16.msra.mxu0 %v5357_v20  ;;  %2160 = vmatpush1.bf16.msra.mxu1 %v5359_v21  ;;  %v7183_v62 = vpack.c.bf16 %v1109_v58, %v1108_v57  ;;  %v1046_v63 = vadd.f32 %v7023_v59, %v1045_v60  ;;  %v1114_v53 = vmax.f32 %v1054_v6, 0.0  ;;  %v6028_v57 = vld [vmem:[#allocation8 + $0x54] ss:$8 sps:$4 sm:$0xff]   ;;  %v6026_v60 = vld [vmem:[#allocation8 + $0x50] ss:$8 sps:$4 sm:$0xff]  }
 0x229   : > { %3502 = vmatprep.subr.bf16.mxu0 %v6016_v8  ;;  %3695 = vmatprep.subr.bf16.mxu1 %v6019_v24  ;;  %v5850_v54 = vpop.f32.mrf.mxu1  ;;  %v6031_v58 = vld [vmem:[#allocation8 + $0x154] ss:$8 sps:$4 sm:$0xff]   ;;  %v6035_v55 = vld [vmem:[#allocation8 + $0x140] ss:$8 sps:$4 sm:$0xff]  }
 0x22a   : > { %1639 = vmatmul.mubr.bf16.gmra.mxu0 %v7151_v29  ;;  %1832 = vmatmul.mubr.bf16.gmra.mxu1 %v7151_v29  ;;  %v1112_v2 = vmax.f32 %v1046_v63, 0.0  ;;  %v1057_v7 = vadd.f32 %v5850_v54, %v7023_v59  ;;  %v6032_v54 = vld [vmem:[#allocation8 + $0x40] ss:$8 sps:$4 sm:$0xff]   ;;  %v6038_v63 = vld [vmem:[#allocation8 + $0x30] ss:$8 sps:$4 sm:$0xff]  }
 0x22b   : > { %1648 = vmatprep.mubr.bf16.mxu0 %v6572_v44  ;;  %1841 = vmatprep.mubr.bf16.mxu1 %v6572_v44  ;;  %v1048_v56 = vpop.f32.mrf.mxu1  ;;  %v6055_v6 = vld [vmem:[#allocation8 + $0x114] ss:$8 sps:$4 sm:$0xff]  }
 0x22c   : > { %v1049_v0 = vadd.f32 %v7023_v59, %v1048_v56  ;;  %v1115_v11 = vmax.f32 %v1057_v7, 0.0  ;;  %v6043_v56 = vld [vmem:[#allocation8 + $0x134] ss:$8 sps:$4 sm:$0xff]   ;;  %v6050_v7 = vld [vmem:[#allocation8 + $0x10] ss:$8 sps:$4 sm:$0xff]  }
 0x22d   : > { %v5853_v1 = vpop.f32.mrf.mxu1 }
 0x22e   : > { %v1113_v4 = vmax.f32 %v1049_v0, 0.0  ;;  %v7205_v13 = vpack.c.bf16 %v1115_v11, %v1114_v53  ;;  %v1070_v8 = vadd.f32 %v5853_v1, %v7023_v59  ;;  %v6041_v0 = vld [vmem:[#allocation8 + $0x130] ss:$8 sps:$4 sm:$0xff]   ;;  %v6046_v1 = vld [vmem:[#allocation8 + $0x24] ss:$8 sps:$4 sm:$0xff]  }
 0x22f   : > { %v1061_v5 = vpop.f32.mrf.mxu1  ;;  %v6058_v53 = vld [vmem:[#allocation8 + $0x4] ss:$8 sps:$4 sm:$0xff]   ;;  %v6056_v11 = vld [vmem:[#allocation8] ss:$8 sps:$4 sm:$0xff]  }
 0x230   : > { %v7199_v9 = vpack.c.bf16 %v1113_v4, %v1112_v2  ;;  %v1062_v14 = vadd.f32 %v7023_v59, %v1061_v5  ;;  %v1118_v32 = vmax.f32 %v1070_v8, 0.0  ;;  %v6044_v2 = vld [vmem:[#allocation8 + $0x20] ss:$8 sps:$4 sm:$0xff]   ;;  %v6052_v5 = vld [vmem:[#allocation8 + $0x14] ss:$8 sps:$4 sm:$0xff]  }
 0x231   : > { %v5854_v10 = vpop.f32.mrf.mxu1  ;;  %v6047_v4 = vld [vmem:[#allocation8 + $0x120] ss:$8 sps:$4 sm:$0xff]  }
 0x232   : > { %1649 = vmatmul.mubr.bf16.gmra.mxu0 %v7157_v34  ;;  %1842 = vmatmul.mubr.bf16.gmra.mxu1 %v7157_v34  ;;  %v1116_v20 = vmax.f32 %v1062_v14, 0.0  ;;  %v1073_v24 = vadd.f32 %v5854_v10, %v7023_v59  ;;  %v6053_v10 = vld [vmem:[#allocation8 + $0x110] ss:$8 sps:$4 sm:$0xff]   ;;  %v6064_v14 = vld [vmem:[#allocation8 + $0xf4] ss:$8 sps:$4 sm:$0xff]  }
 0x233   : > { %1658 = vmatprep.mubr.bf16.mxu0 %v6572_v44  ;;  %1851 = vmatprep.mubr.bf16.mxu1 %v6572_v44  ;;  %v1064_v12 = vpop.f32.mrf.mxu1  ;;  %v6071_v8 = vld [vmem:[#allocation8 + $0x1e0] ss:$8 sps:$4 sm:$0xff]  }
 0x234   : > { %v1065_v16 = vadd.f32 %v7023_v59, %v1064_v12  ;;  %v1119_v17 = vmax.f32 %v1073_v24, 0.0  ;;  %v6059_v12 = vld [vmem:[#allocation8 + $0x100] ss:$8 sps:$4 sm:$0xff]   ;;  %v6076_v24 = vld [vmem:[#allocation8 + $0xd4] ss:$8 sps:$4 sm:$0xff]  }
 0x235   : > { %v5857_v19 = vpop.f32.mrf.mxu1 }
 0x236   : > { %v1117_v21 = vmax.f32 %v1065_v16, 0.0  ;;  %v7221_v30 = vpack.c.bf16 %v1119_v17, %v1118_v32  ;;  %v1086_v37 = vadd.f32 %v5857_v19, %v7023_v59  ;;  %v6067_v16 = vld [vmem:[#allocation8 + $0x1f4] ss:$8 sps:$4 sm:$0xff]   ;;  %v6062_v19 = vld [vmem:[#allocation8 + $0xf0] ss:$8 sps:$4 sm:$0xff]  }
 0x237   : > { %v1077_v23 = vpop.f32.mrf.mxu1  ;;  %v6074_v32 = vld [vmem:[#allocation8 + $0xd0] ss:$8 sps:$4 sm:$0xff]  }
 0x238   : > { %v7215_v25 = vpack.c.bf16 %v1117_v21, %v1116_v20  ;;  %v1078_v35 = vadd.f32 %v7023_v59, %v1077_v23  ;;  %v1122_v40 = vmax.f32 %v1086_v37, 0.0  ;;  %v6065_v20 = vld [vmem:[#allocation8 + $0x1f0] ss:$8 sps:$4 sm:$0xff]   ;;  %v6070_v21 = vld [vmem:[#allocation8 + $0xe4] ss:$8 sps:$4 sm:$0xff]  }
 0x239   : > { %v5858_v28 = vpop.f32.mrf.mxu1  ;;  %v6068_v23 = vld [vmem:[#allocation8 + $0xe0] ss:$8 sps:$4 sm:$0xff]   ;;  %v6077_v17 = vld [vmem:[#allocation8 + $0x1d0] ss:$8 sps:$4 sm:$0xff]  }
 0x23a   : > { %1659 = vmatmul.mubr.bf16.gmra.mxu0 %v7167_v42  ;;  %1852 = vmatmul.mubr.bf16.gmra.mxu1 %v7167_v42  ;;  %v1120_v36 = vmax.f32 %v1078_v35, 0.0  ;;  %v1089_v38 = vadd.f32 %v5858_v28, %v7023_v59  ;;  %v6079_v28 = vld [vmem:[#allocation8 + $0x1d4] ss:$8 sps:$4 sm:$0xff]   ;;  %v6080_v35 = vld [vmem:[#allocation8 + $0xc0] ss:$8 sps:$4 sm:$0xff]  }
 0x23b   : > { %1668 = vmatprep.mubr.bf16.mxu0 %v6572_v44  ;;  %1861 = vmatprep.mubr.bf16.mxu1 %v6572_v44  ;;  %v1080_v33 = vpop.f32.mrf.mxu1  ;;  %v6086_v37 = vld [vmem:[#allocation8 + $0xb0] ss:$8 sps:$4 sm:$0xff]  }
 0x23c   : > { %v1081_v18 = vadd.f32 %v7023_v59, %v1080_v33  ;;  %v1123_v43 = vmax.f32 %v1089_v38, 0.0  ;;  %v6014_v59 = vld [vmem:[#allocation8 + $0x70] ss:$8 sps:$4 sm:$0xff]   ;;  %v6082_v33 = vld [vmem:[#allocation8 + $0xc4] ss:$8 sps:$4 sm:$0xff]  }
 0x23d   : > { %v6089_v38 = vld [vmem:[#allocation8 + $0x1b0] ss:$8 sps:$4 sm:$0xff]  }
 0x23e   : > { %v1121_v26 = vmax.f32 %v1081_v18, 0.0  ;;  %v7237_v45 = vpack.c.bf16 %v1123_v43, %v1122_v40  ;;  %v6083_v18 = vld [vmem:[#allocation8 + $0x1c0] ss:$8 sps:$4 sm:$0xff]   ;;  %v6094_v40 = vld [vmem:[#allocation8 + $0xa4] ss:$8 sps:$4 sm:$0xff]  }
 0x23f   : > { %v6092_v43 = vld [vmem:[#allocation8 + $0xa0] ss:$8 sps:$4 sm:$0xff]  }
 0x240   : > { %v7231_v39 = vpack.c.bf16 %v1121_v26, %v1120_v36  ;;  %v6088_v36 = vld [vmem:[#allocation8 + $0xb4] ss:$8 sps:$4 sm:$0xff]  }
 0x241   : > { %v6091_v26 = vld [vmem:[#allocation8 + $0x1b4] ss:$8 sps:$4 sm:$0xff]  }
 0x242   : > { %1669 = vmatmul.mubr.bf16.gmra.mxu0 %v7173_v48  ;;  %1862 = vmatmul.mubr.bf16.gmra.mxu1 %v7173_v48 }
 0x243   : > { %1678 = vmatprep.mubr.bf16.mxu0 %v6572_v44  ;;  %1871 = vmatprep.mubr.bf16.mxu1 %v6572_v44 }
 0x24a   : > { %1679 = vmatmul.mubr.bf16.gmra.mxu0 %v7183_v62  ;;  %1872 = vmatmul.mubr.bf16.gmra.mxu1 %v7183_v62 }
 0x24b   : > { %1688 = vmatprep.mubr.bf16.mxu0 %v6572_v44  ;;  %1881 = vmatprep.mubr.bf16.mxu1 %v6572_v44 }
 0x252   : > { %1689 = vmatmul.mubr.bf16.gmra.mxu0 %v7189_v41  ;;  %1882 = vmatmul.mubr.bf16.gmra.mxu1 %v7189_v41 }
 0x253   : > { %1698 = vmatprep.mubr.bf16.mxu0 %v6572_v44  ;;  %1891 = vmatprep.mubr.bf16.mxu1 %v6572_v44 }
 0x25a   : > { %1699 = vmatmul.mubr.bf16.gmra.mxu0 %v7199_v9  ;;  %1892 = vmatmul.mubr.bf16.gmra.mxu1 %v7199_v9 }
 0x25b   : > { %1708 = vmatprep.mubr.bf16.mxu0 %v6572_v44  ;;  %1901 = vmatprep.mubr.bf16.mxu1 %v6572_v44 }
 0x262   : > { %1709 = vmatmul.mubr.bf16.gmra.mxu0 %v7205_v13  ;;  %1902 = vmatmul.mubr.bf16.gmra.mxu1 %v7205_v13 }
 0x263   : > { %1718 = vmatprep.mubr.bf16.mxu0 %v6572_v44  ;;  %1911 = vmatprep.mubr.bf16.mxu1 %v6572_v44 }
 0x26a   : > { %1719 = vmatmul.mubr.bf16.gmra.mxu0 %v7215_v25  ;;  %1912 = vmatmul.mubr.bf16.gmra.mxu1 %v7215_v25 }
 0x26b   : > { %1728 = vmatprep.mubr.bf16.mxu0 %v6572_v44  ;;  %1921 = vmatprep.mubr.bf16.mxu1 %v6572_v44 }
 0x272   : > { %1729 = vmatmul.mubr.bf16.gmra.mxu0 %v7221_v30  ;;  %1922 = vmatmul.mubr.bf16.gmra.mxu1 %v7221_v30 }
 0x273   : > { %1738 = vmatprep.mubr.bf16.mxu0 %v6572_v44  ;;  %1931 = vmatprep.mubr.bf16.mxu1 %v6572_v44 }
 0x27a   : > { %1739 = vmatmul.mubr.bf16.gmra.mxu0 %v7231_v39  ;;  %1932 = vmatmul.mubr.bf16.gmra.mxu1 %v7231_v39 }
 0x27b   : > { %1748 = vmatprep.mubr.bf16.mxu0 %v6572_v44  ;;  %1941 = vmatprep.mubr.bf16.mxu1 %v6572_v44 }
 0x282   : > { %1749 = vmatmul.mubr.bf16.gmra.mxu0 %v7237_v45  ;;  %1942 = vmatmul.mubr.bf16.gmra.mxu1 %v7237_v45 }
 0x283   : > { %1984 = vmatprep.mubr.bf16.mxu0 %v6572_v44  ;;  %2177 = vmatprep.mubr.bf16.mxu1 %v6572_v44 }
 0x28a   : > { %1985 = vmatmul.mubr.bf16.vlgmr.msra.gmra.mxu0 %v7042_v3  ;;  %2178 = vmatmul.mubr.bf16.vlgmr.msra.gmra.mxu1 %v7042_v3  ;;  %v6037_v3 = vld [vmem:[#allocation8 + $0x144] ss:$8 sps:$4 sm:$0xff]  }
 0x28b   : > { %3503 = vmatpush1.bf16.msra.mxu0 %v6014_v59  ;;  %3696 = vmatpush1.bf16.msra.mxu1 %v6017_v46  ;;  %v6095_v59 = vld [vmem:[#allocation8 + $0x1a0] ss:$8 sps:$4 sm:$0xff]   ;;  %v6100_v46 = vld [vmem:[#allocation8 + $0x94] ss:$8 sps:$4 sm:$0xff]  }
 0x28c   : > { %1994 = vmatprep.mubr.bf16.mxu0 %v6572_v44  ;;  %2187 = vmatprep.mubr.bf16.mxu1 %v6572_v44 }
 0x28d   : > { %3504 = vmatprep.subr.bf16.mxu0 %v6022_v47  ;;  %3697 = vmatprep.subr.bf16.mxu1 %v6025_v49  ;;  %v6103_v47 = vld [vmem:[#allocation8 + $0x194] ss:$8 sps:$4 sm:$0xff]   ;;  %v6098_v49 = vld [vmem:[#allocation8 + $0x90] ss:$8 sps:$4 sm:$0xff]  }
 0x28f   : > { %3505 = vmatpush1.bf16.msra.mxu0 %v6020_v50  ;;  %3698 = vmatpush1.bf16.msra.mxu1 %v6023_v52  ;;  %v6101_v50 = vld [vmem:[#allocation8 + $0x190] ss:$8 sps:$4 sm:$0xff]   ;;  %v6106_v52 = vld [vmem:[#allocation8 + $0x84] ss:$8 sps:$4 sm:$0xff]  }
 0x290   : > { %3506 = vmatprep.subr.bf16.mxu0 %v6028_v57  ;;  %3699 = vmatprep.subr.bf16.mxu1 %v6031_v58  ;;  %v6104_v57 = vld [vmem:[#allocation8 + $0x80] ss:$8 sps:$4 sm:$0xff]  }
 0x291   : > { %v6107_v58 = vld [vmem:[#allocation8 + $0x180] ss:$8 sps:$4 sm:$0xff]  }
 0x292   : > { %1995 = vmatmul.mubr.bf16.gmra.mxu0 %v7073_v27  ;;  %2188 = vmatmul.mubr.bf16.gmra.mxu1 %v7073_v27  ;;  %v6049_v27 = vld [vmem:[#allocation8 + $0x124] ss:$8 sps:$4 sm:$0xff]  }
 0x293   : > { %2004 = vmatprep.mubr.bf16.mxu0 %v6572_v44  ;;  %2197 = vmatprep.mubr.bf16.mxu1 %v6572_v44 }
 0x294   : > { %3507 = vmatpush1.bf16.msra.mxu0 %v6026_v60  ;;  %3700 = vmatpush1.bf16.msra.mxu1 %v6029_v61  ;;  %v6112_v60 = vld [vmem:[#allocation8 + $0x274] ss:$8 sps:$4 sm:$0xff]  }
 0x295   : > { %3508 = vmatprep.subr.bf16.mxu0 %v6034_v15  ;;  %3701 = vmatprep.subr.bf16.mxu1 %v6037_v3  ;;  %v6115_v61 = vld [vmem:[#allocation8 + $0x374] ss:$8 sps:$4 sm:$0xff]  }
 0x298   : > { %3509 = vmatpush1.bf16.msra.mxu0 %v6032_v54  ;;  %3702 = vmatpush1.bf16.msra.mxu1 %v6035_v55 }
 0x299   : > { %3510 = vmatprep.subr.bf16.mxu0 %v6040_v22  ;;  %3703 = vmatprep.subr.bf16.mxu1 %v6043_v56 }
 0x29a   : > { %2005 = vmatmul.mubr.bf16.gmra.mxu0 %v7108_v51  ;;  %2198 = vmatmul.mubr.bf16.gmra.mxu1 %v7108_v51  ;;  %v6061_v51 = vld [vmem:[#allocation8 + $0x104] ss:$8 sps:$4 sm:$0xff]  }
 0x29b   : > { %2014 = vmatprep.mubr.bf16.mxu0 %v6572_v44  ;;  %2207 = vmatprep.mubr.bf16.mxu1 %v6572_v44 }
 0x29c   : > { %3511 = vmatpush1.bf16.msra.mxu0 %v6038_v63  ;;  %3704 = vmatpush1.bf16.msra.mxu1 %v6041_v0 }
 0x29d   : > { %3512 = vmatprep.subr.bf16.mxu0 %v6046_v1  ;;  %3705 = vmatprep.subr.bf16.mxu1 %v6049_v27 }
 0x2a0   : > { %3513 = vmatpush1.bf16.msra.mxu0 %v6044_v2  ;;  %3706 = vmatpush1.bf16.msra.mxu1 %v6047_v4 }
 0x2a1   : > { %3514 = vmatprep.subr.bf16.mxu0 %v6052_v5  ;;  %3707 = vmatprep.subr.bf16.mxu1 %v6055_v6 }
 0x2a2   : > { %2015 = vmatmul.mubr.bf16.gmra.mxu0 %v7140_v31  ;;  %2208 = vmatmul.mubr.bf16.gmra.mxu1 %v7140_v31  ;;  %v6073_v31 = vld [vmem:[#allocation8 + $0x1e4] ss:$8 sps:$4 sm:$0xff]  }
 0x2a3   : > { %2024 = vmatprep.mubr.bf16.mxu0 %v6572_v44  ;;  %2217 = vmatprep.mubr.bf16.mxu1 %v6572_v44 }
 0x2a4   : > { %3515 = vmatpush1.bf16.msra.mxu0 %v6050_v7  ;;  %3708 = vmatpush1.bf16.msra.mxu1 %v6053_v10 }
 0x2a5   : > { %3516 = vmatprep.subr.bf16.mxu0 %v6058_v53  ;;  %3709 = vmatprep.subr.bf16.mxu1 %v6061_v51 }
 0x2a8   : > { %3517 = vmatpush1.bf16.msra.mxu0 %v6056_v11  ;;  %3710 = vmatpush1.bf16.msra.mxu1 %v6059_v12 }
 0x2a9   : > { %3518 = vmatprep.subr.bf16.mxu0 %v6064_v14  ;;  %3711 = vmatprep.subr.bf16.mxu1 %v6067_v16 }
 0x2aa   : > { %2025 = vmatmul.mubr.bf16.gmra.mxu0 %v7151_v29  ;;  %2218 = vmatmul.mubr.bf16.gmra.mxu1 %v7151_v29  ;;  %v6085_v29 = vld [vmem:[#allocation8 + $0x1c4] ss:$8 sps:$4 sm:$0xff]  }
 0x2ab   : > { %2034 = vmatprep.mubr.bf16.mxu0 %v6572_v44  ;;  %2227 = vmatprep.mubr.bf16.mxu1 %v6572_v44 }
 0x2ac   : > { %3519 = vmatpush2.bf16.msra.mxu0 %v6062_v19  ;;  %3712 = vmatpush2.bf16.msra.mxu1 %v6065_v20 }
 0x2ad   : > { %3520 = vmatprep.subr.bf16.mxu0 %v6070_v21  ;;  %3713 = vmatprep.subr.bf16.mxu1 %v6073_v31 }
 0x2b0   : > { %3521 = vmatpush2.bf16.msra.mxu0 %v6068_v23  ;;  %3714 = vmatpush2.bf16.msra.mxu1 %v6071_v8 }
 0x2b1   : > { %3522 = vmatprep.subr.bf16.mxu0 %v6076_v24  ;;  %3715 = vmatprep.subr.bf16.mxu1 %v6079_v28 }
 0x2b2   : > { %2035 = vmatmul.mubr.bf16.gmra.mxu0 %v7157_v34  ;;  %2228 = vmatmul.mubr.bf16.gmra.mxu1 %v7157_v34  ;;  %v6097_v34 = vld [vmem:[#allocation8 + $0x1a4] ss:$8 sps:$4 sm:$0xff]  }
 0x2b3   : > { %2044 = vmatprep.mubr.bf16.mxu0 %v6572_v44  ;;  %2237 = vmatprep.mubr.bf16.mxu1 %v6572_v44 }
 0x2b4   : > { %3523 = vmatpush2.bf16.msra.mxu0 %v6074_v32  ;;  %3716 = vmatpush2.bf16.msra.mxu1 %v6077_v17  ;;  %v1206_v17 = vlaneseq }
 0x2b5   : > { %3524 = vmatprep.subr.bf16.mxu0 %v6082_v33  ;;  %3717 = vmatprep.subr.bf16.mxu1 %v6085_v29 }
 0x2b8   : > { %3525 = vmatpush2.bf16.msra.mxu0 %v6080_v35  ;;  %3718 = vmatpush2.bf16.msra.mxu1 %v6083_v18 }
 0x2b9   : > { %3526 = vmatprep.subr.bf16.mxu0 %v6088_v36  ;;  %3719 = vmatprep.subr.bf16.mxu1 %v6091_v26  ;;  %v7375_v36 = vshrl.u32 %v1206_v17, 7 }
 0x2ba   : > { %2045 = vmatmul.mubr.bf16.gmra.mxu0 %v7167_v42  ;;  %2238 = vmatmul.mubr.bf16.gmra.mxu1 %v7167_v42  ;;  %v6109_v42 = vld [vmem:[#allocation8 + $0x184] ss:$8 sps:$4 sm:$0xff]  }
 0x2bb   : > { %2054 = vmatprep.mubr.bf16.mxu0 %v6572_v44  ;;  %2247 = vmatprep.mubr.bf16.mxu1 %v6572_v44  ;;  %8926 = vst [vmem:[#allocation22_spill] sm:$0xff] %v7375_v36 }
 0x2bc   : > { %3527 = vmatpush2.bf16.msra.mxu0 %v6086_v37  ;;  %3720 = vmatpush2.bf16.msra.mxu1 %v6089_v38  ;;  %v8903_v37 = vsub.s32 1, %v7375_v36  ;;  %v1220_v38 = vsub.s32 3, %v7375_v36 }
 0x2bd   : > { %3528 = vmatprep.subr.bf16.mxu0 %v6094_v40  ;;  %3721 = vmatprep.subr.bf16.mxu1 %v6097_v34 }
 0x2c0   : > { %3529 = vmatpush2.bf16.msra.mxu0 %v6092_v43  ;;  %3722 = vmatpush2.bf16.msra.mxu1 %v6095_v59  ;;  %v1204_v43 = vld [vmem:[%s8884_s6] sm:$0xff] }
 0x2c1   : > { %3530 = vmatprep.subr.bf16.mxu0 %v6100_v46  ;;  %3723 = vmatprep.subr.bf16.mxu1 %v6103_v47  ;;  %v7402_v47 = vrot.slane %v1204_v43, %v1220_v38 }
 0x2c2   : > { %2055 = vmatmul.mubr.bf16.gmra.mxu0 %v7173_v48  ;;  %2248 = vmatmul.mubr.bf16.gmra.mxu1 %v7173_v48 }
 0x2c3   : > { %2064 = vmatprep.mubr.bf16.mxu0 %v6572_v44  ;;  %2257 = vmatprep.mubr.bf16.mxu1 %v6572_v44 }
 0x2c4   : > { %3531 = vmatpush2.bf16.msra.mxu0 %v6098_v49  ;;  %3724 = vmatpush2.bf16.msra.mxu1 %v6101_v50 }
 0x2c5   : > { %3532 = vmatprep.subr.bf16.mxu0 %v6106_v52  ;;  %3725 = vmatprep.subr.bf16.mxu1 %v6109_v42 }
 0x2c8   : > { %3533 = vmatpush2.bf16.msra.mxu0 %v6104_v57  ;;  %3726 = vmatpush2.bf16.msra.mxu1 %v6107_v58  ;;  %v1216_v58 = vsub.s32 2, %v7375_v36 }
 0x2c9   : > { %3888 = vmatprep.subr.bf16.mxu0 %v6112_v60  ;;  %4081 = vmatprep.subr.bf16.mxu1 %v6115_v61 }
 0x2ca   : > { %v7275_v15 = vpop.f32.mrf.mxu0  ;;  %v7277_v3 = vpop.f32.mrf.mxu1  ;;  %2065 = vmatmul.mubr.bf16.gmra.mxu0 %v7183_v62  ;;  %2258 = vmatmul.mubr.bf16.gmra.mxu1 %v7183_v62 }
 0x2cb   : > { %2074 = vmatprep.mubr.bf16.mxu0 %v6572_v44  ;;  %2267 = vmatprep.mubr.bf16.mxu1 %v6572_v44 }
 0x2cc   : > { %v7283_v48 = vpop.f32.mrf.mxu0  ;;  %v7285_v54 = vpop.f32.mrf.mxu1 }
 0x2ce   : > { %v7287_v55 = vpop.f32.mrf.mxu0  ;;  %v7289_v22 = vpop.f32.mrf.mxu1 }
 0x2d0   : > { %v7291_v56 = vpop.f32.mrf.mxu0  ;;  %v7293_v63 = vpop.f32.mrf.mxu1 }
 0x2d1   : > { %v1800_v42 = vadd.f32 %v7293_v63, %v7402_v47 }
 0x2d2   : > { %v7295_v0 = vpop.f32.mrf.mxu0  ;;  %v7297_v1 = vpop.f32.mrf.mxu1  ;;  %2075 = vmatmul.mubr.bf16.gmra.mxu0 %v7189_v41  ;;  %2268 = vmatmul.mubr.bf16.gmra.mxu1 %v7189_v41 }
 0x2d3   : > { %2084 = vmatprep.mubr.bf16.mxu0 %v6572_v44  ;;  %2277 = vmatprep.mubr.bf16.mxu1 %v6572_v44  ;;  %v2349_v57 = vmax.f32 %v1800_v42, 0.0 }
 0x2d4   : > { %v7303_v62 = vpop.f32.mrf.mxu0  ;;  %v7305_v27 = vpop.f32.mrf.mxu1 }
 0x2d6   : > { %v7307_v2 = vpop.f32.mrf.mxu0  ;;  %v7309_v4 = vpop.f32.mrf.mxu1 }
 0x2d8   : > { %v7311_v5 = vpop.f32.mrf.mxu0  ;;  %v7313_v6 = vpop.f32.mrf.mxu1 }
 0x2da   : > { %v7315_v7 = vpop.f32.mrf.mxu0  ;;  %v7317_v10 = vpop.f32.mrf.mxu1  ;;  %2085 = vmatmul.mubr.bf16.gmra.mxu0 %v7199_v9  ;;  %2278 = vmatmul.mubr.bf16.gmra.mxu1 %v7199_v9 }
 0x2db   : > { %2094 = vmatprep.mubr.bf16.mxu0 %v6572_v44  ;;  %2287 = vmatprep.mubr.bf16.mxu1 %v6572_v44 }
 0x2dc   : > { %v7323_v41 = vpop.f32.mrf.mxu0  ;;  %v7325_v53 = vpop.f32.mrf.mxu1 }
 0x2de   : > { %v7327_v51 = vpop.f32.mrf.mxu0  ;;  %v7329_v11 = vpop.f32.mrf.mxu1 }
 0x2e0   : > { %v7331_v12 = vpop.f32.mrf.mxu0  ;;  %v7333_v14 = vpop.f32.mrf.mxu1 }
 0x2e2   : > { %v7335_v16 = vpop.f32.mrf.mxu0  ;;  %v7337_v19 = vpop.f32.mrf.mxu1  ;;  %2095 = vmatmul.mubr.bf16.gmra.mxu0 %v7205_v13  ;;  %2288 = vmatmul.mubr.bf16.gmra.mxu1 %v7205_v13 }
 0x2e3   : > { %2104 = vmatprep.mubr.bf16.mxu0 %v6572_v44  ;;  %2297 = vmatprep.mubr.bf16.mxu1 %v6572_v44 }
 0x2e4   : > { %v7343_v9 = vpop.f32.mrf.mxu0  ;;  %v7345_v20 = vpop.f32.mrf.mxu1 }
 0x2e6   : > { %v7347_v21 = vpop.f32.mrf.mxu0  ;;  %v7349_v31 = vpop.f32.mrf.mxu1 }
 0x2e8   : > { %v7351_v23 = vpop.f32.mrf.mxu0  ;;  %v7353_v8 = vpop.f32.mrf.mxu1 }
 0x2ea   : > { %v7355_v24 = vpop.f32.mrf.mxu0  ;;  %v7357_v28 = vpop.f32.mrf.mxu1  ;;  %2105 = vmatmul.mubr.bf16.gmra.mxu0 %v7215_v25  ;;  %2298 = vmatmul.mubr.bf16.gmra.mxu1 %v7215_v25 }
 0x2eb   : > { %2114 = vmatprep.mubr.bf16.mxu0 %v6572_v44  ;;  %2307 = vmatprep.mubr.bf16.mxu1 %v6572_v44 }
 0x2ec   : > { %v7363_v13 = vpop.f32.mrf.mxu0  ;;  %v7365_v32 = vpop.f32.mrf.mxu1 }
 0x2ee   : > { %v7367_v33 = vpop.f32.mrf.mxu0  ;;  %v7369_v29 = vpop.f32.mrf.mxu1 }
 0x2f0   : > { %v7371_v35 = vpop.f32.mrf.mxu0  ;;  %v7373_v18 = vpop.f32.mrf.mxu1 }
 0x2f2   : > { %v7377_v25 = vpop.f32.mrf.mxu0  ;;  %v7379_v26 = vpop.f32.mrf.mxu1  ;;  %2115 = vmatmul.mubr.bf16.gmra.mxu0 %v7221_v30  ;;  %2308 = vmatmul.mubr.bf16.gmra.mxu1 %v7221_v30  ;;  %v7400_v30 = vrot.slane %v1204_v43, %v8903_v37 }
 0x2f3   : > { %8927 = vst [vmem:[#allocation23_spill] sm:$0xff] %v7377_v25  ;;  %8928 = vst [vmem:[#allocation24_spill] sm:$0xff] %v7379_v26  ;;  %2124 = vmatprep.mubr.bf16.mxu0 %v6572_v44  ;;  %2317 = vmatprep.mubr.bf16.mxu1 %v6572_v44 }
 0x2f4   : > { %v7387_v40 = vpop.f32.mrf.mxu0  ;;  %v7389_v34 = vpop.f32.mrf.mxu1  ;;  %v1607_v52 = vadd.f32 %v7291_v56, %v7400_v30  ;;  %v1603_v17 = vadd.f32 %v7283_v48, %v7400_v30  ;;  %v1796_v56 = vadd.f32 %v7285_v54, %v7402_v47 }
 0x2f6   : > { %v7394_v59 = vpop.f32.mrf.mxu0  ;;  %v7396_v46 = vpop.f32.mrf.mxu1  ;;  %v2347_v37 = vmax.f32 %v1607_v52, 0.0  ;;  %v2339_v54 = vmax.f32 %v1603_v17, 0.0  ;;  %v2341_v25 = vmax.f32 %v1796_v56, 0.0 }
 0x2f8   : > { %v7404_v49 = vpop.f32.mrf.mxu0  ;;  %v7406_v50 = vpop.f32.mrf.mxu1 }
 0x2fa   : > { %v7414_v60 = vpop.f32.mrf.mxu0  ;;  %v7416_v61 = vpop.f32.mrf.mxu1  ;;  %2125 = vmatmul.mubr.bf16.gmra.mxu0 %v7231_v39  ;;  %2318 = vmatmul.mubr.bf16.gmra.mxu1 %v7231_v39  ;;  %v7434_v39 = vrot.slane %v1204_v43, %v1216_v58  ;;  %v2595_v58 = vpack.c.bf16 %v2347_v37, %v2339_v54 }
 0x2fb   : > { %8929 = vst [vmem:[#allocation25_spill] sm:$0xff] %v7414_v60  ;;  %8930 = vst [vmem:[#allocation26_spill] sm:$0xff] %v7416_v61  ;;  %2134 = vmatprep.mubr.bf16.mxu0 %v6572_v44  ;;  %2327 = vmatprep.mubr.bf16.mxu1 %v6572_v44  ;;  %v8932_v61 = vsub.s32 0, %v7375_v36 }
 0x2fc   : > { %v7426_v63 = vpop.f32.mrf.mxu0  ;;  %v7428_v38 = vpop.f32.mrf.mxu1  ;;  %v1794_v17 = vadd.f32 %v7277_v3, %v7434_v39  ;;  %v1806_v3 = vadd.f32 %v7305_v27, %v7402_v47 }
 0x2fd   : > { %8931 = vst [vmem:[#allocation27_spill] sm:$0xff] %v7428_v38  ;;  %v7432_v60 = vrot.slane %v1204_v43, %v8932_v61  ;;  %v1798_v38 = vadd.f32 %v7289_v22, %v7434_v39  ;;  %v1617_v43 = vadd.f32 %v7311_v5, %v7400_v30  ;;  %v2597_v61 = vpack.c.bf16 %v2349_v57, %v2341_v25 }
 0x2fe   : > { %v7436_v48 = vpop.f32.mrf.mxu0  ;;  %v7438_v26 = vpop.f32.mrf.mxu1  ;;  %v1613_v5 = vadd.f32 %v7303_v62, %v7400_v30  ;;  %v2357_v27 = vmax.f32 %v1806_v3, 0.0 }
 0x2ff   : > { %8933 = vst [vmem:[#allocation28_spill] sm:$0xff] %v7438_v26  ;;  %v1605_v44 = vadd.f32 %v7287_v55, %v7432_v60  ;;  %v1601_v36 = vadd.f32 %v7275_v15, %v7432_v60  ;;  %v1810_v55 = vadd.f32 %v7313_v6, %v7402_v47  ;;  %v2348_v25 = vmax.f32 %v1798_v38, 0.0  ;;  %v6110_v38 = vld [vmem:[#allocation8 + $0x270] ss:$8 sps:$4 sm:$0xff]  }
 0x300   : > { %v7444_v52 = vpop.f32.mrf.mxu0  ;;  %v7446_v42 = vpop.f32.mrf.mxu1  ;;  %v2363_v57 = vmax.f32 %v1617_v43, 0.0  ;;  %v2355_v62 = vmax.f32 %v1613_v5, 0.0  ;;  %v6113_v43 = vld [vmem:[#allocation8 + $0x370] ss:$8 sps:$4 sm:$0xff]  }
 0x301   : > { %v2346_v15 = vmax.f32 %v1605_v44, 0.0  ;;  %v2338_v54 = vmax.f32 %v1601_v36, 0.0  ;;  %v1615_v44 = vadd.f32 %v7307_v2, %v7432_v60  ;;  %v1820_v2 = vadd.f32 %v7333_v14, %v7402_v47 }
 0x302   : > { %v7456_v56 = vpop.f32.mrf.mxu0  ;;  %v7458_v22 = vpop.f32.mrf.mxu1  ;;  %2135 = vmatmul.mubr.bf16.gmra.mxu0 %v7237_v45  ;;  %2328 = vmatmul.mubr.bf16.gmra.mxu1 %v7237_v45  ;;  %v2603_v5 = vpack.c.bf16 %v2363_v57, %v2355_v62  ;;  %v1816_v14 = vadd.f32 %v7325_v53, %v7402_v47  ;;  %v6116_v57 = vld [vmem:[#allocation8 + $0x260] ss:$8 sps:$4 sm:$0xff]   ;;  %v1625_v53 = vadd.f32 %v7327_v51, %v7432_v60 }
 0x303   : > { %8934 = vst [vmem:[#allocation29_spill] sm:$0xff] %v7456_v56  ;;  %8935 = vst [vmem:[#allocation30_spill] sm:$0xff] %v7458_v22  ;;  %3534 = vmatprep.mubr.bf16.mxu0 %v2595_v58  ;;  %3727 = vmatprep.mubr.bf16.mxu1 %v2597_v61  ;;  %v2340_v22 = vmax.f32 %v1794_v17, 0.0  ;;  %v2365_v56 = vmax.f32 %v1810_v55, 0.0  ;;  %v2594_v58 = vpack.c.bf16 %v2346_v15, %v2338_v54  ;;  %v6121_v15 = vld [vmem:[#allocation8 + $0x364] ss:$8 sps:$4 sm:$0xff]  }
 0x304   : > { %v7466_v37 = vpop.f32.mrf.mxu0  ;;  %v7468_v6 = vpop.f32.mrf.mxu1  ;;  %v1611_v17 = vadd.f32 %v7295_v0, %v7432_v60  ;;  %v1627_v55 = vadd.f32 %v7331_v12, %v7400_v30  ;;  %v2362_v0 = vmax.f32 %v1615_v44, 0.0  ;;  %v1623_v12 = vadd.f32 %v7323_v41, %v7400_v30  ;;  %v6127_v41 = vld [vmem:[#allocation8 + $0x354] ss:$8 sps:$4 sm:$0xff]  }
 0x305   : > { %8936 = vst [vmem:[#allocation31_spill] sm:$0xff] %v7466_v37  ;;  %8937 = vst [vmem:[#allocation32_spill] sm:$0xff] %v7468_v6  ;;  %v2596_v61 = vpack.c.bf16 %v2348_v25, %v2340_v22  ;;  %v1808_v37 = vadd.f32 %v7309_v4, %v7434_v39  ;;  %v6118_v22 = vld [vmem:[#allocation8 + $0x264] ss:$8 sps:$4 sm:$0xff]   ;;  %v1804_v4 = vadd.f32 %v7297_v1, %v7434_v39 }
 0x306   : > { %v7470_v26 = vpop.f32.mrf.mxu0  ;;  %v7472_v45 = vpop.f32.mrf.mxu1  ;;  %v2605_v54 = vpack.c.bf16 %v2365_v56, %v2357_v27  ;;  %v2354_v56 = vmax.f32 %v1611_v17, 0.0  ;;  %v2379_v44 = vmax.f32 %v1627_v55, 0.0  ;;  %v2381_v27 = vmax.f32 %v1820_v2, 0.0 }
 0x307   : > { %v2364_v62 = vmax.f32 %v1808_v37, 0.0  ;;  %v1818_v37 = vadd.f32 %v7329_v11, %v7434_v39  ;;  %v1621_v55 = vadd.f32 %v7315_v7, %v7432_v60  ;;  %v1814_v2 = vadd.f32 %v7317_v10, %v7434_v39  ;;  %v6122_v11 = vld [vmem:[#allocation8 + $0x250] ss:$8 sps:$4 sm:$0xff]   ;;  %v6130_v7 = vld [vmem:[#allocation8 + $0x244] ss:$8 sps:$4 sm:$0xff]  }
 0x308   : > { %v7478_v6 = vpop.f32.mrf.mxu0  ;;  %v7480_v36 = vpop.f32.mrf.mxu1  ;;  %v2378_v10 = vmax.f32 %v1625_v53, 0.0 }
 0x30a   : > { %v7490_v25 = vpop.f32.mrf.mxu0  ;;  %v7492_v3 = vpop.f32.mrf.mxu1  ;;  %3535 = vmatmul.mubr.bf16.vlgmr.msra.gmra.mxu0 %v2594_v58  ;;  %3728 = vmatmul.mubr.bf16.vlgmr.msra.gmra.mxu1 %v2596_v61  ;;  %v6119_v58 = vld [vmem:[#allocation8 + $0x360] ss:$8 sps:$4 sm:$0xff]   ;;  %v6124_v61 = vld [vmem:[#allocation8 + $0x254] ss:$8 sps:$4 sm:$0xff]  }
 0x30b   : > { %8938 = vst [vmem:[#allocation33_spill] sm:$0xff] %v7490_v25  ;;  %8939 = vst [vmem:[#allocation34_spill] sm:$0xff] %v7492_v3  ;;  %3889 = vmatpush1.bf16.msra.mxu0 %v6110_v38  ;;  %3544 = vmatprep.mubr.bf16.mxu0 %v2603_v5  ;;  %v2356_v3 = vmax.f32 %v1804_v4, 0.0  ;;  %v1637_v4 = vadd.f32 %v7351_v23, %v7400_v30  ;;  %v1826_v23 = vadd.f32 %v7345_v20, %v7402_v47 }
 0x30c   : > { %3737 = vmatprep.mubr.bf16.mxu1 %v2605_v54  ;;  %v7498_v1 = vpop.f32.mrf.mxu0  ;;  %v7500_v25 = vpop.f32.mrf.mxu1  ;;  %4082 = vmatpush1.bf16.msra.mxu1 %v6113_v43  ;;  %v2602_v43 = vpack.c.bf16 %v2362_v0, %v2354_v56  ;;  %v2371_v54 = vmax.f32 %v1623_v12, 0.0 }
 0x30d   : > { %8940 = vst [vmem:[#allocation35_spill] sm:$0xff] %v7500_v25  ;;  %3890 = vmatprep.subr.bf16.mxu0 %v6118_v22  ;;  %4083 = vmatprep.subr.bf16.mxu1 %v6121_v15  ;;  %v2373_v25 = vmax.f32 %v1816_v14, 0.0  ;;  %v2604_v17 = vpack.c.bf16 %v2364_v62, %v2356_v3  ;;  %v6125_v15 = vld [vmem:[#allocation8 + $0x350] ss:$8 sps:$4 sm:$0xff]   ;;  %v1830_v3 = vadd.f32 %v7353_v8, %v7402_v47  ;;  %v6133_v14 = vld [vmem:[#allocation8 + $0x344] ss:$8 sps:$4 sm:$0xff]  }
 0x30e   : > { %v7506_v38 = vpop.f32.mrf.mxu0  ;;  %v7508_v5 = vpop.f32.mrf.mxu1  ;;  %v2611_v0 = vpack.c.bf16 %v2379_v44, %v2371_v54  ;;  %v2370_v8 = vmax.f32 %v1621_v55, 0.0  ;;  %v2395_v53 = vmax.f32 %v1637_v4, 0.0  ;;  %v1631_v4 = vadd.f32 %v7335_v16, %v7432_v60  ;;  %v6142_v16 = vld [vmem:[#allocation8 + $0x224] ss:$8 sps:$4 sm:$0xff]  }
 0x30f   : > { %3891 = vmatpush1.bf16.msra.mxu0 %v6116_v57  ;;  %v2613_v12 = vpack.c.bf16 %v2381_v27, %v2373_v25  ;;  %v2380_v57 = vmax.f32 %v1818_v37, 0.0  ;;  %v2372_v25 = vmax.f32 %v1814_v2, 0.0  ;;  %v6128_v27 = vld [vmem:[#allocation8 + $0x240] ss:$8 sps:$4 sm:$0xff]   ;;  %v2397_v37 = vmax.f32 %v1830_v3, 0.0 }
 0x310   : > { %v7514_v22 = vpop.f32.mrf.mxu0  ;;  %v7516_v51 = vpop.f32.mrf.mxu1  ;;  %4084 = vmatpush1.bf16.msra.mxu1 %v6119_v58  ;;  %3892 = vmatprep.subr.bf16.mxu0 %v6124_v61  ;;  %v1633_v58 = vadd.f32 %v7343_v9, %v7400_v30  ;;  %v6136_v9 = vld [vmem:[#allocation8 + $0x234] ss:$8 sps:$4 sm:$0xff]   ;;  %v2610_v54 = vpack.c.bf16 %v2378_v10, %v2370_v8  ;;  %v1824_v3 = vadd.f32 %v7337_v19, %v7434_v39  ;;  %v6134_v10 = vld [vmem:[#allocation8 + $0x230] ss:$8 sps:$4 sm:$0xff]   ;;  %v6145_v19 = vld [vmem:[#allocation8 + $0x324] ss:$8 sps:$4 sm:$0xff]  }
 0x311   : > { %4085 = vmatprep.subr.bf16.mxu1 %v6127_v41  ;;  %v6131_v41 = vld [vmem:[#allocation8 + $0x340] ss:$8 sps:$4 sm:$0xff]   ;;  %v2612_v20 = vpack.c.bf16 %v2380_v57, %v2372_v25 }
 0x312   : > { %v7522_v62 = vpop.f32.mrf.mxu0  ;;  %v7524_v56 = vpop.f32.mrf.mxu1  ;;  %3545 = vmatmul.mubr.bf16.gmra.mxu0 %v2602_v43  ;;  %3738 = vmatmul.mubr.bf16.gmra.mxu1 %v2604_v17  ;;  %v6139_v43 = vld [vmem:[#allocation8 + $0x334] ss:$8 sps:$4 sm:$0xff]   ;;  %v2387_v2 = vmax.f32 %v1633_v58, 0.0 }
 0x313   : > { %3554 = vmatprep.mubr.bf16.mxu0 %v2611_v0  ;;  %3747 = vmatprep.mubr.bf16.mxu1 %v2613_v12  ;;  %v2389_v0 = vmax.f32 %v1826_v23, 0.0  ;;  %v1647_v12 = vadd.f32 %v7371_v35, %v7400_v30  ;;  %v1643_v35 = vadd.f32 %v7363_v13, %v7400_v30  ;;  %v6143_v13 = vld [vmem:[#allocation8 + $0x320] ss:$8 sps:$4 sm:$0xff]  }
 0x314   : > { %v7530_v61 = vpop.f32.mrf.mxu0  ;;  %v7532_v44 = vpop.f32.mrf.mxu1  ;;  %3893 = vmatpush1.bf16.msra.mxu0 %v6122_v11  ;;  %4086 = vmatpush1.bf16.msra.mxu1 %v6125_v15  ;;  %v1635_v11 = vadd.f32 %v7347_v21, %v7432_v60  ;;  %v1828_v15 = vadd.f32 %v7349_v31, %v7434_v39  ;;  %v6137_v21 = vld [vmem:[#allocation8 + $0x330] ss:$8 sps:$4 sm:$0xff]   ;;  %v1840_v31 = vadd.f32 %v7373_v18, %v7402_v47 }
 0x315   : > { %3894 = vmatprep.subr.bf16.mxu0 %v6130_v7  ;;  %4087 = vmatprep.subr.bf16.mxu1 %v6133_v14  ;;  %v2619_v57 = vpack.c.bf16 %v2395_v53, %v2387_v2  ;;  %v2621_v58 = vpack.c.bf16 %v2397_v37, %v2389_v0  ;;  %v1836_v18 = vadd.f32 %v7365_v32, %v7402_v47  ;;  %v2411_v53 = vmax.f32 %v1647_v12, 0.0  ;;  %v6151_v0 = vld [vmem:[#allocation8 + $0x314] ss:$8 sps:$4 sm:$0xff]  }
 0x316   : > { %v7534_v17 = vpop.f32.mrf.mxu0  ;;  %v7536_v55 = vpop.f32.mrf.mxu1  ;;  %v2394_v25 = vmax.f32 %v1635_v11, 0.0  ;;  %v2386_v2 = vmax.f32 %v1631_v4, 0.0  ;;  %v2403_v11 = vmax.f32 %v1643_v35, 0.0  ;;  %v1645_v32 = vadd.f32 %v7367_v33, %v7432_v60 }
 0x317   : > { %v1641_v4 = vadd.f32 %v7355_v24, %v7432_v60  ;;  %v1657_v35 = vadd.f32 %v7404_v49, %v7400_v30  ;;  %v6154_v24 = vld [vmem:[#allocation8 + $0x204] ss:$8 sps:$4 sm:$0xff]   ;;  %v1846_v49 = vadd.f32 %v7389_v34, %v7402_v47 }
 0x318   : > { %v7548_v7 = vpop.f32.mrf.mxu0  ;;  %v7550_v14 = vpop.f32.mrf.mxu1  ;;  %3895 = vmatpush1.bf16.msra.mxu0 %v6128_v27  ;;  %4088 = vmatpush1.bf16.msra.mxu1 %v6131_v41  ;;  %v2396_v27 = vmax.f32 %v1828_v15, 0.0  ;;  %v6140_v41 = vld [vmem:[#allocation8 + $0x220] ss:$8 sps:$4 sm:$0xff]   ;;  %v1838_v15 = vadd.f32 %v7369_v29, %v7434_v39  ;;  %v2627_v33 = vpack.c.bf16 %v2411_v53, %v2403_v11  ;;  %v6146_v29 = vld [vmem:[#allocation8 + $0x210] ss:$8 sps:$4 sm:$0xff]  }
 0x319   : > { %3896 = vmatprep.subr.bf16.mxu0 %v6136_v9  ;;  %4089 = vmatprep.subr.bf16.mxu1 %v6139_v43  ;;  %v6148_v43 = vld [vmem:[#allocation8 + $0x214] ss:$8 sps:$4 sm:$0xff]   ;;  %v6155_v11 = vld [vmem:[#allocation8 + $0x300] ss:$8 sps:$4 sm:$0xff]  }
 0x31a   : > { %v7556_v23 = vpop.f32.mrf.mxu0  ;;  %v7558_v8 = vpop.f32.mrf.mxu1  ;;  %3555 = vmatmul.mubr.bf16.gmra.mxu0 %v2610_v54  ;;  %3748 = vmatmul.mubr.bf16.gmra.mxu1 %v2612_v20  ;;  %v2388_v54 = vmax.f32 %v1824_v3, 0.0  ;;  %v2413_v20 = vmax.f32 %v1840_v31, 0.0  ;;  %v1834_v3 = vadd.f32 %v7357_v28, %v7434_v39  ;;  %v6157_v28 = vld [vmem:[#allocation8 + $0x304] ss:$8 sps:$4 sm:$0xff]  }
 0x31b   : > { %3564 = vmatprep.mubr.bf16.mxu0 %v2619_v57  ;;  %3757 = vmatprep.mubr.bf16.mxu1 %v2621_v58  ;;  %v2405_v58 = vmax.f32 %v1836_v18, 0.0  ;;  %v2410_v18 = vmax.f32 %v1645_v32, 0.0  ;;  %v2427_v32 = vmax.f32 %v1657_v35, 0.0  ;;  %v8943_v35 = vld [vmem:[#allocation23_spill] sm:$0xff] }
 0x31c   : > { %v7562_v37 = vpop.f32.mrf.mxu0  ;;  %v7564_v9 = vpop.f32.mrf.mxu1  ;;  %3897 = vmatpush1.bf16.msra.mxu0 %v6134_v10  ;;  %4090 = vmatpush1.bf16.msra.mxu1 %v6137_v21  ;;  %v2618_v10 = vpack.c.bf16 %v2394_v25, %v2386_v2  ;;  %v2620_v21 = vpack.c.bf16 %v2396_v27, %v2388_v54  ;;  %v1850_v25 = vadd.f32 %v7406_v50, %v7402_v47  ;;  %v2412_v2 = vmax.f32 %v1838_v15, 0.0 }
 0x31d   : > { %3898 = vmatprep.subr.bf16.mxu0 %v6142_v16  ;;  %4091 = vmatprep.subr.bf16.mxu1 %v6145_v19  ;;  %v6149_v19 = vld [vmem:[#allocation8 + $0x310] ss:$8 sps:$4 sm:$0xff]   ;;  %v2629_v27 = vpack.c.bf16 %v2413_v20, %v2405_v58  ;;  %v2402_v50 = vmax.f32 %v1641_v4, 0.0 }
 0x31e   : > { %v7570_v12 = vpop.f32.mrf.mxu0  ;;  %v7572_v57 = vpop.f32.mrf.mxu1  ;;  %v2429_v15 = vmax.f32 %v1850_v25, 0.0  ;;  %v1651_v25 = vadd.f32 %v8943_v35, %v7432_v60  ;;  %v6169_v35 = vld [vmem:[#allocation8 + $0x3e4] ss:$8 sps:$4 sm:$0xff]  }
 0x320   : > { %v7578_v31 = vpop.f32.mrf.mxu0  ;;  %v7580_v16 = vpop.f32.mrf.mxu1  ;;  %3899 = vmatpush1.bf16.msra.mxu0 %v6140_v41  ;;  %4092 = vmatpush1.bf16.msra.mxu1 %v6143_v13  ;;  %v1653_v41 = vadd.f32 %v7387_v40, %v7400_v30  ;;  %v2404_v13 = vmax.f32 %v1834_v3, 0.0  ;;  %v6160_v40 = vld [vmem:[#allocation8 + $0x2f4] ss:$8 sps:$4 sm:$0xff]  }
 0x321   : > { %3900 = vmatprep.subr.bf16.mxu0 %v6148_v43  ;;  %4093 = vmatprep.subr.bf16.mxu1 %v6151_v0  ;;  %v6152_v0 = vld [vmem:[#allocation8 + $0x200] ss:$8 sps:$4 sm:$0xff]  }
 0x322   : > { %v7586_v54 = vpop.f32.mrf.mxu0  ;;  %v7588_v53 = vpop.f32.mrf.mxu1  ;;  %3565 = vmatmul.mubr.bf16.gmra.mxu0 %v2618_v10  ;;  %3758 = vmatmul.mubr.bf16.gmra.mxu1 %v2620_v21  ;;  %v6163_v10 = vld [vmem:[#allocation8 + $0x3f4] ss:$8 sps:$4 sm:$0xff]   ;;  %v2626_v21 = vpack.c.bf16 %v2410_v18, %v2402_v50  ;;  %v2628_v34 = vpack.c.bf16 %v2412_v2, %v2404_v13  ;;  %v2419_v3 = vmax.f32 %v1653_v41, 0.0  ;;  %v6158_v41 = vld [vmem:[#allocation8 + $0x2f0] ss:$8 sps:$4 sm:$0xff]  }
 0x323   : > { %8941 = vst [vmem:[#allocation36_spill] sm:$0xff] %v7586_v54  ;;  %8942 = vst [vmem:[#allocation37_spill] sm:$0xff] %v7588_v53  ;;  %3574 = vmatprep.mubr.bf16.mxu0 %v2627_v33  ;;  %3767 = vmatprep.mubr.bf16.mxu1 %v2629_v27  ;;  %v2421_v33 = vmax.f32 %v1846_v49, 0.0  ;;  %v8944_v27 = vld [vmem:[#allocation24_spill] sm:$0xff]  ;;  %v6166_v13 = vld [vmem:[#allocation8 + $0x2e4] ss:$8 sps:$4 sm:$0xff]  }
 0x324   : > { %v7594_v43 = vpop.f32.mrf.mxu0  ;;  %v7596_v20 = vpop.f32.mrf.mxu1  ;;  %3901 = vmatpush1.bf16.msra.mxu0 %v6146_v29  ;;  %4094 = vmatpush1.bf16.msra.mxu1 %v6149_v19  ;;  %v1655_v29 = vadd.f32 %v7394_v59, %v7432_v60  ;;  %v1848_v19 = vadd.f32 %v7396_v46, %v7434_v39  ;;  %v6161_v59 = vld [vmem:[#allocation8 + $0x3f0] ss:$8 sps:$4 sm:$0xff]   ;;  %v1860_v46 = vadd.f32 %v7446_v42, %v7402_v47  ;;  %v8947_v54 = vld [vmem:[#allocation27_spill] sm:$0xff] }
 0x325   : > { %3902 = vmatprep.subr.bf16.mxu0 %v6154_v24  ;;  %4095 = vmatprep.subr.bf16.mxu1 %v6157_v28  ;;  %v1844_v24 = vadd.f32 %v8944_v27, %v7434_v39  ;;  %v1667_v28 = vadd.f32 %v7444_v52, %v7400_v30  ;;  %v2635_v49 = vpack.c.bf16 %v2427_v32, %v2419_v3  ;;  %v6164_v32 = vld [vmem:[#allocation8 + $0x2e0] ss:$8 sps:$4 sm:$0xff]   ;;  %v6172_v3 = vld [vmem:[#allocation8 + $0x2d4] ss:$8 sps:$4 sm:$0xff]  }
 0x326   : > { %v7598_v58 = vpop.f32.mrf.mxu0  ;;  %v7600_v4 = vpop.f32.mrf.mxu1  ;;  %v2637_v50 = vpack.c.bf16 %v2429_v15, %v2421_v33  ;;  %v1663_v52 = vadd.f32 %v7426_v63, %v7400_v30  ;;  %v1856_v42 = vadd.f32 %v8947_v54, %v7402_v47  ;;  %v6167_v63 = vld [vmem:[#allocation8 + $0x3e0] ss:$8 sps:$4 sm:$0xff]   ;;  %v2418_v33 = vmax.f32 %v1651_v25, 0.0  ;;  %v8951_v25 = vld [vmem:[#allocation25_spill] sm:$0xff] }
 0x327   : > { %v2443_v15 = vmax.f32 %v1667_v28, 0.0  ;;  %v1665_v54 = vadd.f32 %v7436_v48, %v7432_v60  ;;  %v8948_v28 = vld [vmem:[#allocation28_spill] sm:$0xff] }
 0x328   : > { %v7612_v18 = vpop.f32.mrf.mxu0  ;;  %v7614_v2 = vpop.f32.mrf.mxu1  ;;  %3903 = vmatpush1.bf16.msra.mxu0 %v6152_v0  ;;  %4096 = vmatpush1.bf16.msra.mxu1 %v6155_v11  ;;  %v2426_v0 = vmax.f32 %v1655_v29, 0.0  ;;  %v2428_v11 = vmax.f32 %v1848_v19, 0.0  ;;  %v6175_v29 = vld [vmem:[#allocation8 + $0x3d4] ss:$8 sps:$4 sm:$0xff]   ;;  %v2435_v19 = vmax.f32 %v1663_v52, 0.0 }
 0x329   : > { %3904 = vmatprep.subr.bf16.mxu0 %v6160_v40  ;;  %4097 = vmatprep.subr.bf16.mxu1 %v6163_v10 }
 0x32a   : > { %v7620_v27 = vpop.f32.mrf.mxu0  ;;  %v7622_v53 = vpop.f32.mrf.mxu1  ;;  %3575 = vmatmul.mubr.bf16.gmra.mxu0 %v2626_v21  ;;  %3768 = vmatmul.mubr.bf16.gmra.mxu1 %v2628_v34  ;;  %v2420_v21 = vmax.f32 %v1844_v24, 0.0  ;;  %v2445_v34 = vmax.f32 %v1860_v46, 0.0  ;;  %v1661_v24 = vadd.f32 %v8951_v25, %v7432_v60  ;;  %v8952_v46 = vld [vmem:[#allocation26_spill] sm:$0xff]  ;;  %v2643_v48 = vpack.c.bf16 %v2443_v15, %v2435_v19  ;;  %v8955_v15 = vld [vmem:[#allocation31_spill] sm:$0xff] }
 0x32b   : > { %8945 = vst [vmem:[#allocation23_spill] sm:$0xff] %v7620_v27  ;;  %8946 = vst [vmem:[#allocation24_spill] sm:$0xff] %v7622_v53  ;;  %3584 = vmatprep.mubr.bf16.mxu0 %v2635_v49  ;;  %3777 = vmatprep.mubr.bf16.mxu1 %v2637_v50  ;;  %v1858_v49 = vadd.f32 %v8948_v28, %v7434_v39  ;;  %v2437_v27 = vmax.f32 %v1856_v42, 0.0  ;;  %v6170_v28 = vld [vmem:[#allocation8 + $0x2d0] ss:$8 sps:$4 sm:$0xff]  }
 0x32c   : > { %v7626_v40 = vpop.f32.mrf.mxu0  ;;  %v7628_v10 = vpop.f32.mrf.mxu1  ;;  %3905 = vmatpush2.bf16.msra.mxu0 %v6158_v41  ;;  %4098 = vmatpush2.bf16.msra.mxu1 %v6161_v59  ;;  %v2634_v41 = vpack.c.bf16 %v2426_v0, %v2418_v33  ;;  %v2636_v59 = vpack.c.bf16 %v2428_v11, %v2420_v21  ;;  %v1677_v0 = vadd.f32 %v7478_v6, %v7400_v30  ;;  %v6178_v33 = vld [vmem:[#allocation8 + $0x2c4] ss:$8 sps:$4 sm:$0xff]   ;;  %v2442_v21 = vmax.f32 %v1665_v54, 0.0  ;;  %v8956_v6 = vld [vmem:[#allocation32_spill] sm:$0xff]  ;;  %v6179_v54 = vld [vmem:[#allocation8 + $0x3c0] ss:$8 sps:$4 sm:$0xff]  }
 0x32d   : > { %3906 = vmatprep.subr.bf16.mxu0 %v6166_v13  ;;  %4099 = vmatprep.subr.bf16.mxu1 %v6169_v35  ;;  %v1854_v13 = vadd.f32 %v8952_v46, %v7434_v39  ;;  %v1870_v11 = vadd.f32 %v7480_v36, %v7402_v47  ;;  %v2645_v42 = vpack.c.bf16 %v2445_v34, %v2437_v27  ;;  %v2444_v25 = vmax.f32 %v1858_v49, 0.0 }
 0x32e   : > { %v7634_v50 = vpop.f32.mrf.mxu0  ;;  %v7636_v53 = vpop.f32.mrf.mxu1  ;;  %v1866_v19 = vadd.f32 %v8956_v6, %v7402_v47  ;;  %v2434_v36 = vmax.f32 %v1661_v24, 0.0  ;;  %v2459_v49 = vmax.f32 %v1677_v0, 0.0  ;;  %v8959_v0 = vld [vmem:[#allocation29_spill] sm:$0xff] }
 0x32f   : > { %8949 = vst [vmem:[#allocation27_spill] sm:$0xff] %v7634_v50  ;;  %8950 = vst [vmem:[#allocation28_spill] sm:$0xff] %v7636_v53  ;;  %v6173_v50 = vld [vmem:[#allocation8 + $0x3d0] ss:$8 sps:$4 sm:$0xff]   ;;  %v2436_v27 = vmax.f32 %v1854_v13, 0.0 }
 0x330   : > { %v7642_v35 = vpop.f32.mrf.mxu0  ;;  %v7644_v52 = vpop.f32.mrf.mxu1  ;;  %3907 = vmatpush2.bf16.msra.mxu0 %v6164_v32  ;;  %4100 = vmatpush2.bf16.msra.mxu1 %v6167_v63  ;;  %v6181_v32 = vld [vmem:[#allocation8 + $0x3c4] ss:$8 sps:$4 sm:$0xff]   ;;  %v1673_v63 = vadd.f32 %v8955_v15, %v7400_v30  ;;  %v6187_v15 = vld [vmem:[#allocation8 + $0x3b4] ss:$8 sps:$4 sm:$0xff]   ;;  %v2453_v13 = vmax.f32 %v1866_v19, 0.0 }
 0x331   : > { %3908 = vmatprep.subr.bf16.mxu0 %v6172_v3  ;;  %4101 = vmatprep.subr.bf16.mxu1 %v6175_v29  ;;  %v6176_v29 = vld [vmem:[#allocation8 + $0x2c0] ss:$8 sps:$4 sm:$0xff]  }
 0x332   : > { %v7650_v46 = vpop.f32.mrf.mxu0  ;;  %v7652_v53 = vpop.f32.mrf.mxu1  ;;  %3585 = vmatmul.mubr.bf16.gmra.mxu0 %v2634_v41  ;;  %3778 = vmatmul.mubr.bf16.gmra.mxu1 %v2636_v59  ;;  %v2461_v41 = vmax.f32 %v1870_v11, 0.0  ;;  %v6184_v59 = vld [vmem:[#allocation8 + $0x2b4] ss:$8 sps:$4 sm:$0xff]   ;;  %v2451_v24 = vmax.f32 %v1673_v63, 0.0  ;;  %v1671_v11 = vadd.f32 %v8959_v0, %v7432_v60  ;;  %v6182_v63 = vld [vmem:[#allocation8 + $0x2b0] ss:$8 sps:$4 sm:$0xff]   ;;  %v1683_v0 = vadd.f32 %v7498_v1, %v7400_v30 }
 0x333   : > { %8953 = vst [vmem:[#allocation25_spill] sm:$0xff] %v7650_v46  ;;  %8954 = vst [vmem:[#allocation26_spill] sm:$0xff] %v7652_v53  ;;  %3594 = vmatprep.mubr.bf16.mxu0 %v2643_v48  ;;  %3787 = vmatprep.mubr.bf16.mxu1 %v2645_v42  ;;  %v2642_v53 = vpack.c.bf16 %v2442_v21, %v2434_v36  ;;  %v2644_v46 = vpack.c.bf16 %v2444_v25, %v2436_v27  ;;  %v8960_v42 = vld [vmem:[#allocation30_spill] sm:$0xff] }
 0x334   : > { %v7658_v3 = vpop.f32.mrf.mxu0  ;;  %v7660_v34 = vpop.f32.mrf.mxu1  ;;  %3909 = vmatpush2.bf16.msra.mxu0 %v6170_v28  ;;  %4102 = vmatpush2.bf16.msra.mxu1 %v6173_v50  ;;  %v1675_v28 = vadd.f32 %v7470_v26, %v7432_v60  ;;  %v1868_v50 = vadd.f32 %v7472_v45, %v7434_v39  ;;  %v1687_v21 = vadd.f32 %v7514_v22, %v7400_v30  ;;  %v6185_v26 = vld [vmem:[#allocation8 + $0x3b0] ss:$8 sps:$4 sm:$0xff]   ;;  %v6190_v27 = vld [vmem:[#allocation8 + $0x2a4] ss:$8 sps:$4 sm:$0xff]   ;;  %v6191_v1 = vld [vmem:[#allocation8 + $0x3a0] ss:$8 sps:$4 sm:$0xff]  }
 0x335   : > { %3910 = vmatprep.subr.bf16.mxu0 %v6178_v33  ;;  %4103 = vmatprep.subr.bf16.mxu1 %v6181_v32  ;;  %v1864_v33 = vadd.f32 %v8960_v42, %v7434_v39  ;;  %v1880_v45 = vadd.f32 %v7516_v51, %v7402_v47  ;;  %v2651_v19 = vpack.c.bf16 %v2459_v49, %v2451_v24  ;;  %v6188_v49 = vld [vmem:[#allocation8 + $0x2a0] ss:$8 sps:$4 sm:$0xff]   ;;  %v6196_v24 = vld [vmem:[#allocation8 + $0x294] ss:$8 sps:$4 sm:$0xff]  }
 0x336   : > { %v7662_v6 = vpop.f32.mrf.mxu0  ;;  %v7664_v48 = vpop.f32.mrf.mxu1  ;;  %v2653_v36 = vpack.c.bf16 %v2461_v41, %v2453_v13  ;;  %v2475_v41 = vmax.f32 %v1687_v21, 0.0 }
 0x337   : > { %8957 = vst [vmem:[#allocation31_spill] sm:$0xff] %v7662_v6  ;;  %8958 = vst [vmem:[#allocation32_spill] sm:$0xff] %v7664_v48  ;;  %v2460_v48 = vmax.f32 %v1868_v50, 0.0  ;;  %v8963_v6 = vld [vmem:[#allocation35_spill] sm:$0xff]  ;;  %v2477_v13 = vmax.f32 %v1880_v45, 0.0  ;;  %v2467_v50 = vmax.f32 %v1683_v0, 0.0 }
 0x338   : > { %v7676_v25 = vpop.f32.mrf.mxu0  ;;  %v7678_v32 = vpop.f32.mrf.mxu1  ;;  %3911 = vmatpush2.bf16.msra.mxu0 %v6176_v29  ;;  %4104 = vmatpush2.bf16.msra.mxu1 %v6179_v54  ;;  %v6193_v29 = vld [vmem:[#allocation8 + $0x3a4] ss:$8 sps:$4 sm:$0xff]   ;;  %v2458_v54 = vmax.f32 %v1675_v28, 0.0  ;;  %v1876_v51 = vadd.f32 %v8963_v6, %v7402_v47  ;;  %v6199_v28 = vld [vmem:[#allocation8 + $0x394] ss:$8 sps:$4 sm:$0xff]  }
 0x339   : > { %3912 = vmatprep.subr.bf16.mxu0 %v6184_v59  ;;  %4105 = vmatprep.subr.bf16.mxu1 %v6187_v15  ;;  %v6194_v0 = vld [vmem:[#allocation8 + $0x290] ss:$8 sps:$4 sm:$0xff]  }
 0x33a   : > { %v7684_v22 = vpop.f32.mrf.mxu0  ;;  %v7686_v42 = vpop.f32.mrf.mxu1  ;;  %3595 = vmatmul.mubr.bf16.gmra.mxu0 %v2642_v53  ;;  %3788 = vmatmul.mubr.bf16.gmra.mxu1 %v2644_v46  ;;  %v2450_v53 = vmax.f32 %v1671_v11, 0.0  ;;  %v2452_v46 = vmax.f32 %v1864_v33, 0.0  ;;  %v1878_v11 = vadd.f32 %v7508_v5, %v7434_v39  ;;  %v8965_v5 = vld [vmem:[#allocation34_spill] sm:$0xff] }
 0x33b   : > { %8961 = vst [vmem:[#allocation29_spill] sm:$0xff] %v7684_v22  ;;  %8962 = vst [vmem:[#allocation30_spill] sm:$0xff] %v7686_v42  ;;  %3604 = vmatprep.mubr.bf16.mxu0 %v2651_v19  ;;  %3797 = vmatprep.mubr.bf16.mxu1 %v2653_v36  ;;  %v2469_v36 = vmax.f32 %v1876_v51, 0.0  ;;  %v6202_v51 = vld [vmem:[#allocation8 + $0x284] ss:$8 sps:$4 sm:$0xff]  }
 0x33c   : > { %v7690_v59 = vpop.f32.mrf.mxu0  ;;  %v7692_v15 = vpop.f32.mrf.mxu1  ;;  %3913 = vmatpush2.bf16.msra.mxu0 %v6182_v63  ;;  %4106 = vmatpush2.bf16.msra.mxu1 %v6185_v26  ;;  %v2650_v21 = vpack.c.bf16 %v2458_v54, %v2450_v53  ;;  %v2652_v19 = vpack.c.bf16 %v2460_v48, %v2452_v46  ;;  %v1685_v63 = vadd.f32 %v7506_v38, %v7432_v60  ;;  %v8964_v26 = vld [vmem:[#allocation33_spill] sm:$0xff] }
 0x33d   : > { %3914 = vmatprep.subr.bf16.mxu0 %v6190_v27  ;;  %4107 = vmatprep.subr.bf16.mxu1 %v6193_v29  ;;  %v1681_v22 = vadd.f32 %v8964_v26, %v7432_v60  ;;  %v2659_v27 = vpack.c.bf16 %v2475_v41, %v2467_v50  ;;  %v6197_v29 = vld [vmem:[#allocation8 + $0x390] ss:$8 sps:$4 sm:$0xff]   ;;  %v1697_v48 = vadd.f32 %v7548_v7, %v7400_v30  ;;  %v6200_v50 = vld [vmem:[#allocation8 + $0x280] ss:$8 sps:$4 sm:$0xff]  }
 0x33e   : > { %v7694_v42 = vpop.f32.mrf.mxu0  ;;  %v7696_v6 = vpop.f32.mrf.mxu1  ;;  %v1890_v38 = vadd.f32 %v7550_v14, %v7402_v47  ;;  %v2661_v54 = vpack.c.bf16 %v2477_v13, %v2469_v36  ;;  %v1874_v53 = vadd.f32 %v8965_v5, %v7434_v39  ;;  %v1693_v7 = vadd.f32 %v7530_v61, %v7400_v30 }
 0x33f   : > { %v1886_v14 = vadd.f32 %v7532_v44, %v7402_v47  ;;  %v2491_v36 = vmax.f32 %v1697_v48, 0.0 }
 0x340   : > { %v7704_v33 = vpop.f32.mrf.mxu0  ;;  %v7706_v45 = vpop.f32.mrf.mxu1  ;;  %3915 = vmatpush2.bf16.msra.mxu0 %v6188_v49  ;;  %4108 = vmatpush2.bf16.msra.mxu1 %v6191_v1  ;;  %v6205_v49 = vld [vmem:[#allocation8 + $0x384] ss:$8 sps:$4 sm:$0xff]   ;;  %v2474_v1 = vmax.f32 %v1685_v63, 0.0  ;;  %v2493_v63 = vmax.f32 %v1890_v38, 0.0  ;;  %v2468_v26 = vmax.f32 %v1874_v53, 0.0  ;;  %v1707_v38 = vadd.f32 %v7578_v31, %v7400_v30 }
 0x341   : > { %3916 = vmatprep.subr.bf16.mxu0 %v6196_v24  ;;  %4109 = vmatprep.subr.bf16.mxu1 %v6199_v28  ;;  %v2476_v24 = vmax.f32 %v1878_v11, 0.0  ;;  %v2483_v11 = vmax.f32 %v1693_v7, 0.0  ;;  %v1703_v31 = vadd.f32 %v7562_v37, %v7400_v30 }
 0x342   : > { %v7714_v46 = vpop.f32.mrf.mxu0  ;;  %v7716_v41 = vpop.f32.mrf.mxu1  ;;  %3605 = vmatmul.mubr.bf16.gmra.mxu0 %v2650_v21  ;;  %3798 = vmatmul.mubr.bf16.gmra.mxu1 %v2652_v19  ;;  %v6203_v21 = vld [vmem:[#allocation8 + $0x380] ss:$8 sps:$4 sm:$0xff]   ;;  %v2466_v19 = vmax.f32 %v1681_v22, 0.0 }
 0x343   : > { %3614 = vmatprep.mubr.bf16.mxu0 %v2659_v27  ;;  %3807 = vmatprep.mubr.bf16.mxu1 %v2661_v54  ;;  %v2485_v27 = vmax.f32 %v1886_v14, 0.0  ;;  %v2660_v54 = vpack.c.bf16 %v2476_v24, %v2468_v26  ;;  %v2667_v53 = vpack.c.bf16 %v2491_v36, %v2483_v11  ;;  %v2499_v37 = vmax.f32 %v1703_v31, 0.0 }
 0x344   : > { %v7722_v13 = vpop.f32.mrf.mxu0  ;;  %v7724_v28 = vpop.f32.mrf.mxu1  ;;  %3917 = vmatpush2.bf16.msra.mxu0 %v6194_v0  ;;  %4110 = vmatpush2.bf16.msra.mxu1 %v6197_v29  ;;  %v2658_v44 = vpack.c.bf16 %v2474_v1, %v2466_v19  ;;  %v1695_v0 = vadd.f32 %v7534_v17, %v7432_v60  ;;  %v1888_v29 = vadd.f32 %v7536_v55, %v7434_v39 }
 0x345   : > { %3918 = vmatprep.subr.bf16.mxu0 %v6202_v51  ;;  %4111 = vmatprep.subr.bf16.mxu1 %v6205_v49  ;;  %v1900_v51 = vadd.f32 %v7580_v16, %v7402_v47  ;;  %v2669_v49 = vpack.c.bf16 %v2493_v63, %v2485_v27  ;;  %v1691_v17 = vadd.f32 %v7522_v62, %v7432_v60 }
 0x346   : > { %v7726_v61 = vpop.f32.mrf.mxu0  ;;  %v7728_v5 = vpop.f32.mrf.mxu1  ;;  %v1884_v55 = vadd.f32 %v7524_v56, %v7434_v39  ;;  %v1896_v16 = vadd.f32 %v7564_v9, %v7402_v47  ;;  %v2490_v14 = vmax.f32 %v1695_v0, 0.0  ;;  %v2492_v24 = vmax.f32 %v1888_v29, 0.0 }
 0x347   : > { %v2507_v56 = vmax.f32 %v1707_v38, 0.0  ;;  %v2482_v19 = vmax.f32 %v1691_v17, 0.0  ;;  %v1705_v27 = vadd.f32 %v7570_v12, %v7432_v60  ;;  %v1717_v38 = vadd.f32 %v7612_v18, %v7400_v30 }
 0x348   : > { %v7734_v22 = vpop.f32.mrf.mxu0  ;;  %v7736_v48 = vpop.f32.mrf.mxu1  ;;  %3919 = vmatpush2.bf16.msra.mxu0 %v6200_v50  ;;  %4112 = vmatpush2.bf16.msra.mxu1 %v6203_v21  ;;  %v2509_v21 = vmax.f32 %v1900_v51, 0.0  ;;  %v2484_v36 = vmax.f32 %v1884_v55, 0.0  ;;  %v1910_v51 = vadd.f32 %v7614_v2, %v7402_v47  ;;  %v1701_v17 = vadd.f32 %v7556_v23, %v7432_v60 }
 0x349   : > { %v2666_v11 = vpack.c.bf16 %v2490_v14, %v2482_v19  ;;  %v1894_v12 = vadd.f32 %v7558_v8, %v7434_v39  ;;  %v1713_v18 = vadd.f32 %v7594_v43, %v7400_v30  ;;  %v1906_v2 = vadd.f32 %v7596_v20, %v7402_v47 }
 0x34a   : > { %v7746_v1 = vpop.f32.mrf.mxu0  ;;  %v7748_v7 = vpop.f32.mrf.mxu1  ;;  %3615 = vmatmul.mubr.bf16.gmra.mxu0 %v2658_v44  ;;  %3808 = vmatmul.mubr.bf16.gmra.mxu1 %v2660_v54  ;;  %v2501_v44 = vmax.f32 %v1896_v16, 0.0  ;;  %v2668_v9 = vpack.c.bf16 %v2492_v24, %v2484_v36  ;;  %v1898_v54 = vadd.f32 %v7572_v57, %v7434_v39  ;;  %v2506_v31 = vmax.f32 %v1705_v27, 0.0 }
 0x34b   : > { %3624 = vmatprep.mubr.bf16.mxu0 %v2667_v53  ;;  %3817 = vmatprep.mubr.bf16.mxu1 %v2669_v49  ;;  %v2675_v53 = vpack.c.bf16 %v2507_v56, %v2499_v37  ;;  %v2523_v8 = vmax.f32 %v1717_v38, 0.0  ;;  %v2525_v24 = vmax.f32 %v1910_v51, 0.0  ;;  %v2498_v56 = vmax.f32 %v1701_v17, 0.0  ;;  %v8966_v17 = vld [vmem:[#allocation36_spill] sm:$0xff] }
 0x34c   : > { %v7754_v62 = vpop.f32.mrf.mxu0  ;;  %v7756_v50 = vpop.f32.mrf.mxu1  ;;  %v2677_v49 = vpack.c.bf16 %v2509_v21, %v2501_v44  ;;  %v2508_v16 = vmax.f32 %v1898_v54, 0.0  ;;  %v2500_v21 = vmax.f32 %v1894_v12, 0.0  ;;  %v2515_v43 = vmax.f32 %v1713_v18, 0.0 }
 0x34d   : > { %v2517_v37 = vmax.f32 %v1906_v2, 0.0  ;;  %v2674_v44 = vpack.c.bf16 %v2506_v31, %v2498_v56  ;;  %v1727_v38 = vadd.f32 %v7642_v35, %v7400_v30  ;;  %v1920_v51 = vadd.f32 %v7644_v52, %v7402_v47  ;;  %v6206_v31 = vld [vmem:[%s8887_s9 + $0x78] sm:$0xff]  }
 0x34e   : > { %v7758_v63 = vpop.f32.mrf.mxu0  ;;  %v7760_v26 = vpop.f32.mrf.mxu1  ;;  %v2676_v20 = vpack.c.bf16 %v2508_v16, %v2500_v21  ;;  %v1711_v12 = vadd.f32 %v8966_v17, %v7432_v60  ;;  %v1723_v35 = vadd.f32 %v7626_v40, %v7400_v30  ;;  %v1916_v52 = vadd.f32 %v7628_v10, %v7402_v47  ;;  %5647 = vmatprep.subr.bf16.mxu0 %v6206_v31 }
 0x34f   : > { %v2539_v21 = vmax.f32 %v1727_v38, 0.0 }
 0x350   : > { %v7766_v0 = vpop.f32.mrf.mxu0  ;;  %v7768_v29 = vpop.f32.mrf.mxu1 }
 0x352   : > { %v7778_v55 = vpop.f32.mrf.mxu0  ;;  %v7780_v57 = vpop.f32.mrf.mxu1  ;;  %3625 = vmatmul.mubr.bf16.gmra.mxu0 %v2666_v11  ;;  %3818 = vmatmul.mubr.bf16.gmra.mxu1 %v2668_v9  ;;  %v1715_v11 = vadd.f32 %v7598_v58, %v7432_v60  ;;  %v1908_v9 = vadd.f32 %v7600_v4, %v7434_v39  ;;  %v8967_v58 = vld [vmem:[#allocation37_spill] sm:$0xff] }
 0x353   : > { %3634 = vmatprep.mubr.bf16.mxu0 %v2675_v53  ;;  %3827 = vmatprep.mubr.bf16.mxu1 %v2677_v49  ;;  %v2683_v53 = vpack.c.bf16 %v2523_v8, %v2515_v43  ;;  %v2685_v49 = vpack.c.bf16 %v2525_v24, %v2517_v37  ;;  %v1904_v18 = vadd.f32 %v8967_v58, %v7434_v39  ;;  %v2541_v43 = vmax.f32 %v1920_v51, 0.0  ;;  %v8971_v58 = vld [vmem:[#allocation28_spill] sm:$0xff] }
 0x354   : > { %v7786_v23 = vpop.f32.mrf.mxu0  ;;  %v7788_v14 = vpop.f32.mrf.mxu1  ;;  %v2522_v16 = vmax.f32 %v1715_v11, 0.0  ;;  %v2524_v8 = vmax.f32 %v1908_v9, 0.0  ;;  %v2514_v37 = vmax.f32 %v1711_v12, 0.0  ;;  %v8970_v11 = vld [vmem:[#allocation27_spill] sm:$0xff]  ;;  %v1737_v51 = vadd.f32 %v7676_v25, %v7400_v30 }
 0x355   : > { %v2516_v40 = vmax.f32 %v1904_v18, 0.0  ;;  %v1725_v9 = vadd.f32 %v8970_v11, %v7432_v60  ;;  %v1930_v12 = vadd.f32 %v7678_v32, %v7402_v47  ;;  %v1733_v25 = vadd.f32 %v7658_v3, %v7400_v30 }
 0x356   : > { %v7790_v19 = vpop.f32.mrf.mxu0  ;;  %v7792_v36 = vpop.f32.mrf.mxu1  ;;  %v1926_v32 = vadd.f32 %v7660_v34, %v7402_v47  ;;  %v2555_v11 = vmax.f32 %v1737_v51, 0.0 }
 0x357   : > { %v2684_v17 = vpack.c.bf16 %v2524_v8, %v2516_v40  ;;  %v2547_v3 = vmax.f32 %v1733_v25, 0.0 }
 0x358   : > { %v7798_v27 = vpop.f32.mrf.mxu0  ;;  %v7800_v54 = vpop.f32.mrf.mxu1 }
 0x35a   : > { %v7810_v2 = vpop.f32.mrf.mxu0  ;;  %v7812_v4 = vpop.f32.mrf.mxu1  ;;  %3635 = vmatmul.mubr.bf16.gmra.mxu0 %v2674_v44  ;;  %3828 = vmatmul.mubr.bf16.gmra.mxu1 %v2676_v20  ;;  %v2531_v20 = vmax.f32 %v1723_v35, 0.0 }
 0x35b   : > { %8968 = vst [vmem:[#allocation35_spill] sm:$0xff] %v7810_v2  ;;  %8969 = vst [vmem:[#allocation33_spill] sm:$0xff] %v7812_v4  ;;  %3644 = vmatprep.mubr.bf16.mxu0 %v2683_v53  ;;  %3837 = vmatprep.mubr.bf16.mxu1 %v2685_v49  ;;  %v2533_v53 = vmax.f32 %v1916_v52, 0.0  ;;  %v2682_v49 = vpack.c.bf16 %v2522_v16, %v2514_v37  ;;  %v1918_v4 = vadd.f32 %v8971_v58, %v7434_v39  ;;  %v8972_v52 = vld [vmem:[#allocation23_spill] sm:$0xff]  ;;  %v8973_v16 = vld [vmem:[#allocation24_spill] sm:$0xff] }
 0x35c   : > { %v7821_v24 = vpop.f32.mrf.mxu0  ;;  %v7823_v56 = vpop.f32.mrf.mxu1  ;;  %v2691_v18 = vpack.c.bf16 %v2539_v21, %v2531_v20  ;;  %v1721_v31 = vadd.f32 %v8972_v52, %v7432_v60  ;;  %v1914_v8 = vadd.f32 %v8973_v16, %v7434_v39  ;;  %v2538_v21 = vmax.f32 %v1725_v9, 0.0 }
 0x35d   : > { %v2693_v35 = vpack.c.bf16 %v2541_v43, %v2533_v53  ;;  %v2540_v43 = vmax.f32 %v1918_v4, 0.0  ;;  %v2557_v58 = vmax.f32 %v1930_v12, 0.0  ;;  %v8979_v4 = vld [vmem:[#allocation32_spill] sm:$0xff]  ;;  %v1747_v12 = vadd.f32 %v7704_v33, %v7400_v30 }
 0x35e   : > { %v7825_v44 = vpop.f32.mrf.mxu0  ;;  %v7827_v10 = vpop.f32.mrf.mxu1  ;;  %v2530_v52 = vmax.f32 %v1721_v31, 0.0  ;;  %v2532_v16 = vmax.f32 %v1914_v8, 0.0  ;;  %v1940_v31 = vadd.f32 %v7706_v45, %v7402_v47  ;;  %v2699_v8 = vpack.c.bf16 %v2555_v11, %v2547_v3 }
 0x35f   : > { %v1743_v33 = vadd.f32 %v7690_v59, %v7400_v30  ;;  %v1936_v45 = vadd.f32 %v7692_v15, %v7402_v47 }
 0x360   : > { %v7833_v2 = vpop.f32.mrf.mxu0  ;;  %v7835_v38 = vpop.f32.mrf.mxu1  ;;  %v2692_v34 = vpack.c.bf16 %v2540_v43, %v2532_v16  ;;  %v8981_v43 = vld [vmem:[#allocation26_spill] sm:$0xff] }
 0x361   : > { %v2563_v59 = vmax.f32 %v1743_v33, 0.0 }
 0x362   : > { %v7845_v37 = vpop.f32.mrf.mxu0  ;;  %v7847_v40 = vpop.f32.mrf.mxu1  ;;  %3645 = vmatmul.mubr.bf16.gmra.mxu0 %v2682_v49  ;;  %3838 = vmatmul.mubr.bf16.gmra.mxu1 %v2684_v17 }
 0x363   : > { %8974 = vst [vmem:[#allocation34_spill] sm:$0xff] %v7845_v37  ;;  %8975 = vst [vmem:[#allocation36_spill] sm:$0xff] %v7847_v40  ;;  %3654 = vmatprep.mubr.bf16.mxu0 %v2691_v18  ;;  %3847 = vmatprep.mubr.bf16.mxu1 %v2693_v35  ;;  %v2549_v40 = vmax.f32 %v1926_v32, 0.0  ;;  %v2690_v37 = vpack.c.bf16 %v2538_v21, %v2530_v52  ;;  %v8978_v18 = vld [vmem:[#allocation31_spill] sm:$0xff]  ;;  %v1928_v35 = vadd.f32 %v8979_v4, %v7434_v39  ;;  %v8980_v32 = vld [vmem:[#allocation25_spill] sm:$0xff] }
 0x364   : > { %v7853_v20 = vpop.f32.mrf.mxu0  ;;  %v7855_v53 = vpop.f32.mrf.mxu1  ;;  %v1735_v9 = vadd.f32 %v8978_v18, %v7432_v60  ;;  %v1731_v21 = vadd.f32 %v8980_v32, %v7432_v60  ;;  %v1924_v52 = vadd.f32 %v8981_v43, %v7434_v39  ;;  %v2571_v4 = vmax.f32 %v1747_v12, 0.0 }
 0x365   : > { %8976 = vst [vmem:[#allocation37_spill] sm:$0xff] %v7853_v20  ;;  %v2701_v25 = vpack.c.bf16 %v2557_v58, %v2549_v40  ;;  %v2556_v11 = vmax.f32 %v1928_v35, 0.0  ;;  %v2573_v32 = vmax.f32 %v1940_v31, 0.0  ;;  %v1938_v35 = vadd.f32 %v7696_v6, %v7434_v39 }
 0x366   : > { %v7857_v49 = vpop.f32.mrf.mxu0  ;;  %v7859_v17 = vpop.f32.mrf.mxu1  ;;  %v2554_v40 = vmax.f32 %v1735_v9, 0.0  ;;  %v2546_v43 = vmax.f32 %v1731_v21, 0.0  ;;  %v1745_v9 = vadd.f32 %v7694_v42, %v7432_v60  ;;  %v1757_v31 = vadd.f32 %v7734_v22, %v7400_v30  ;;  %v8985_v42 = vld [vmem:[#allocation30_spill] sm:$0xff] }
 0x367   : > { %8977 = vst [vmem:[#allocation27_spill] sm:$0xff] %v7859_v17  ;;  %v2707_v21 = vpack.c.bf16 %v2571_v4, %v2563_v59  ;;  %v1753_v22 = vadd.f32 %v7722_v13, %v7400_v30 }
 0x368   : > { %v7865_v20 = vpop.f32.mrf.mxu0  ;;  %v7867_v51 = vpop.f32.mrf.mxu1  ;;  %v2698_v17 = vpack.c.bf16 %v2554_v40, %v2546_v43  ;;  %v2572_v43 = vmax.f32 %v1938_v35, 0.0 }
 0x36a   : > { %v7877_v16 = vpop.f32.mrf.mxu0  ;;  %v7879_v18 = vpop.f32.mrf.mxu1  ;;  %3655 = vmatmul.mubr.bf16.gmra.mxu0 %v2690_v37  ;;  %3848 = vmatmul.mubr.bf16.gmra.mxu1 %v2692_v34 }
 0x36b   : > { %8982 = vst [vmem:[#allocation28_spill] sm:$0xff] %v7877_v16  ;;  %8983 = vst [vmem:[#allocation23_spill] sm:$0xff] %v7879_v18  ;;  %3664 = vmatprep.mubr.bf16.mxu0 %v2699_v8  ;;  %3857 = vmatprep.mubr.bf16.mxu1 %v2701_v25  ;;  %v2548_v18 = vmax.f32 %v1924_v52, 0.0  ;;  %v2565_v16 = vmax.f32 %v1936_v45, 0.0  ;;  %v1950_v25 = vadd.f32 %v7736_v48, %v7402_v47 }
 0x36c   : > { %v7885_v58 = vpop.f32.mrf.mxu0  ;;  %v7887_v3 = vpop.f32.mrf.mxu1  ;;  %v1934_v45 = vadd.f32 %v8985_v42, %v7434_v39  ;;  %v1946_v48 = vadd.f32 %v7724_v28, %v7402_v47  ;;  %v2579_v47 = vmax.f32 %v1753_v22, 0.0 }
 0x36d   : > { %v2700_v15 = vpack.c.bf16 %v2556_v11, %v2548_v18  ;;  %v2709_v52 = vpack.c.bf16 %v2573_v32, %v2565_v16  ;;  %v8984_v18 = vld [vmem:[#allocation29_spill] sm:$0xff]  ;;  %v8988_v11 = vld [vmem:[#allocation22_spill] sm:$0xff]  ;;  %v2570_v32 = vmax.f32 %v1745_v9, 0.0 }
 0x36e   : > { %v7889_v37 = vpop.f32.mrf.mxu0  ;;  %v7891_v34 = vpop.f32.mrf.mxu1  ;;  %v1741_v33 = vadd.f32 %v8984_v18, %v7432_v60  ;;  %v1228_v16 = vsub.s32 5, %v8988_v11  ;;  %v1236_v4 = vsub.s32 7, %v8988_v11  ;;  %v2581_v28 = vmax.f32 %v1946_v48, 0.0 }
 0x370   : > { %v7897_v8 = vpop.f32.mrf.mxu0  ;;  %v7899_v12 = vpop.f32.mrf.mxu1  ;;  %v2562_v42 = vmax.f32 %v1741_v33, 0.0 }
 0x372   : > { %v7909_v40 = vpop.f32.mrf.mxu0  ;;  %v7911_v6 = vpop.f32.mrf.mxu1  ;;  %3665 = vmatmul.mubr.bf16.gmra.mxu0 %v2698_v17  ;;  %3858 = vmatmul.mubr.bf16.gmra.mxu1 %v2700_v15  ;;  %v2587_v17 = vmax.f32 %v1757_v31, 0.0  ;;  %v2589_v15 = vmax.f32 %v1950_v25, 0.0  ;;  %v1755_v31 = vadd.f32 %v7726_v61, %v7432_v60  ;;  %v1948_v25 = vadd.f32 %v7728_v5, %v7434_v39 }
 0x373   : > { %8986 = vst [vmem:[#allocation24_spill] sm:$0xff] %v7909_v40  ;;  %8987 = vst [vmem:[#allocation31_spill] sm:$0xff] %v7911_v6  ;;  %3674 = vmatprep.mubr.bf16.mxu0 %v2707_v21  ;;  %3867 = vmatprep.mubr.bf16.mxu1 %v2709_v52  ;;  %v2564_v6 = vmax.f32 %v1934_v45, 0.0  ;;  %v6358_v21 = vld [vmem:[%s8884_s6] sm:$0xff]  ;;  %v2706_v52 = vpack.c.bf16 %v2570_v32, %v2562_v42  ;;  %v1944_v61 = vadd.f32 %v7716_v41, %v7434_v39 }
 0x374   : > { %v7919_v59 = vpop.f32.mrf.mxu0  ;;  %v7921_v18 = vpop.f32.mrf.mxu1  ;;  %v7930_v9 = vrot.slane %v6358_v21, %v1228_v16  ;;  %v7932_v35 = vrot.slane %v6358_v21, %v1236_v4  ;;  %v2715_v16 = vpack.c.bf16 %v2587_v17, %v2579_v47  ;;  %v2717_v4 = vpack.c.bf16 %v2589_v15, %v2581_v28 }
 0x375   : > { %v2708_v40 = vpack.c.bf16 %v2572_v43, %v2564_v6  ;;  %v1751_v6 = vadd.f32 %v7714_v46, %v7432_v60  ;;  %v1224_v5 = vsub.s32 4, %v8988_v11  ;;  %v1232_v32 = vsub.s32 6, %v8988_v11 }
 0x376   : > { %v7923_v30 = vpop.f32.mrf.mxu0  ;;  %v7925_v13 = vpop.f32.mrf.mxu1  ;;  %v1993_v22 = vadd.f32 %v7766_v0, %v7930_v9  ;;  %v2186_v48 = vadd.f32 %v7768_v29, %v7932_v35  ;;  %v1989_v0 = vadd.f32 %v7754_v62, %v7930_v9  ;;  %v2182_v29 = vadd.f32 %v7756_v50, %v7932_v35 }
 0x377   : > { %v2586_v60 = vmax.f32 %v1755_v31, 0.0  ;;  %v2588_v39 = vmax.f32 %v1948_v25, 0.0  ;;  %v2578_v47 = vmax.f32 %v1751_v6, 0.0  ;;  %v2580_v28 = vmax.f32 %v1944_v61, 0.0 }
 0x378   : > { %v7938_v33 = vpop.f32.mrf.mxu0  ;;  %v7940_v45 = vpop.f32.mrf.mxu1  ;;  %v2351_v17 = vmax.f32 %v1993_v22, 0.0  ;;  %v2353_v15 = vmax.f32 %v2186_v48, 0.0  ;;  %v2343_v50 = vmax.f32 %v1989_v0, 0.0  ;;  %v2196_v61 = vadd.f32 %v7800_v54, %v7932_v35 }
 0x379   : > { %v2714_v31 = vpack.c.bf16 %v2586_v60, %v2578_v47  ;;  %v2716_v25 = vpack.c.bf16 %v2588_v39, %v2580_v28  ;;  %v2192_v54 = vadd.f32 %v7788_v14, %v7932_v35 }
 0x37a   : > { %v7952_v43 = vpop.f32.mrf.mxu0  ;;  %v7954_v42 = vpop.f32.mrf.mxu1  ;;  %3675 = vmatmul.mubr.bf16.gmra.mxu0 %v2706_v52  ;;  %3868 = vmatmul.mubr.bf16.gmra.mxu1 %v2708_v40  ;;  %v7964_v52 = vrot.slane %v6358_v21, %v1224_v5  ;;  %v7966_v40 = vrot.slane %v6358_v21, %v1232_v32  ;;  %v2003_v21 = vadd.f32 %v7798_v27, %v7930_v9 }
 0x37b   : > { %3684 = vmatprep.mubr.bf16.mxu0 %v2715_v16  ;;  %3877 = vmatprep.mubr.bf16.mxu1 %v2717_v4  ;;  %v2345_v16 = vmax.f32 %v2182_v29, 0.0  ;;  %v2599_v5 = vpack.c.bf16 %v2351_v17, %v2343_v50  ;;  %v1999_v27 = vadd.f32 %v7786_v23, %v7930_v9 }
 0x37c   : > { %v7960_v46 = vpop.f32.mrf.mxu0  ;;  %v7962_v41 = vpop.f32.mrf.mxu1  ;;  %v1991_v4 = vadd.f32 %v7758_v63, %v7964_v52  ;;  %v2184_v22 = vadd.f32 %v7760_v26, %v7966_v40  ;;  %v1987_v0 = vadd.f32 %v7746_v1, %v7964_v52  ;;  %v2180_v63 = vadd.f32 %v7748_v7, %v7966_v40 }
 0x37d   : > { %v2601_v32 = vpack.c.bf16 %v2353_v15, %v2345_v16  ;;  %v2367_v7 = vmax.f32 %v2003_v21, 0.0  ;;  %v2369_v15 = vmax.f32 %v2196_v61, 0.0  ;;  %v2359_v23 = vmax.f32 %v1999_v27, 0.0  ;;  %v6207_v61 = vld [vmem:[%s8887_s9 + $0x38] sm:$0xff]  }
 0x37e   : > { %v7968_v62 = vpop.f32.mrf.mxu0  ;;  %v7970_v11 = vpop.f32.mrf.mxu1  ;;  %v2350_v60 = vmax.f32 %v1991_v4, 0.0  ;;  %v2352_v39 = vmax.f32 %v2184_v22, 0.0  ;;  %v2342_v47 = vmax.f32 %v1987_v0, 0.0  ;;  %v2344_v28 = vmax.f32 %v2180_v63, 0.0 }
 0x37f   : > { %v2001_v4 = vadd.f32 %v7790_v19, %v7964_v52  ;;  %v2194_v22 = vadd.f32 %v7792_v36, %v7966_v40  ;;  %v2206_v0 = vadd.f32 %v7835_v38, %v7932_v35  ;;  %v2607_v63 = vpack.c.bf16 %v2367_v7, %v2359_v23  ;;  %v6208_v19 = vld [vmem:[%s8887_s9 + $0x70] sm:$0xff]  }
 0x380   : > { %v7976_v48 = vpop.f32.mrf.mxu0  ;;  %v7978_v6 = vpop.f32.mrf.mxu1  ;;  %v2600_v14 = vpack.c.bf16 %v2352_v39, %v2344_v28  ;;  %v1997_v36 = vadd.f32 %v7778_v55, %v7964_v52  ;;  %v2202_v38 = vadd.f32 %v7823_v56, %v7932_v35 }
 0x381   : > { %v2366_v7 = vmax.f32 %v2001_v4, 0.0  ;;  %v2385_v23 = vmax.f32 %v2206_v0, 0.0 }
 0x382   : > { %v7988_v29 = vpop.f32.mrf.mxu0  ;;  %v7990_v26 = vpop.f32.mrf.mxu1  ;;  %3685 = vmatmul.mubr.bf16.gmra.mxu0 %v2714_v31  ;;  %3878 = vmatmul.mubr.bf16.gmra.mxu1 %v2716_v25  ;;  %v2361_v31 = vmax.f32 %v2192_v54, 0.0  ;;  %v2598_v25 = vpack.c.bf16 %v2350_v60, %v2342_v47  ;;  %v2190_v54 = vadd.f32 %v7780_v57, %v7966_v40  ;;  %v6209_v57 = vld [vmem:[%s8887_s9 + $0x30] sm:$0xff]   ;;  %v2358_v56 = vmax.f32 %v1997_v36, 0.0  ;;  %v6211_v36 = vld [vmem:[%s8887_s9 + $0x28] sm:$0xff]  }
 0x383   : > { %3920 = vmatprep.mubr.bf16.mxu0 %v2599_v5  ;;  %4113 = vmatprep.mubr.bf16.mxu1 %v2601_v32  ;;  %v2013_v32 = vadd.f32 %v7833_v2, %v7930_v9  ;;  %v2009_v2 = vadd.f32 %v7821_v24, %v7930_v9  ;;  %v6210_v24 = vld [vmem:[%s8887_s9 + $0x68] sm:$0xff]  }
 0x384   : > { %v7996_v1 = vpop.f32.mrf.mxu0  ;;  %v7998_v17 = vpop.f32.mrf.mxu1  ;;  %v2609_v27 = vpack.c.bf16 %v2369_v15, %v2361_v31  ;;  %v2368_v15 = vmax.f32 %v2194_v22, 0.0  ;;  %v2360_v31 = vmax.f32 %v2190_v54, 0.0  ;;  %v2377_v22 = vmax.f32 %v2202_v38, 0.0 }
 0x385   : > { %v2383_v28 = vmax.f32 %v2013_v32, 0.0  ;;  %v2375_v4 = vmax.f32 %v2009_v2, 0.0  ;;  %v2204_v32 = vadd.f32 %v7827_v10, %v7966_v40  ;;  %v2023_v54 = vadd.f32 %v7865_v20, %v7930_v9  ;;  %v6212_v10 = vld [vmem:[%s8887_s9 + $0x60] sm:$0xff]   ;;  %v8994_v20 = vld [vmem:[#allocation37_spill] sm:$0xff] }
 0x386   : > { %v8000_v50 = vpop.f32.mrf.mxu0  ;;  %v8002_v16 = vpop.f32.mrf.mxu1  ;;  %v2216_v2 = vadd.f32 %v7867_v51, %v7932_v35  ;;  %v2019_v51 = vadd.f32 %v8994_v20, %v7930_v9 }
 0x387   : > { %v2615_v38 = vpack.c.bf16 %v2383_v28, %v2375_v4  ;;  %v2212_v28 = vadd.f32 %v7855_v53, %v7932_v35 }
 0x388   : > { %v8008_v5 = vpop.f32.mrf.mxu0  ;;  %v8010_v21 = vpop.f32.mrf.mxu1 }
 0x38a   : > { %v8026_v60 = vpop.f32.mrf.mxu0  ;;  %v8028_v39 = vpop.f32.mrf.mxu1  ;;  %3921 = vmatmul.mubr.bf16.vlgmr.msra.gmra.mxu0 %v2598_v25  ;;  %4114 = vmatmul.mubr.bf16.vlgmr.msra.gmra.mxu1 %v2600_v14 }
 0x38b   : > { %8989 = vst [vmem:[#allocation32_spill] sm:$0xff] %v8028_v39  ;;  %3930 = vmatprep.mubr.bf16.mxu0 %v2607_v63  ;;  %4123 = vmatprep.mubr.bf16.mxu1 %v2609_v27  ;;  %v2608_v63 = vpack.c.bf16 %v2368_v15, %v2360_v31  ;;  %v2011_v27 = vadd.f32 %v7825_v44, %v7964_v52 }
 0x38c   : > { %v8034_v55 = vpop.f32.mrf.mxu0  ;;  %v8036_v47 = vpop.f32.mrf.mxu1  ;;  %5648 = vmatpush3.bf16.msra.mxu0 %v6207_v61  ;;  %v2606_v61 = vpack.c.bf16 %v2366_v7, %v2358_v56  ;;  %v2617_v44 = vpack.c.bf16 %v2385_v23, %v2377_v22  ;;  %v8990_v7 = vld [vmem:[#allocation35_spill] sm:$0xff] }
 0x38d   : > { %5649 = vmatprep.subr.bf16.mxu0 %v6208_v19  ;;  %v2007_v15 = vadd.f32 %v8990_v7, %v7964_v52  ;;  %v2382_v23 = vmax.f32 %v2011_v27, 0.0  ;;  %v2401_v7 = vmax.f32 %v2216_v2, 0.0  ;;  %v2391_v27 = vmax.f32 %v2019_v51, 0.0  ;;  %v8998_v51 = vld [vmem:[#allocation34_spill] sm:$0xff] }
 0x38e   : > { %v8044_v25 = vpop.f32.mrf.mxu0  ;;  %v8046_v14 = vpop.f32.mrf.mxu1  ;;  %v2033_v2 = vadd.f32 %v7897_v8, %v7930_v9  ;;  %v2029_v8 = vadd.f32 %v7885_v58, %v7930_v9  ;;  %v6215_v58 = vld [vmem:[%s8887_s9 + $0x18] sm:$0xff]  }
 0x390   : > { %v8052_v0 = vpop.f32.mrf.mxu0  ;;  %v8054_v19 = vpop.f32.mrf.mxu1  ;;  %5650 = vmatpush3.bf16.msra.mxu0 %v6209_v57  ;;  %v8991_v57 = vld [vmem:[#allocation33_spill] sm:$0xff] }
 0x391   : > { %5651 = vmatprep.subr.bf16.mxu0 %v6210_v24  ;;  %v2200_v56 = vadd.f32 %v8991_v57, %v7966_v40  ;;  %v2384_v24 = vmax.f32 %v2204_v32, 0.0  ;;  %v2374_v57 = vmax.f32 %v2007_v15, 0.0  ;;  %v2393_v32 = vmax.f32 %v2212_v28, 0.0 }
 0x392   : > { %v8070_v31 = vpop.f32.mrf.mxu0  ;;  %v8072_v39 = vpop.f32.mrf.mxu1  ;;  %3931 = vmatmul.mubr.bf16.gmra.mxu0 %v2606_v61  ;;  %4124 = vmatmul.mubr.bf16.gmra.mxu1 %v2608_v63  ;;  %v6213_v61 = vld [vmem:[%s8887_s9 + $0x20] sm:$0xff]   ;;  %v2399_v63 = vmax.f32 %v2023_v54, 0.0  ;;  %v2017_v28 = vadd.f32 %v8998_v51, %v7964_v52 }
 0x393   : > { %8992 = vst [vmem:[#allocation25_spill] sm:$0xff] %v8070_v31  ;;  %8993 = vst [vmem:[#allocation26_spill] sm:$0xff] %v8072_v39  ;;  %3940 = vmatprep.mubr.bf16.mxu0 %v2615_v38  ;;  %4133 = vmatprep.mubr.bf16.mxu1 %v2617_v44  ;;  %v2376_v20 = vmax.f32 %v2200_v56, 0.0  ;;  %v2614_v38 = vpack.c.bf16 %v2382_v23, %v2374_v57  ;;  %v8997_v31 = vld [vmem:[#allocation27_spill] sm:$0xff]  ;;  %v2625_v56 = vpack.c.bf16 %v2401_v7, %v2393_v32 }
 0x394   : > { %v8078_v4 = vpop.f32.mrf.mxu0  ;;  %v8080_v22 = vpop.f32.mrf.mxu1  ;;  %5652 = vmatpush3.bf16.msra.mxu0 %v6211_v36  ;;  %v2021_v36 = vadd.f32 %v7857_v49, %v7964_v52  ;;  %v2623_v15 = vpack.c.bf16 %v2399_v63, %v2391_v27  ;;  %v8999_v49 = vld [vmem:[#allocation36_spill] sm:$0xff]  ;;  %v2415_v27 = vmax.f32 %v2033_v2, 0.0  ;;  %v2031_v2 = vadd.f32 %v7889_v37, %v7964_v52  ;;  %v9002_v37 = vld [vmem:[#allocation23_spill] sm:$0xff] }
 0x395   : > { %8995 = vst [vmem:[#allocation29_spill] sm:$0xff] %v8078_v4  ;;  %8996 = vst [vmem:[#allocation30_spill] sm:$0xff] %v8080_v22  ;;  %5653 = vmatprep.subr.bf16.mxu0 %v6212_v10  ;;  %v2616_v44 = vpack.c.bf16 %v2384_v24, %v2376_v20  ;;  %v2214_v22 = vadd.f32 %v8997_v31, %v7966_v40  ;;  %v2226_v10 = vadd.f32 %v7899_v12, %v7932_v35 }
 0x396   : > { %v8085_v39 = vpop.f32.mrf.mxu0  ;;  %v8087_v53 = vpop.f32.mrf.mxu1  ;;  %v2210_v23 = vadd.f32 %v8999_v49, %v7966_v40  ;;  %v2222_v12 = vadd.f32 %v7887_v3, %v7932_v35  ;;  %v2398_v63 = vmax.f32 %v2021_v36, 0.0  ;;  %v2390_v3 = vmax.f32 %v2017_v28, 0.0 }
 0x397   : > { %v2400_v7 = vmax.f32 %v2214_v22, 0.0  ;;  %v2417_v32 = vmax.f32 %v2226_v10, 0.0  ;;  %v2224_v10 = vadd.f32 %v7891_v34, %v7966_v40  ;;  %v2043_v28 = vadd.f32 %v7938_v33, %v7930_v9 }
 0x398   : > { %v8093_v4 = vpop.f32.mrf.mxu0  ;;  %v8095_v54 = vpop.f32.mrf.mxu1  ;;  %5654 = vmatpush3.bf16.msra.mxu0 %v6213_v61  ;;  %v6214_v61 = vld [vmem:[%s8887_s9 + $0x58] sm:$0xff]   ;;  %v2409_v36 = vmax.f32 %v2222_v12, 0.0  ;;  %v2622_v22 = vpack.c.bf16 %v2398_v63, %v2390_v3  ;;  %v9001_v63 = vld [vmem:[#allocation28_spill] sm:$0xff]  ;;  %v2039_v33 = vadd.f32 %v7919_v59, %v7930_v9 }
 0x399   : > { %5655 = vmatprep.subr.bf16.mxu0 %v6214_v61 }
 0x39a   : > { %v8105_v31 = vpop.f32.mrf.mxu0  ;;  %v8107_v24 = vpop.f32.mrf.mxu1  ;;  %3941 = vmatmul.mubr.bf16.gmra.mxu0 %v2614_v38  ;;  %4134 = vmatmul.mubr.bf16.gmra.mxu1 %v2616_v44  ;;  %v2392_v38 = vmax.f32 %v2210_v23, 0.0  ;;  %v2236_v23 = vadd.f32 %v7940_v45, %v7932_v35  ;;  %v2633_v12 = vpack.c.bf16 %v2417_v32, %v2409_v36  ;;  %v2232_v45 = vadd.f32 %v7921_v18, %v7932_v35 }
 0x39b   : > { %9000 = vst [vmem:[#allocation35_spill] sm:$0xff] %v8107_v24  ;;  %3950 = vmatprep.mubr.bf16.mxu0 %v2623_v15  ;;  %4143 = vmatprep.mubr.bf16.mxu1 %v2625_v56  ;;  %v2407_v56 = vmax.f32 %v2029_v8, 0.0  ;;  %v2416_v32 = vmax.f32 %v2224_v10, 0.0  ;;  %v2431_v36 = vmax.f32 %v2043_v28, 0.0  ;;  %v2423_v59 = vmax.f32 %v2039_v33, 0.0 }
 0x39c   : > { %v8116_v57 = vpop.f32.mrf.mxu0  ;;  %v8118_v20 = vpop.f32.mrf.mxu1  ;;  %5656 = vmatpush3.bf16.msra.mxu0 %v6215_v58  ;;  %v2624_v51 = vpack.c.bf16 %v2400_v7, %v2392_v38  ;;  %v2027_v7 = vadd.f32 %v9001_v63, %v7964_v52  ;;  %v2220_v58 = vadd.f32 %v9002_v37, %v7966_v40  ;;  %v2433_v63 = vmax.f32 %v2236_v23, 0.0 }
 0x39d   : > { %v2631_v8 = vpack.c.bf16 %v2415_v27, %v2407_v56  ;;  %v2414_v27 = vmax.f32 %v2031_v2, 0.0  ;;  %v2041_v2 = vadd.f32 %v7923_v30, %v7964_v52  ;;  %v2234_v10 = vadd.f32 %v7925_v13, %v7966_v40  ;;  %v9006_v30 = vld [vmem:[#allocation31_spill] sm:$0xff] }
 0x39e   : > { %v8123_v44 = vpop.f32.mrf.mxu0  ;;  %v8125_v15 = vpop.f32.mrf.mxu1  ;;  %v2406_v37 = vmax.f32 %v2027_v7, 0.0  ;;  %v2053_v23 = vadd.f32 %v7976_v48, %v7930_v9  ;;  %v2639_v7 = vpack.c.bf16 %v2431_v36, %v2423_v59  ;;  %v2049_v48 = vadd.f32 %v7960_v46, %v7930_v9  ;;  %v6217_v46 = vld [vmem:[%s8887_s9 + $0x10] sm:$0xff]  }
 0x39f   : > { %v2432_v36 = vmax.f32 %v2234_v10, 0.0 }
 0x3a0   : > { %v8131_v49 = vpop.f32.mrf.mxu0  ;;  %v8133_v61 = vpop.f32.mrf.mxu1  ;;  %v2630_v24 = vpack.c.bf16 %v2414_v27, %v2406_v37 }
 0x3a2   : > { %v8143_v3 = vpop.f32.mrf.mxu0  ;;  %v8145_v34 = vpop.f32.mrf.mxu1  ;;  %3951 = vmatmul.mubr.bf16.gmra.mxu0 %v2622_v22  ;;  %4144 = vmatmul.mubr.bf16.gmra.mxu1 %v2624_v51 }
 0x3a3   : > { %9003 = vst [vmem:[#allocation33_spill] sm:$0xff] %v8143_v3  ;;  %9004 = vst [vmem:[#allocation37_spill] sm:$0xff] %v8145_v34  ;;  %3960 = vmatprep.mubr.bf16.mxu0 %v2631_v8  ;;  %4153 = vmatprep.mubr.bf16.mxu1 %v2633_v12  ;;  %v2408_v34 = vmax.f32 %v2220_v58, 0.0  ;;  %v2425_v3 = vmax.f32 %v2232_v45, 0.0  ;;  %v2246_v12 = vadd.f32 %v7978_v6, %v7932_v35 }
 0x3a4   : > { %v8151_v38 = vpop.f32.mrf.mxu0  ;;  %v8153_v56 = vpop.f32.mrf.mxu1  ;;  %v2230_v45 = vadd.f32 %v9006_v30, %v7966_v40  ;;  %v2242_v6 = vadd.f32 %v7962_v41, %v7932_v35 }
 0x3a5   : > { %v2632_v18 = vpack.c.bf16 %v2416_v32, %v2408_v34  ;;  %v2641_v58 = vpack.c.bf16 %v2433_v63, %v2425_v3  ;;  %v9005_v34 = vld [vmem:[#allocation24_spill] sm:$0xff]  ;;  %v6216_v3 = vld [vmem:[%s8887_s9 + $0x50] sm:$0xff]   ;;  %v2430_v32 = vmax.f32 %v2041_v2, 0.0  ;;  %v2449_v59 = vmax.f32 %v2246_v12, 0.0 }
 0x3a6   : > { %v8155_v22 = vpop.f32.mrf.mxu0  ;;  %v8157_v51 = vpop.f32.mrf.mxu1  ;;  %v2037_v33 = vadd.f32 %v9005_v34, %v7964_v52  ;;  %5657 = vmatprep.subr.bf16.mxu0 %v6216_v3  ;;  %v2439_v34 = vmax.f32 %v2049_v48, 0.0  ;;  %v2441_v2 = vmax.f32 %v2242_v6, 0.0  ;;  %v2244_v12 = vadd.f32 %v7970_v11, %v7966_v40 }
 0x3a7   : > { %5658 = vmatpush3.bf16.msra.mxu0 %v6217_v46 }
 0x3a8   : > { %v8163_v8 = vpop.f32.mrf.mxu0  ;;  %v8165_v28 = vpop.f32.mrf.mxu1  ;;  %v2422_v41 = vmax.f32 %v2037_v33, 0.0  ;;  %v2063_v33 = vadd.f32 %v8008_v5, %v7930_v9  ;;  %v2649_v6 = vpack.c.bf16 %v2449_v59, %v2441_v2  ;;  %v2059_v5 = vadd.f32 %v7996_v1, %v7930_v9 }
 0x3a9   : > { %v2448_v59 = vmax.f32 %v2244_v12, 0.0  ;;  %v2254_v12 = vadd.f32 %v8002_v16, %v7966_v40 }
 0x3aa   : > { %v8175_v27 = vpop.f32.mrf.mxu0  ;;  %v8177_v13 = vpop.f32.mrf.mxu1  ;;  %3961 = vmatmul.mubr.bf16.gmra.mxu0 %v2630_v24  ;;  %4154 = vmatmul.mubr.bf16.gmra.mxu1 %v2632_v18  ;;  %v2447_v24 = vmax.f32 %v2053_v23, 0.0  ;;  %v2424_v18 = vmax.f32 %v2230_v45, 0.0  ;;  %v2638_v10 = vpack.c.bf16 %v2430_v32, %v2422_v41  ;;  %v2051_v23 = vadd.f32 %v7968_v62, %v7964_v52 }
 0x3ab   : > { %9007 = vst [vmem:[#allocation27_spill] sm:$0xff] %v8177_v13  ;;  %3970 = vmatprep.mubr.bf16.mxu0 %v2639_v7  ;;  %4163 = vmatprep.mubr.bf16.mxu1 %v2641_v58  ;;  %v2256_v45 = vadd.f32 %v8010_v21, %v7932_v35  ;;  %v2047_v32 = vadd.f32 %v7952_v43, %v7964_v52  ;;  %v2455_v1 = vmax.f32 %v2059_v5, 0.0 }
 0x3ac   : > { %v8186_v63 = vpop.f32.mrf.mxu0  ;;  %v8188_v37 = vpop.f32.mrf.mxu1  ;;  %v2640_v30 = vpack.c.bf16 %v2432_v36, %v2424_v18  ;;  %v2647_v48 = vpack.c.bf16 %v2447_v24, %v2439_v34  ;;  %v2240_v62 = vadd.f32 %v7954_v42, %v7966_v40  ;;  %v2252_v21 = vadd.f32 %v7998_v17, %v7932_v35 }
 0x3ad   : > { %v2446_v24 = vmax.f32 %v2051_v23, 0.0  ;;  %v2463_v42 = vmax.f32 %v2063_v33, 0.0  ;;  %v2465_v41 = vmax.f32 %v2256_v45, 0.0  ;;  %v2438_v18 = vmax.f32 %v2047_v32, 0.0 }
 0x3ae   : > { %v8193_v7 = vpop.f32.mrf.mxu0  ;;  %v8195_v58 = vpop.f32.mrf.mxu1  ;;  %v2440_v34 = vmax.f32 %v2240_v62, 0.0  ;;  %v2061_v23 = vadd.f32 %v8000_v50, %v7964_v52  ;;  %v2073_v45 = vadd.f32 %v8052_v0, %v7930_v9  ;;  %v2057_v5 = vadd.f32 %v7988_v29, %v7964_v52  ;;  %v6218_v29 = vld [vmem:[%s8887_s9 + $0x48] sm:$0xff]  }
 0x3af   : > { %v2655_v32 = vpack.c.bf16 %v2463_v42, %v2455_v1  ;;  %v2250_v50 = vadd.f32 %v7990_v26, %v7966_v40  ;;  %v2069_v0 = vadd.f32 %v8034_v55, %v7930_v9  ;;  %v2464_v26 = vmax.f32 %v2254_v12, 0.0  ;;  %5659 = vmatprep.subr.bf16.mxu0 %v6218_v29  ;;  %v6219_v55 = vld [vmem:[%s8887_s9 + $0x8] sm:$0xff]  }
 0x3b0   : > { %v8201_v3 = vpop.f32.mrf.mxu0  ;;  %v8203_v13 = vpop.f32.mrf.mxu1  ;;  %v2648_v17 = vpack.c.bf16 %v2448_v59, %v2440_v34  ;;  %5660 = vmatpush3.bf16.msra.mxu0 %v6219_v55  ;;  %v2067_v29 = vadd.f32 %v8026_v60, %v7964_v52  ;;  %v9013_v55 = vld [vmem:[#allocation29_spill] sm:$0xff]  ;;  %v2850_v60 = vld [vmem:[%s8886_s8] sm:$0x3] }
 0x3b2   : > { %v8213_v36 = vpop.f32.mrf.mxu0  ;;  %v8215_v11 = vpop.f32.mrf.mxu1  ;;  %3971 = vmatmul.mubr.bf16.gmra.mxu0 %v2638_v10  ;;  %4164 = vmatmul.mubr.bf16.gmra.mxu1 %v2640_v30  ;;  %v2457_v30 = vmax.f32 %v2252_v21, 0.0 }
 0x3b3   : > { %9008 = vst [vmem:[#allocation34_spill] sm:$0xff] %v8215_v11  ;;  %3980 = vmatprep.mubr.bf16.mxu0 %v2647_v48  ;;  %4173 = vmatprep.mubr.bf16.mxu1 %v2649_v6  ;;  %v2646_v11 = vpack.c.bf16 %v2446_v24, %v2438_v18  ;;  %v2266_v6 = vadd.f32 %v8054_v19, %v7932_v35  ;;  %v2462_v24 = vmax.f32 %v2061_v23, 0.0  ;;  %v2456_v18 = vmax.f32 %v2250_v50, 0.0 }
 0x3b4   : > { %v8221_v43 = vpop.f32.mrf.mxu0  ;;  %v8223_v46 = vpop.f32.mrf.mxu1  ;;  %v2657_v62 = vpack.c.bf16 %v2465_v41, %v2457_v30  ;;  %v2262_v19 = vadd.f32 %v8036_v47, %v7932_v35  ;;  %v2454_v47 = vmax.f32 %v2057_v5, 0.0  ;;  %v2471_v30 = vmax.f32 %v2069_v0, 0.0 }
 0x3b5   : > { %v2481_v41 = vmax.f32 %v2266_v6, 0.0  ;;  %v2656_v12 = vpack.c.bf16 %v2464_v26, %v2456_v18  ;;  %v2264_v6 = vadd.f32 %v8046_v14, %v7966_v40  ;;  %v2083_v5 = vadd.f32 %v8093_v4, %v7930_v9 }
 0x3b6   : > { %v8225_v2 = vpop.f32.mrf.mxu0  ;;  %v8227_v10 = vpop.f32.mrf.mxu1  ;;  %v2654_v23 = vpack.c.bf16 %v2462_v24, %v2454_v47  ;;  %v2276_v50 = vadd.f32 %v8095_v54, %v7932_v35  ;;  %v2079_v4 = vadd.f32 %v9013_v55, %v7930_v9  ;;  %v9014_v47 = vld [vmem:[#allocation30_spill] sm:$0xff] }
 0x3b7   : > { %v2272_v54 = vadd.f32 %v9014_v47, %v7932_v35 }
 0x3b8   : > { %v8233_v48 = vpop.f32.mrf.mxu0  ;;  %v8235_v33 = vpop.f32.mrf.mxu1 }
 0x3ba   : > { %v8245_v21 = vpop.f32.mrf.mxu0  ;;  %v8247_v16 = vpop.f32.mrf.mxu1  ;;  %3981 = vmatmul.mubr.bf16.gmra.mxu0 %v2646_v11  ;;  %4174 = vmatmul.mubr.bf16.gmra.mxu1 %v2648_v17  ;;  %v2479_v11 = vmax.f32 %v2073_v45, 0.0  ;;  %v2473_v17 = vmax.f32 %v2262_v19, 0.0  ;;  %v2071_v45 = vadd.f32 %v8044_v25, %v7964_v52  ;;  %v9010_v25 = vld [vmem:[#allocation32_spill] sm:$0xff] }
 0x3bb   : > { %9009 = vst [vmem:[#allocation36_spill] sm:$0xff] %v8247_v16  ;;  %3990 = vmatprep.mubr.bf16.mxu0 %v2655_v32  ;;  %4183 = vmatprep.mubr.bf16.mxu1 %v2657_v62  ;;  %v2260_v24 = vadd.f32 %v9010_v25, %v7966_v40  ;;  %v2470_v25 = vmax.f32 %v2067_v29, 0.0 }
 0x3bc   : > { %v8256_v59 = vpop.f32.mrf.mxu0  ;;  %v8258_v42 = vpop.f32.mrf.mxu1  ;;  %v2663_v0 = vpack.c.bf16 %v2479_v11, %v2471_v30  ;;  %v2665_v19 = vpack.c.bf16 %v2481_v41, %v2473_v17  ;;  %v2478_v11 = vmax.f32 %v2071_v45, 0.0  ;;  %v2480_v41 = vmax.f32 %v2264_v6, 0.0 }
 0x3bd   : > { %v2081_v17 = vadd.f32 %v8085_v39, %v7964_v52  ;;  %v2472_v55 = vmax.f32 %v2260_v24, 0.0  ;;  %v2487_v39 = vmax.f32 %v2079_v4, 0.0  ;;  %v2286_v4 = vadd.f32 %v8133_v61, %v7932_v35  ;;  %v6220_v61 = vld [vmem:[%s8887_s9 + $0x40] sm:$0xff]  }
 0x3be   : > { %v8263_v34 = vpop.f32.mrf.mxu0  ;;  %v8265_v1 = vpop.f32.mrf.mxu1  ;;  %v2662_v29 = vpack.c.bf16 %v2478_v11, %v2470_v25  ;;  %5661 = vmatprep.subr.bf16.mxu0 %v6220_v61 }
 0x3bf   : > { %v2664_v24 = vpack.c.bf16 %v2480_v41, %v2472_v55 }
 0x3c0   : > { %v8271_v32 = vpop.f32.mrf.mxu0  ;;  %v8273_v62 = vpop.f32.mrf.mxu1 }
 0x3c2   : > { %v8283_v26 = vpop.f32.mrf.mxu0  ;;  %v8285_v14 = vpop.f32.mrf.mxu1  ;;  %3991 = vmatmul.mubr.bf16.gmra.mxu0 %v2654_v23  ;;  %4184 = vmatmul.mubr.bf16.gmra.mxu1 %v2656_v12  ;;  %v2495_v23 = vmax.f32 %v2083_v5, 0.0  ;;  %v2497_v12 = vmax.f32 %v2276_v50, 0.0  ;;  %v2489_v5 = vmax.f32 %v2272_v54, 0.0  ;;  %v2274_v50 = vadd.f32 %v8087_v53, %v7966_v40 }
 0x3c3   : > { %9011 = vst [vmem:[#allocation28_spill] sm:$0xff] %v8283_v26  ;;  %9012 = vst [vmem:[#allocation23_spill] sm:$0xff] %v8285_v14  ;;  %4000 = vmatprep.mubr.bf16.mxu0 %v2663_v0  ;;  %4193 = vmatprep.mubr.bf16.mxu1 %v2665_v19  ;;  %v9019_v19 = vld [vmem:[#allocation22_spill] sm:$0xff]  ;;  %v2089_v53 = vadd.f32 %v8116_v57, %v7930_v9 }
 0x3c4   : > { %v8294_v18 = vpop.f32.mrf.mxu0  ;;  %v8296_v30 = vpop.f32.mrf.mxu1  ;;  %v9020_v14 = vsub.s32 0, %v9019_v19  ;;  %v9021_v45 = vsub.s32 1, %v9019_v19  ;;  %v2494_v19 = vmax.f32 %v2081_v17, 0.0  ;;  %v2671_v54 = vpack.c.bf16 %v2495_v23, %v2487_v39 }
 0x3c5   : > { %9015 = vst [vmem:[#allocation24_spill] sm:$0xff] %v8294_v18  ;;  %9016 = vst [vmem:[#allocation31_spill] sm:$0xff] %v8296_v30  ;;  %v9022_v30 = vld [vmem:[#allocation25_spill] sm:$0xff]  ;;  %v2496_v55 = vmax.f32 %v2274_v50, 0.0  ;;  %v2513_v39 = vmax.f32 %v2286_v4, 0.0  ;;  %v2284_v50 = vadd.f32 %v8125_v15, %v7966_v40  ;;  %v9024_v4 = vld [vmem:[#allocation35_spill] sm:$0xff] }
 0x3c6   : > { %v8300_v47 = vpop.f32.mrf.mxu0  ;;  %v8302_v0 = vpop.f32.mrf.mxu1  ;;  %v8306_v26 = vrot.slane %v2850_v60, %v9020_v14  ;;  %v8310_v6 = vrot.slane %v2850_v60, %v9021_v45  ;;  %v2077_v18 = vadd.f32 %v9022_v30, %v7964_v52  ;;  %v2093_v14 = vadd.f32 %v8131_v49, %v7930_v9 }
 0x3c7   : > { %9017 = vst [vmem:[#allocation32_spill] sm:$0xff] %v8300_v47  ;;  %9018 = vst [vmem:[#allocation29_spill] sm:$0xff] %v8302_v0  ;;  %v9023_v0 = vld [vmem:[#allocation26_spill] sm:$0xff]  ;;  %v2673_v30 = vpack.c.bf16 %v2497_v12, %v2489_v5  ;;  %v2282_v49 = vadd.f32 %v8118_v20, %v7932_v35  ;;  %v2503_v5 = vmax.f32 %v2089_v53, 0.0  ;;  %v2091_v20 = vadd.f32 %v8123_v44, %v7964_v52 }
 0x3c8   : > { %v2270_v47 = vadd.f32 %v9023_v0, %v7966_v40  ;;  %v8320_v16 = vpop.f32.mrf.mxu0  ;;  %v8322_v60 = vpop.f32.mrf.mxu1  ;;  %v2486_v25 = vmax.f32 %v2077_v18, 0.0  ;;  %v2511_v17 = vmax.f32 %v2093_v14, 0.0  ;;  %v2087_v44 = vadd.f32 %v8105_v31, %v7964_v52 }
 0x3c9   : > { %v2280_v15 = vadd.f32 %v9024_v4, %v7966_v40  ;;  %v2103_v53 = vadd.f32 %v8163_v8, %v7930_v9  ;;  %v2512_v31 = vmax.f32 %v2284_v50, 0.0  ;;  %v2292_v8 = vadd.f32 %v8153_v56, %v7932_v35 }
 0x3ca   : > { %v3536_v11 = vpop.f32.mrf.mxu0  ;;  %v3729_v41 = vpop.f32.mrf.mxu1  ;;  %4001 = vmatmul.mubr.bf16.gmra.mxu0 %v2662_v29  ;;  %4194 = vmatmul.mubr.bf16.gmra.mxu1 %v2664_v24  ;;  %v2488_v0 = vmax.f32 %v2270_v47, 0.0  ;;  %v2670_v45 = vpack.c.bf16 %v2494_v19, %v2486_v25  ;;  %v6221_v19 = vld [vmem:[%s8887_s9] sm:$0xff]   ;;  %v2101_v56 = vadd.f32 %v8155_v22, %v7964_v52 }
 0x3cb   : > { %4010 = vmatprep.mubr.bf16.mxu0 %v2671_v54  ;;  %4203 = vmatprep.mubr.bf16.mxu1 %v2673_v30  ;;  %v3537_v23 = vadd.f32 %v3536_v11, %v8306_v26  ;;  %v2505_v30 = vmax.f32 %v2282_v49, 0.0  ;;  %v2296_v49 = vadd.f32 %v8165_v28, %v7932_v35 }
 0x3cc   : > { %v3538_v12 = vpop.f32.mrf.mxu0  ;;  %v3731_v57 = vpop.f32.mrf.mxu1  ;;  %v2672_v54 = vpack.c.bf16 %v2496_v55, %v2488_v0  ;;  %v2679_v55 = vpack.c.bf16 %v2511_v17, %v2503_v5  ;;  %5662 = vmatpush3.bf16.msra.mxu0 %v6221_v19  ;;  %v2099_v0 = vadd.f32 %v8151_v38, %v7930_v9  ;;  %v2504_v5 = vmax.f32 %v2280_v15, 0.0 }
 0x3cd   : > { %v3539_v18 = vadd.f32 %v3538_v12, %v8310_v6  ;;  %v8339_v29 = vadd.f32 %v3729_v41, %v3537_v23  ;;  %v2681_v12 = vpack.c.bf16 %v2513_v39, %v2505_v30  ;;  %v2502_v39 = vmax.f32 %v2087_v44, 0.0 }
 0x3ce   : > { %v3540_v24 = vpop.f32.mrf.mxu0  ;;  %v3733_v14 = vpop.f32.mrf.mxu1  ;;  %v2529_v30 = vmax.f32 %v2296_v49, 0.0  ;;  %v2519_v19 = vmax.f32 %v2099_v0, 0.0  ;;  %v2294_v44 = vadd.f32 %v8157_v51, %v7966_v40 }
 0x3cf   : > { %v8341_v11 = vadd.f32 %v3731_v57, %v3539_v18  ;;  %v3541_v47 = vadd.f32 %v3540_v24, %v8306_v26  ;;  %v2510_v57 = vmax.f32 %v2091_v20, 0.0  ;;  %v2527_v20 = vmax.f32 %v2103_v53, 0.0 }
 0x3d0   : > { %v3542_v41 = vpop.f32.mrf.mxu0  ;;  %v3735_v25 = vpop.f32.mrf.mxu1 }
 0x3d1   : > { %v8355_v61 = vadd.f32 %v3733_v14, %v3541_v47  ;;  %v3543_v23 = vadd.f32 %v3542_v41, %v8310_v6  ;;  %v2680_v47 = vpack.c.bf16 %v2512_v31, %v2504_v5  ;;  %v2687_v0 = vpack.c.bf16 %v2527_v20, %v2519_v19 }
 0x3d2   : > { %v3546_v18 = vpop.f32.mrf.mxu0  ;;  %v3739_v24 = vpop.f32.mrf.mxu1  ;;  %4011 = vmatmul.mubr.bf16.gmra.mxu0 %v2670_v45  ;;  %4204 = vmatmul.mubr.bf16.gmra.mxu1 %v2672_v54  ;;  %v2678_v54 = vpack.c.bf16 %v2510_v57, %v2502_v39  ;;  %v2113_v57 = vadd.f32 %v8201_v3, %v7930_v9  ;;  %v2109_v39 = vadd.f32 %v8186_v63, %v7930_v9  ;;  %v2528_v3 = vmax.f32 %v2294_v44, 0.0 }
 0x3d3   : > { %v8362_v17 = vadd.f32 %v3735_v25, %v3543_v23  ;;  %v3547_v28 = vadd.f32 %v3546_v18, %v8306_v26  ;;  %4020 = vmatprep.mubr.bf16.mxu0 %v2679_v55  ;;  %4213 = vmatprep.mubr.bf16.mxu1 %v2681_v12  ;;  %v2521_v25 = vmax.f32 %v2292_v8, 0.0  ;;  %v9025_v55 = vld [vmem:[#allocation33_spill] sm:$0xff]  ;;  %v2306_v18 = vadd.f32 %v8203_v13, %v7932_v35 }
 0x3d4   : > { %v3548_v50 = vpop.f32.mrf.mxu0  ;;  %v3741_v14 = vpop.f32.mrf.mxu1  ;;  %v2097_v49 = vadd.f32 %v9025_v55, %v7964_v52  ;;  %v9026_v23 = vld [vmem:[#allocation37_spill] sm:$0xff]  ;;  %v2302_v20 = vadd.f32 %v8188_v37, %v7932_v35  ;;  %v2111_v37 = vadd.f32 %v8193_v7, %v7964_v52  ;;  %v2304_v44 = vadd.f32 %v8195_v58, %v7966_v40 }
 0x3d5   : > { %v8365_v38 = vadd.f32 %v3739_v24, %v3547_v28  ;;  %v3549_v45 = vadd.f32 %v3548_v50, %v8310_v6  ;;  %v2290_v12 = vadd.f32 %v9026_v23, %v7966_v40  ;;  %v2689_v8 = vpack.c.bf16 %v2529_v30, %v2521_v25 }
 0x3d6   : > { %v3550_v4 = vpop.f32.mrf.mxu0  ;;  %v3743_v41 = vpop.f32.mrf.mxu1  ;;  %v2526_v28 = vmax.f32 %v2101_v56, 0.0  ;;  %v2543_v30 = vmax.f32 %v2113_v57, 0.0  ;;  %v2545_v63 = vmax.f32 %v2306_v18, 0.0  ;;  %v2535_v25 = vmax.f32 %v2109_v39, 0.0 }
 0x3d7   : > { %v8372_v15 = vadd.f32 %v3741_v14, %v3549_v45  ;;  %v3551_v53 = vadd.f32 %v3550_v4, %v8306_v26  ;;  %v2518_v45 = vmax.f32 %v2097_v49, 0.0  ;;  %v2520_v4 = vmax.f32 %v2290_v12, 0.0 }
 0x3d8   : > { %v3552_v22 = vpop.f32.mrf.mxu0  ;;  %v3745_v31 = vpop.f32.mrf.mxu1  ;;  %v2537_v23 = vmax.f32 %v2302_v20, 0.0  ;;  %v2123_v7 = vadd.f32 %v8233_v48, %v7930_v9  ;;  %v2695_v58 = vpack.c.bf16 %v2543_v30, %v2535_v25  ;;  %v2312_v48 = vadd.f32 %v8223_v46, %v7932_v35 }
 0x3d9   : > { %v8383_v51 = vadd.f32 %v3743_v41, %v3551_v53  ;;  %v3553_v24 = vadd.f32 %v3552_v22, %v8310_v6  ;;  %v2688_v49 = vpack.c.bf16 %v2528_v3, %v2520_v4  ;;  %v2107_v22 = vadd.f32 %v8175_v27, %v7964_v52 }
 0x3da   : > { %v3556_v5 = vpop.f32.mrf.mxu0  ;;  %v3749_v50 = vpop.f32.mrf.mxu1  ;;  %4021 = vmatmul.mubr.bf16.gmra.mxu0 %v2678_v54  ;;  %4214 = vmatmul.mubr.bf16.gmra.mxu1 %v2680_v47  ;;  %v2686_v47 = vpack.c.bf16 %v2526_v28, %v2518_v45  ;;  %v2544_v3 = vmax.f32 %v2304_v44, 0.0  ;;  %v2119_v27 = vadd.f32 %v8221_v43, %v7930_v9 }
 0x3db   : > { %v8390_v14 = vadd.f32 %v3745_v31, %v3553_v24  ;;  %v3557_v13 = vadd.f32 %v3556_v5, %v8306_v26  ;;  %4030 = vmatprep.mubr.bf16.mxu0 %v2687_v0  ;;  %4223 = vmatprep.mubr.bf16.mxu1 %v2689_v8  ;;  %v9027_v31 = vld [vmem:[#allocation27_spill] sm:$0xff]  ;;  %v2316_v8 = vadd.f32 %v8235_v33, %v7932_v35  ;;  %v2534_v30 = vmax.f32 %v2107_v22, 0.0 }
 0x3dc   : > { %v3558_v19 = vpop.f32.mrf.mxu0  ;;  %v3751_v56 = vpop.f32.mrf.mxu1  ;;  %v2300_v0 = vadd.f32 %v9027_v31, %v7966_v40  ;;  %v2697_v5 = vpack.c.bf16 %v2545_v63, %v2537_v23  ;;  %v2551_v44 = vmax.f32 %v2119_v27, 0.0  ;;  %v2117_v22 = vadd.f32 %v8213_v36, %v7964_v52 }
 0x3dd   : > { %v8393_v41 = vadd.f32 %v3749_v50, %v3557_v13  ;;  %v3559_v54 = vadd.f32 %v3558_v19, %v8310_v6  ;;  %v2542_v50 = vmax.f32 %v2111_v37, 0.0  ;;  %v2314_v31 = vadd.f32 %v8227_v10, %v7966_v40 }
 0x3de   : > { %v3560_v53 = vpop.f32.mrf.mxu0  ;;  %v3753_v55 = vpop.f32.mrf.mxu1  ;;  %v2536_v19 = vmax.f32 %v2300_v0, 0.0  ;;  %v2133_v0 = vadd.f32 %v8271_v32, %v7930_v9  ;;  %v2129_v10 = vadd.f32 %v8256_v59, %v7930_v9  ;;  %v2322_v27 = vadd.f32 %v8258_v42, %v7932_v35 }
 0x3df   : > { %v8400_v57 = vadd.f32 %v3751_v56, %v3559_v54  ;;  %v3561_v12 = vadd.f32 %v3560_v53, %v8306_v26  ;;  %v2559_v56 = vmax.f32 %v2123_v7, 0.0  ;;  %v2561_v54 = vmax.f32 %v2316_v8, 0.0 }
 0x3e0   : > { %v3562_v18 = vpop.f32.mrf.mxu0  ;;  %v3755_v24 = vpop.f32.mrf.mxu1  ;;  %v2694_v25 = vpack.c.bf16 %v2542_v50, %v2534_v30  ;;  %v2696_v37 = vpack.c.bf16 %v2544_v3, %v2536_v19  ;;  %v2550_v19 = vmax.f32 %v2117_v22, 0.0 }
 0x3e1   : > { %v8411_v28 = vadd.f32 %v3753_v55, %v3561_v12  ;;  %v3563_v39 = vadd.f32 %v3562_v18, %v8310_v6  ;;  %v2553_v55 = vmax.f32 %v2312_v48, 0.0  ;;  %v2575_v48 = vmax.f32 %v2133_v0, 0.0 }
 0x3e2   : > { %v3566_v20 = vpop.f32.mrf.mxu0  ;;  %v3759_v13 = vpop.f32.mrf.mxu1  ;;  %4031 = vmatmul.mubr.bf16.gmra.mxu0 %v2686_v47  ;;  %4224 = vmatmul.mubr.bf16.gmra.mxu1 %v2688_v49  ;;  %v2121_v49 = vadd.f32 %v8225_v2, %v7964_v52  ;;  %v2143_v0 = vadd.f32 %v8320_v16, %v7930_v9  ;;  %v9031_v16 = vld [vmem:[#allocation31_spill] sm:$0xff] }
 0x3e3   : > { %v8418_v45 = vadd.f32 %v3755_v24, %v3563_v39  ;;  %v3567_v33 = vadd.f32 %v3566_v20, %v8306_v26  ;;  %4040 = vmatprep.mubr.bf16.mxu0 %v2695_v58  ;;  %4233 = vmatprep.mubr.bf16.mxu1 %v2697_v5  ;;  %v2703_v24 = vpack.c.bf16 %v2559_v56, %v2551_v44  ;;  %v9028_v5 = vld [vmem:[#allocation34_spill] sm:$0xff] }
 0x3e4   : > { %v3568_v4 = vpop.f32.mrf.mxu0  ;;  %v3761_v63 = vpop.f32.mrf.mxu1  ;;  %v2326_v58 = vadd.f32 %v8273_v62, %v7932_v35  ;;  %v2705_v39 = vpack.c.bf16 %v2561_v54, %v2553_v55  ;;  %v2310_v36 = vadd.f32 %v9028_v5, %v7966_v40  ;;  %v2558_v32 = vmax.f32 %v2121_v49, 0.0  ;;  %v9030_v5 = vld [vmem:[#allocation24_spill] sm:$0xff] }
 0x3e5   : > { %v8421_v43 = vadd.f32 %v3759_v13, %v3567_v33  ;;  %v3569_v47 = vadd.f32 %v3568_v4, %v8310_v6  ;;  %v2560_v13 = vmax.f32 %v2314_v31, 0.0  ;;  %v2567_v54 = vmax.f32 %v2129_v10, 0.0 }
 0x3e6   : > { %v3570_v46 = vpop.f32.mrf.mxu0  ;;  %v3763_v53 = vpop.f32.mrf.mxu1  ;;  %v2577_v59 = vmax.f32 %v2326_v58, 0.0  ;;  %v2131_v55 = vadd.f32 %v8263_v34, %v7964_v52  ;;  %v2324_v49 = vadd.f32 %v8265_v1, %v7966_v40  ;;  %v2127_v34 = vadd.f32 %v8245_v21, %v7964_v52  ;;  %v9029_v58 = vld [vmem:[#allocation36_spill] sm:$0xff] }
 0x3e7   : > { %v8426_v23 = vadd.f32 %v3761_v63, %v3569_v47  ;;  %v3571_v12 = vadd.f32 %v3570_v46, %v8306_v26  ;;  %v2552_v63 = vmax.f32 %v2310_v36, 0.0  ;;  %v2711_v31 = vpack.c.bf16 %v2575_v48, %v2567_v54 }
 0x3e8   : > { %v3572_v7 = vpop.f32.mrf.mxu0  ;;  %v3765_v18 = vpop.f32.mrf.mxu1  ;;  %v2320_v1 = vadd.f32 %v9029_v58, %v7966_v40  ;;  %v2139_v36 = vadd.f32 %v9030_v5, %v7930_v9  ;;  %v2332_v10 = vadd.f32 %v9031_v16, %v7932_v35 }
 0x3e9   : > { %v8437_v2 = vadd.f32 %v3763_v53, %v3571_v12  ;;  %v3573_v8 = vadd.f32 %v3572_v7, %v8310_v6  ;;  %v2704_v53 = vpack.c.bf16 %v2560_v13, %v2552_v63  ;;  %v2336_v7 = vadd.f32 %v8322_v60, %v7932_v35 }
 0x3ea   : > { %v3576_v50 = vpop.f32.mrf.mxu0  ;;  %v3769_v3 = vpop.f32.mrf.mxu1  ;;  %4041 = vmatmul.mubr.bf16.gmra.mxu0 %v2694_v25  ;;  %4234 = vmatmul.mubr.bf16.gmra.mxu1 %v2696_v37  ;;  %v2702_v25 = vpack.c.bf16 %v2558_v32, %v2550_v19  ;;  %v2569_v37 = vmax.f32 %v2322_v27, 0.0  ;;  %v2591_v27 = vmax.f32 %v2143_v0, 0.0  ;;  %v2585_v35 = vmax.f32 %v2332_v10, 0.0 }
 0x3eb   : > { %v8446_v62 = vadd.f32 %v3765_v18, %v3573_v8  ;;  %v3577_v20 = vadd.f32 %v3576_v50, %v8306_v26  ;;  %4050 = vmatprep.mubr.bf16.mxu0 %v2703_v24  ;;  %4243 = vmatprep.mubr.bf16.mxu1 %v2705_v39  ;;  %v2574_v50 = vmax.f32 %v2131_v55, 0.0 }
 0x3ec   : > { %v3578_v33 = vpop.f32.mrf.mxu0  ;;  %v3771_v30 = vpop.f32.mrf.mxu1  ;;  %v2713_v24 = vpack.c.bf16 %v2577_v59, %v2569_v37  ;;  %v2583_v59 = vmax.f32 %v2139_v36, 0.0  ;;  %v9033_v37 = vld [vmem:[#allocation29_spill] sm:$0xff] }
 0x3ed   : > { %v8449_v56 = vadd.f32 %v3769_v3, %v3577_v20  ;;  %v3579_v4 = vadd.f32 %v3578_v33, %v8310_v6  ;;  %v2576_v3 = vmax.f32 %v2324_v49, 0.0  ;;  %v2593_v20 = vmax.f32 %v2336_v7, 0.0  ;;  %v9034_v7 = vld [vmem:[#allocation28_spill] sm:$0xff] }
 0x3ee   : > { %v3580_v47 = vpop.f32.mrf.mxu0  ;;  %v3773_v42 = vpop.f32.mrf.mxu1  ;;  %v2566_v33 = vmax.f32 %v2127_v34, 0.0  ;;  %v9035_v34 = vld [vmem:[#allocation23_spill] sm:$0xff] }
 0x3ef   : > { %v8452_v44 = vadd.f32 %v3771_v30, %v3579_v4  ;;  %v3581_v46 = vadd.f32 %v3580_v47, %v8306_v26  ;;  %v2568_v30 = vmax.f32 %v2320_v1, 0.0  ;;  %v2721_v0 = vpack.c.bf16 %v2593_v20, %v2585_v35 }
 0x3f0   : > { %v8459_v12 = vpop.f32.mrf.mxu0  ;;  %v8461_v22 = vpop.f32.mrf.mxu1  ;;  %v2710_v54 = vpack.c.bf16 %v2574_v50, %v2566_v33  ;;  %v2330_v58 = vadd.f32 %v9035_v34, %v7966_v40 }
 0x3f1   : > { %v8467_v18 = vadd.f32 %v3773_v42, %v3581_v46  ;;  %v2712_v47 = vpack.c.bf16 %v2576_v3, %v2568_v30  ;;  %v9032_v42 = vld [vmem:[#allocation32_spill] sm:$0xff]  ;;  %v2334_v46 = vadd.f32 %v9033_v37, %v7966_v40 }
 0x3f2   : > { %v3586_v8 = vpop.f32.mrf.mxu0  ;;  %v3779_v39 = vpop.f32.mrf.mxu1  ;;  %4051 = vmatmul.mubr.bf16.gmra.mxu0 %v2702_v25  ;;  %4244 = vmatmul.mubr.bf16.gmra.mxu1 %v2704_v53  ;;  %v2141_v25 = vadd.f32 %v9032_v42, %v7964_v52  ;;  %v2584_v3 = vmax.f32 %v2330_v58, 0.0 }
 0x3f3   : > { %v3587_v60 = vadd.f32 %v3586_v8, %v8306_v26  ;;  %4060 = vmatprep.mubr.bf16.mxu0 %v2711_v31  ;;  %4253 = vmatprep.mubr.bf16.mxu1 %v2713_v24  ;;  %v2719_v31 = vpack.c.bf16 %v2591_v27, %v2583_v59  ;;  %v2137_v24 = vadd.f32 %v9034_v7, %v7964_v52  ;;  %v2592_v36 = vmax.f32 %v2334_v46, 0.0 }
 0x3f4   : > { %v3588_v21 = vpop.f32.mrf.mxu0  ;;  %v3781_v32 = vpop.f32.mrf.mxu1  ;;  %v2590_v5 = vmax.f32 %v2141_v25, 0.0 }
 0x3f5   : > { %v8478_v13 = vadd.f32 %v3779_v39, %v3587_v60  ;;  %v3589_v48 = vadd.f32 %v3588_v21, %v8310_v6  ;;  %v2582_v52 = vmax.f32 %v2137_v24, 0.0 }
 0x3f6   : > { %v3590_v9 = vpop.f32.mrf.mxu0  ;;  %v3783_v19 = vpop.f32.mrf.mxu1 }
 0x3f7   : > { %v8481_v4 = vadd.f32 %v3781_v32, %v3589_v48  ;;  %v3591_v63 = vadd.f32 %v3590_v9, %v8306_v26  ;;  %v2718_v20 = vpack.c.bf16 %v2590_v5, %v2582_v52  ;;  %v2720_v48 = vpack.c.bf16 %v2592_v36, %v2584_v3 }
 0x3f8   : > { %v8488_v53 = vpop.f32.mrf.mxu0  ;;  %v8490_v55 = vpop.f32.mrf.mxu1 }
 0x3f9   : > { %v8492_v49 = vadd.f32 %v3783_v19, %v3591_v63 }
 0x3fa   : > { %v3596_v1 = vpop.f32.mrf.mxu0  ;;  %v3789_v8 = vpop.f32.mrf.mxu1  ;;  %4061 = vmatmul.mubr.bf16.gmra.mxu0 %v2710_v54  ;;  %4254 = vmatmul.mubr.bf16.gmra.mxu1 %v2712_v47 }
 0x3fb   : > { %v3597_v39 = vadd.f32 %v3596_v1, %v8306_v26  ;;  %4070 = vmatprep.mubr.bf16.mxu0 %v2719_v31  ;;  %4263 = vmatprep.mubr.bf16.mxu1 %v2721_v0 }
 0x3fc   : > { %v3598_v16 = vpop.f32.mrf.mxu0  ;;  %v3791_v10 = vpop.f32.mrf.mxu1 }
 0x3fd   : > { %v8499_v60 = vadd.f32 %v3789_v8, %v3597_v39  ;;  %v3599_v50 = vadd.f32 %v3598_v16, %v8310_v6 }
 0x3fe   : > { %v3600_v21 = vpop.f32.mrf.mxu0  ;;  %v3793_v40 = vpop.f32.mrf.mxu1 }
 0x3ff   : > { %v8502_v32 = vadd.f32 %v3791_v10, %v3599_v50  ;;  %v3601_v27 = vadd.f32 %v3600_v21, %v8306_v26 }
 0x400   : > { %v8505_v33 = vpop.f32.mrf.mxu0  ;;  %v8507_v30 = vpop.f32.mrf.mxu1 }
 0x401   : > { %v8509_v9 = vadd.f32 %v3793_v40, %v3601_v27 }
 0x402   : > { %v3606_v19 = vpop.f32.mrf.mxu0  ;;  %v3799_v59 = vpop.f32.mrf.mxu1  ;;  %4071 = vmatmul.mubr.bf16.gmra.mxu0 %v2718_v20  ;;  %4264 = vmatmul.mubr.bf16.gmra.mxu1 %v2720_v48 }
 0x403   : > { %v3607_v35 = vadd.f32 %v3606_v19, %v8306_v26 }
 0x404   : > { %v3608_v63 = vpop.f32.mrf.mxu0  ;;  %v3801_v54 = vpop.f32.mrf.mxu1 }
 0x405   : > { %v8512_v47 = vadd.f32 %v3799_v59, %v3607_v35  ;;  %v3609_v42 = vadd.f32 %v3608_v63, %v8310_v6 }
 0x406   : > { %v3610_v25 = vpop.f32.mrf.mxu0  ;;  %v3803_v37 = vpop.f32.mrf.mxu1 }
 0x407   : > { %v8515_v46 = vadd.f32 %v3801_v54, %v3609_v42  ;;  %v3611_v31 = vadd.f32 %v3610_v25, %v8306_v26 }
 0x408   : > { %v8518_v0 = vpop.f32.mrf.mxu0  ;;  %v8520_v7 = vpop.f32.mrf.mxu1 }
 0x409   : > { %v8522_v24 = vadd.f32 %v3803_v37, %v3611_v31 }
 0x40a   : > { %v3616_v34 = vpop.f32.mrf.mxu0  ;;  %v3809_v58 = vpop.f32.mrf.mxu1 }
 0x40b   : > { %v3617_v1 = vadd.f32 %v3616_v34, %v8306_v26 }
 0x40c   : > { %v3618_v8 = vpop.f32.mrf.mxu0  ;;  %v3811_v39 = vpop.f32.mrf.mxu1 }
 0x40d   : > { %v8525_v5 = vadd.f32 %v3809_v58, %v3617_v1  ;;  %v3619_v36 = vadd.f32 %v3618_v8, %v8310_v6 }
 0x40e   : > { %v3620_v16 = vpop.f32.mrf.mxu0  ;;  %v3813_v10 = vpop.f32.mrf.mxu1 }
 0x40f   : > { %v8528_v50 = vadd.f32 %v3811_v39, %v3619_v36  ;;  %v3621_v52 = vadd.f32 %v3620_v16, %v8306_v26 }
 0x410   : > { %v8531_v3 = vpop.f32.mrf.mxu0  ;;  %v8533_v21 = vpop.f32.mrf.mxu1 }
 0x411   : > { %v8535_v40 = vadd.f32 %v3813_v10, %v3621_v52 }
 0x412   : > { %v3626_v27 = vpop.f32.mrf.mxu0  ;;  %v3819_v20 = vpop.f32.mrf.mxu1 }
 0x413   : > { %v3627_v48 = vadd.f32 %v3626_v27, %v8306_v26 }
 0x414   : > { %v3628_v19 = vpop.f32.mrf.mxu0  ;;  %v3821_v59 = vpop.f32.mrf.mxu1 }
 0x415   : > { %v8538_v35 = vadd.f32 %v3819_v20, %v3627_v48  ;;  %v3629_v63 = vadd.f32 %v3628_v19, %v8310_v6 }
 0x416   : > { %v3630_v54 = vpop.f32.mrf.mxu0  ;;  %v3823_v42 = vpop.f32.mrf.mxu1 }
 0x417   : > { %9036 = vst [vmem:[#allocation30_spill] sm:$0xff] %v8538_v35  ;;  %v8541_v25 = vadd.f32 %v3821_v59, %v3629_v63  ;;  %v3631_v37 = vadd.f32 %v3630_v54, %v8306_v26 }
 0x418   : > { %v8544_v31 = vpop.f32.mrf.mxu0  ;;  %v8546_v34 = vpop.f32.mrf.mxu1 }
 0x419   : > { %9037 = vst [vmem:[#allocation22_spill] sm:$0xff] %v8541_v25  ;;  %9038 = vst [vmem:[#allocation25_spill] sm:$0xff] %v8546_v34  ;;  %v8548_v58 = vadd.f32 %v3823_v42, %v3631_v37  ;;  %v6223_v34 = vld [vmem:[#allocation10 + $0x30] sm:$0xff]  }
 0x41a   : > { %v3636_v1 = vpop.f32.mrf.mxu0  ;;  %v3829_v8 = vpop.f32.mrf.mxu1 }
 0x41b   : > { %9039 = vst [vmem:[#allocation26_spill] sm:$0xff] %v8548_v58  ;;  %v3637_v39 = vadd.f32 %v3636_v1, %v8306_v26 }
 0x41c   : > { %v3638_v36 = vpop.f32.mrf.mxu0  ;;  %v3831_v16 = vpop.f32.mrf.mxu1 }
 0x41d   : > { %v8551_v10 = vadd.f32 %v3829_v8, %v3637_v39  ;;  %v3639_v52 = vadd.f32 %v3638_v36, %v8310_v6 }
 0x41e   : > { %v3640_v27 = vpop.f32.mrf.mxu0  ;;  %v3833_v20 = vpop.f32.mrf.mxu1 }
 0x41f   : > { %9040 = vst [vmem:[#allocation35_spill] sm:$0xff] %v8551_v10  ;;  %v8554_v48 = vadd.f32 %v3831_v16, %v3639_v52  ;;  %v3641_v19 = vadd.f32 %v3640_v27, %v8306_v26 }
 0x420   : > { %v8557_v59 = vpop.f32.mrf.mxu0  ;;  %v8559_v63 = vpop.f32.mrf.mxu1 }
 0x421   : > { %9041 = vst [vmem:[#allocation33_spill] sm:$0xff] %v8554_v48  ;;  %9042 = vst [vmem:[#allocation37_spill] sm:$0xff] %v8557_v59  ;;  %v8561_v54 = vadd.f32 %v3833_v20, %v3641_v19 }
 0x422   : > { %9043 = vst [vmem:[#allocation27_spill] sm:$0xff] %v8559_v63  ;;  %v3646_v42 = vpop.f32.mrf.mxu0  ;;  %v3839_v37 = vpop.f32.mrf.mxu1 }
 0x423   : > { %9044 = vst [vmem:[#allocation34_spill] sm:$0xff] %v8561_v54  ;;  %v3647_v1 = vadd.f32 %v3646_v42, %v8306_v26 }
 0x424   : > { %v3648_v8 = vpop.f32.mrf.mxu0  ;;  %v3841_v39 = vpop.f32.mrf.mxu1 }
 0x425   : > { %v8564_v10 = vadd.f32 %v3839_v37, %v3647_v1  ;;  %v3649_v36 = vadd.f32 %v3648_v8, %v8310_v6 }
 0x426   : > { %v3650_v16 = vpop.f32.mrf.mxu0  ;;  %v3843_v52 = vpop.f32.mrf.mxu1 }
 0x427   : > { %9045 = vst [vmem:[#allocation36_spill] sm:$0xff] %v8564_v10  ;;  %v8567_v48 = vadd.f32 %v3841_v39, %v3649_v36  ;;  %v3651_v27 = vadd.f32 %v3650_v16, %v8306_v26 }
 0x428   : > { %v8570_v59 = vpop.f32.mrf.mxu0  ;;  %v8572_v20 = vpop.f32.mrf.mxu1 }
 0x429   : > { %9046 = vst [vmem:[#allocation24_spill] sm:$0xff] %v8567_v48  ;;  %9047 = vst [vmem:[#allocation31_spill] sm:$0xff] %v8570_v59  ;;  %v8574_v19 = vadd.f32 %v3843_v52, %v3651_v27 }
 0x42a   : > { %9048 = vst [vmem:[#allocation32_spill] sm:$0xff] %v8572_v20  ;;  %v3656_v54 = vpop.f32.mrf.mxu0  ;;  %v3849_v42 = vpop.f32.mrf.mxu1 }
 0x42b   : > { %9049 = vst [vmem:[#allocation29_spill] sm:$0xff] %v8574_v19  ;;  %v3657_v63 = vadd.f32 %v3656_v54, %v8306_v26 }
 0x42c   : > { %v3658_v37 = vpop.f32.mrf.mxu0  ;;  %v3851_v1 = vpop.f32.mrf.mxu1 }
 0x42d   : > { %v8577_v10 = vadd.f32 %v3849_v42, %v3657_v63  ;;  %v3659_v8 = vadd.f32 %v3658_v37, %v8310_v6 }
 0x42e   : > { %v3660_v39 = vpop.f32.mrf.mxu0  ;;  %v3853_v36 = vpop.f32.mrf.mxu1 }
 0x42f   : > { %9050 = vst [vmem:[#allocation28_spill] sm:$0xff] %v8577_v10  ;;  %v8580_v48 = vadd.f32 %v3851_v1, %v3659_v8  ;;  %v3661_v16 = vadd.f32 %v3660_v39, %v8306_v26 }
 0x430   : > { %v8583_v59 = vpop.f32.mrf.mxu0  ;;  %v8585_v52 = vpop.f32.mrf.mxu1 }
 0x431   : > { %9051 = vst [vmem:[#allocation23_spill] sm:$0xff] %v8580_v48  ;;  %9052 = vst [vmem:[#allocation38_spill] sm:$0xff] %v8583_v59  ;;  %v8587_v27 = vadd.f32 %v3853_v36, %v3661_v16 }
 0x432   : > { %9053 = vst [vmem:[#allocation39_spill] sm:$0xff] %v8585_v52  ;;  %v3666_v19 = vpop.f32.mrf.mxu0  ;;  %v3859_v54 = vpop.f32.mrf.mxu1 }
 0x433   : > { %9054 = vst [vmem:[#allocation40_spill] sm:$0xff] %v8587_v27  ;;  %v3667_v20 = vadd.f32 %v3666_v19, %v8306_v26 }
 0x434   : > { %v3668_v63 = vpop.f32.mrf.mxu0  ;;  %v3861_v42 = vpop.f32.mrf.mxu1 }
 0x435   : > { %v8590_v10 = vadd.f32 %v3859_v54, %v3667_v20  ;;  %v3669_v37 = vadd.f32 %v3668_v63, %v8310_v6 }
 0x436   : > { %v3670_v1 = vpop.f32.mrf.mxu0  ;;  %v3863_v8 = vpop.f32.mrf.mxu1 }
 0x437   : > { %9055 = vst [vmem:[#allocation41_spill] sm:$0xff] %v8590_v10  ;;  %v8593_v48 = vadd.f32 %v3861_v42, %v3669_v37  ;;  %v3671_v39 = vadd.f32 %v3670_v1, %v8306_v26 }
 0x438   : > { %v8596_v59 = vpop.f32.mrf.mxu0  ;;  %v8598_v36 = vpop.f32.mrf.mxu1 }
 0x439   : > { %9056 = vst [vmem:[#allocation42_spill] sm:$0xff] %v8593_v48  ;;  %9057 = vst [vmem:[#allocation43_spill] sm:$0xff] %v8596_v59  ;;  %v8600_v16 = vadd.f32 %v3863_v8, %v3671_v39 }
 0x43a   : > { %9058 = vst [vmem:[#allocation44_spill] sm:$0xff] %v8598_v36  ;;  %v3676_v27 = vpop.f32.mrf.mxu0  ;;  %v3869_v19 = vpop.f32.mrf.mxu1 }
 0x43b   : > { %9059 = vst [vmem:[#allocation45_spill] sm:$0xff] %v8600_v16  ;;  %v3677_v52 = vadd.f32 %v3676_v27, %v8306_v26 }
 0x43c   : > { %v3678_v20 = vpop.f32.mrf.mxu0  ;;  %v3871_v54 = vpop.f32.mrf.mxu1 }
 0x43d   : > { %v8603_v10 = vadd.f32 %v3869_v19, %v3677_v52  ;;  %v3679_v63 = vadd.f32 %v3678_v20, %v8310_v6 }
 0x43e   : > { %v3680_v42 = vpop.f32.mrf.mxu0  ;;  %v3873_v37 = vpop.f32.mrf.mxu1 }
 0x43f   : > { %9060 = vst [vmem:[#allocation46_spill] sm:$0xff] %v8603_v10  ;;  %v8606_v48 = vadd.f32 %v3871_v54, %v3679_v63  ;;  %v3681_v1 = vadd.f32 %v3680_v42, %v8306_v26 }
 0x440   : > { %v8609_v59 = vpop.f32.mrf.mxu0  ;;  %v8611_v8 = vpop.f32.mrf.mxu1 }
 0x441   : > { %9061 = vst [vmem:[#allocation47_spill] sm:$0xff] %v8606_v48  ;;  %9062 = vst [vmem:[#allocation48_spill] sm:$0xff] %v8609_v59  ;;  %v8613_v39 = vadd.f32 %v3873_v37, %v3681_v1 }
 0x442   : > { %9063 = vst [vmem:[#allocation49_spill] sm:$0xff] %v8611_v8  ;;  %v3686_v16 = vpop.f32.mrf.mxu0  ;;  %v3879_v27 = vpop.f32.mrf.mxu1 }
 0x443   : > { %9064 = vst [vmem:[#allocation50_spill] sm:$0xff] %v8613_v39  ;;  %v3687_v36 = vadd.f32 %v3686_v16, %v8306_v26 }
 0x444   : > { %v3688_v52 = vpop.f32.mrf.mxu0  ;;  %v3881_v19 = vpop.f32.mrf.mxu1 }
 0x445   : > { %v8616_v10 = vadd.f32 %v3879_v27, %v3687_v36  ;;  %v3689_v20 = vadd.f32 %v3688_v52, %v8310_v6 }
 0x446   : > { %v3690_v54 = vpop.f32.mrf.mxu0  ;;  %v3883_v63 = vpop.f32.mrf.mxu1 }
 0x447   : > { %9065 = vst [vmem:[#allocation51_spill] sm:$0xff] %v8616_v10  ;;  %v8619_v48 = vadd.f32 %v3881_v19, %v3689_v20  ;;  %v3691_v42 = vadd.f32 %v3690_v54, %v8306_v26 }
 0x448   : > { %v8622_v59 = vpop.f32.mrf.mxu0  ;;  %v8624_v37 = vpop.f32.mrf.mxu1 }
 0x449   : > { %9066 = vst [vmem:[#allocation52_spill] sm:$0xff] %v8619_v48  ;;  %9067 = vst [vmem:[#allocation53_spill] sm:$0xff] %v8622_v59  ;;  %v8626_v1 = vadd.f32 %v3883_v63, %v3691_v42 }
 0x44a   : > { %9068 = vst [vmem:[#allocation54_spill] sm:$0xff] %v8624_v37  ;;  %v3922_v39 = vpop.f32.mrf.mxu0  ;;  %v4115_v16 = vpop.f32.mrf.mxu1  ;;  %v6222_v37 = vld [vmem:[#allocation10 + $0x38] sm:$0xff]  }
 0x44b   : > { %9069 = vst [vmem:[#allocation55_spill] sm:$0xff] %v8626_v1  ;;  %v3923_v8 = vadd.f32 %v3922_v39, %v8339_v29  ;;  %5859 = vmatprep.subr.bf16.mxu1 %v6222_v37 }
 0x44c   : > { %v3924_v36 = vpop.f32.mrf.mxu0  ;;  %v4117_v27 = vpop.f32.mrf.mxu1  ;;  %5860 = vmatpush3.bf16.msra.mxu1 %v6222_v37 }
 0x44d   : > { %v3925_v52 = vadd.f32 %v3924_v36, %v8341_v11  ;;  %v4116_v19 = vadd.f32 %v4115_v16, %v3923_v8  ;;  %5861 = vmatprep.subr.bf16.mxu1 %v6223_v34 }
 0x44e   : > { %v3926_v10 = vpop.f32.mrf.mxu0  ;;  %v4119_v58 = vpop.f32.mrf.mxu1 }
 0x44f   : > { %v3927_v20 = vadd.f32 %v3926_v10, %v8355_v61  ;;  %v4118_v48 = vadd.f32 %v4117_v27, %v3925_v52  ;;  %v4274_v29 = vmax.f32 %v4116_v19, 0.0  ;;  %v6224_v27 = vld [vmem:[#allocation10 + $0x28] sm:$0xff]  }
 0x450   : > { %v3928_v26 = vpop.f32.mrf.mxu0  ;;  %v4121_v54 = vpop.f32.mrf.mxu1  ;;  %5862 = vmatpush3.bf16.msra.mxu1 %v6223_v34 }
 0x451   : > { %v4120_v59 = vadd.f32 %v4119_v58, %v3927_v20  ;;  %v3929_v63 = vadd.f32 %v3928_v26, %v8362_v17  ;;  %v4275_v8 = vmax.f32 %v4118_v48, 0.0  ;;  %5863 = vmatprep.subr.bf16.mxu1 %v6224_v27 }
 0x452   : > { %v3932_v42 = vpop.f32.mrf.mxu0  ;;  %v4125_v1 = vpop.f32.mrf.mxu1 }
 0x453   : > { %v4276_v39 = vmax.f32 %v4120_v59, 0.0  ;;  %v4122_v25 = vadd.f32 %v4121_v54, %v3929_v63  ;;  %v3933_v11 = vadd.f32 %v3932_v42, %v8365_v38 }
 0x454   : > { %v3934_v36 = vpop.f32.mrf.mxu0  ;;  %v4127_v35 = vpop.f32.mrf.mxu1  ;;  %5864 = vmatpush3.bf16.msra.mxu1 %v6224_v27 }
 0x455   : > { %v4338_v61 = vpack.c.bf16 %v4276_v39, %v4274_v29  ;;  %v4277_v10 = vmax.f32 %v4122_v25, 0.0  ;;  %v3935_v16 = vadd.f32 %v3934_v36, %v8372_v15  ;;  %v4126_v20 = vadd.f32 %v4125_v1, %v3933_v11  ;;  %v6225_v15 = vld [vmem:[#allocation10 + $0x20] sm:$0xff]  }
 0x456   : > { %v3936_v58 = vpop.f32.mrf.mxu0  ;;  %v4129_v17 = vpop.f32.mrf.mxu1  ;;  %5865 = vmatprep.subr.bf16.mxu1 %v6225_v15 }
 0x457   : > { %v4339_v52 = vpack.c.bf16 %v4277_v10, %v4275_v8  ;;  %v3937_v59 = vadd.f32 %v3936_v58, %v8383_v51  ;;  %v4128_v38 = vadd.f32 %v4127_v35, %v3935_v16  ;;  %v4278_v37 = vmax.f32 %v4126_v20, 0.0 }
 0x458   : > { %v3938_v19 = vpop.f32.mrf.mxu0  ;;  %v4131_v26 = vpop.f32.mrf.mxu1  ;;  %5866 = vmatpush3.bf16.msra.mxu1 %v6225_v15 }
 0x459   : > { %v4130_v54 = vadd.f32 %v4129_v17, %v3937_v59  ;;  %v3939_v63 = vadd.f32 %v3938_v19, %v8390_v14  ;;  %4537 = vmatprep.mubr.bf16.mxu0 %v4339_v52  ;;  %v4279_v11 = vmax.f32 %v4128_v38, 0.0 }
 0x45a   : > { %v3942_v25 = vpop.f32.mrf.mxu0  ;;  %v4135_v48 = vpop.f32.mrf.mxu1  ;;  %4538 = vmatmul.mubr.bf16.vlgmr.msra.gmra.mxu0 %v4338_v61 }
 0x45b   : > { %v4280_v42 = vmax.f32 %v4130_v54, 0.0  ;;  %v4132_v29 = vadd.f32 %v4131_v26, %v3939_v63  ;;  %v3943_v1 = vadd.f32 %v3942_v25, %v8393_v41 }
 0x45c   : > { %v3944_v39 = vpop.f32.mrf.mxu0  ;;  %v4137_v51 = vpop.f32.mrf.mxu1 }
 0x45d   : > { %v4340_v36 = vpack.c.bf16 %v4280_v42, %v4278_v37  ;;  %v4281_v35 = vmax.f32 %v4132_v29, 0.0  ;;  %v3945_v8 = vadd.f32 %v3944_v39, %v8400_v57  ;;  %v4136_v61 = vadd.f32 %v4135_v48, %v3943_v1 }
 0x45e   : > { %v3946_v14 = vpop.f32.mrf.mxu0  ;;  %v4139_v34 = vpop.f32.mrf.mxu1 }
 0x45f   : > { %v4341_v10 = vpack.c.bf16 %v4281_v35, %v4279_v11  ;;  %v3947_v16 = vadd.f32 %v3946_v14, %v8411_v28  ;;  %v4138_v52 = vadd.f32 %v4137_v51, %v3945_v8  ;;  %v4282_v57 = vmax.f32 %v4136_v61, 0.0 }
 0x460   : > { %v3948_v58 = vpop.f32.mrf.mxu0  ;;  %v4141_v17 = vpop.f32.mrf.mxu1 }
 0x461   : > { %v4140_v20 = vadd.f32 %v4139_v34, %v3947_v16  ;;  %v3949_v41 = vadd.f32 %v3948_v58, %v8418_v45  ;;  %4545 = vmatprep.mubr.bf16.mxu0 %v4341_v10  ;;  %v4283_v25 = vmax.f32 %v4138_v52, 0.0 }
 0x462   : > { %v3952_v59 = vpop.f32.mrf.mxu0  ;;  %v4145_v19 = vpop.f32.mrf.mxu1  ;;  %4546 = vmatmul.mubr.bf16.gmra.mxu0 %v4340_v36 }
 0x463   : > { %v4284_v27 = vmax.f32 %v4140_v20, 0.0  ;;  %v4142_v26 = vadd.f32 %v4141_v17, %v3949_v41  ;;  %v3953_v38 = vadd.f32 %v3952_v59, %v8421_v43  ;;  %v3583_v43 = vadd.f32 %v8459_v12, %v8310_v6 }
 0x464   : > { %v3954_v54 = vpop.f32.mrf.mxu0  ;;  %v4147_v63 = vpop.f32.mrf.mxu1 }
 0x465   : > { %v4342_v28 = vpack.c.bf16 %v4284_v27, %v4282_v57  ;;  %v4285_v48 = vmax.f32 %v4142_v26, 0.0  ;;  %v3955_v37 = vadd.f32 %v3954_v54, %v8426_v23  ;;  %v4146_v1 = vadd.f32 %v4145_v19, %v3953_v38 }
 0x466   : > { %v3956_v42 = vpop.f32.mrf.mxu0  ;;  %v4149_v29 = vpop.f32.mrf.mxu1  ;;  %v3776_v59 = vadd.f32 %v8461_v22, %v3583_v43 }
 0x467   : > { %v4343_v45 = vpack.c.bf16 %v4285_v48, %v4283_v25  ;;  %v3957_v15 = vadd.f32 %v3956_v42, %v8437_v2  ;;  %v4148_v11 = vadd.f32 %v4147_v63, %v3955_v37  ;;  %v4286_v23 = vmax.f32 %v4146_v1, 0.0 }
 0x468   : > { %v3958_v39 = vpop.f32.mrf.mxu0  ;;  %v4151_v51 = vpop.f32.mrf.mxu1  ;;  %v3593_v63 = vadd.f32 %v8488_v53, %v8310_v6 }
 0x469   : > { %v4150_v36 = vadd.f32 %v4149_v29, %v3957_v15  ;;  %v3959_v35 = vadd.f32 %v3958_v39, %v8446_v62  ;;  %4553 = vmatprep.mubr.bf16.mxu0 %v4343_v45  ;;  %v4287_v58 = vmax.f32 %v4148_v11, 0.0 }
 0x46a   : > { %v3962_v8 = vpop.f32.mrf.mxu0  ;;  %v4155_v14 = vpop.f32.mrf.mxu1  ;;  %4554 = vmatmul.mubr.bf16.gmra.mxu0 %v4342_v28  ;;  %v3786_v11 = vadd.f32 %v8490_v55, %v3593_v63 }
 0x46b   : > { %v4288_v34 = vmax.f32 %v4150_v36, 0.0  ;;  %v4152_v10 = vadd.f32 %v4151_v51, %v3959_v35  ;;  %v3963_v61 = vadd.f32 %v3962_v8, %v8449_v56 }
 0x46c   : > { %v3964_v16 = vpop.f32.mrf.mxu0  ;;  %v4157_v2 = vpop.f32.mrf.mxu1 }
 0x46d   : > { %v4344_v17 = vpack.c.bf16 %v4288_v34, %v4286_v23  ;;  %v4289_v52 = vmax.f32 %v4152_v10, 0.0  ;;  %v3965_v20 = vadd.f32 %v3964_v16, %v8452_v44  ;;  %v4156_v19 = vadd.f32 %v4155_v14, %v3963_v61 }
 0x46e   : > { %v3966_v62 = vpop.f32.mrf.mxu0  ;;  %v4159_v41 = vpop.f32.mrf.mxu1  ;;  %v3603_v34 = vadd.f32 %v8505_v33, %v8310_v6 }
 0x46f   : > { %v4345_v12 = vpack.c.bf16 %v4289_v52, %v4287_v58  ;;  %v3967_v57 = vadd.f32 %v3966_v62, %v8467_v18  ;;  %v4158_v38 = vadd.f32 %v4157_v2, %v3965_v20  ;;  %v4290_v44 = vmax.f32 %v4156_v19, 0.0 }
 0x470   : > { %v3968_v27 = vpop.f32.mrf.mxu0  ;;  %v4161_v26 = vpop.f32.mrf.mxu1 }
 0x471   : > { %v4160_v54 = vadd.f32 %v4159_v41, %v3967_v57  ;;  %v3969_v56 = vadd.f32 %v3968_v27, %v3776_v59  ;;  %4561 = vmatprep.mubr.bf16.mxu0 %v4345_v12  ;;  %v4291_v18 = vmax.f32 %v4158_v38, 0.0  ;;  %v3796_v12 = vadd.f32 %v8507_v30, %v3603_v34 }
 0x472   : > { %v3972_v25 = vpop.f32.mrf.mxu0  ;;  %v4165_v28 = vpop.f32.mrf.mxu1  ;;  %4562 = vmatmul.mubr.bf16.gmra.mxu0 %v4344_v17 }
 0x473   : > { %v4292_v48 = vmax.f32 %v4160_v54, 0.0  ;;  %v4162_v37 = vadd.f32 %v4161_v26, %v3969_v56  ;;  %v3973_v22 = vadd.f32 %v3972_v25, %v8478_v13  ;;  %v3613_v56 = vadd.f32 %v8518_v0, %v8310_v6 }
 0x474   : > { %v3974_v42 = vpop.f32.mrf.mxu0  ;;  %v4167_v29 = vpop.f32.mrf.mxu1 }
 0x475   : > { %v4346_v45 = vpack.c.bf16 %v4292_v48, %v4290_v44  ;;  %v4293_v1 = vmax.f32 %v4162_v37, 0.0  ;;  %v3975_v15 = vadd.f32 %v3974_v42, %v8481_v4  ;;  %v4166_v36 = vadd.f32 %v4165_v28, %v3973_v22 }
 0x476   : > { %v3976_v39 = vpop.f32.mrf.mxu0  ;;  %v4169_v51 = vpop.f32.mrf.mxu1 }
 0x477   : > { %v4347_v53 = vpack.c.bf16 %v4293_v1, %v4291_v18  ;;  %v3977_v35 = vadd.f32 %v3976_v39, %v8492_v49  ;;  %v4168_v14 = vadd.f32 %v4167_v29, %v3975_v15  ;;  %v4294_v4 = vmax.f32 %v4166_v36, 0.0 }
 0x478   : > { %v3978_v43 = vpop.f32.mrf.mxu0  ;;  %v4171_v8 = vpop.f32.mrf.mxu1  ;;  %v3806_v1 = vadd.f32 %v8520_v7, %v3613_v56 }
 0x479   : > { %v4170_v23 = vadd.f32 %v4169_v51, %v3977_v35  ;;  %v3979_v13 = vadd.f32 %v3978_v43, %v3786_v11  ;;  %4569 = vmatprep.mubr.bf16.mxu0 %v4347_v53  ;;  %v4295_v49 = vmax.f32 %v4168_v14, 0.0  ;;  %v3623_v35 = vadd.f32 %v8531_v3, %v8310_v6 }
 0x47a   : > { %v3982_v10 = vpop.f32.mrf.mxu0  ;;  %v4175_v61 = vpop.f32.mrf.mxu1  ;;  %4570 = vmatmul.mubr.bf16.gmra.mxu0 %v4346_v45 }
 0x47b   : > { %v4296_v16 = vmax.f32 %v4170_v23, 0.0  ;;  %v4172_v2 = vadd.f32 %v4171_v8, %v3979_v13  ;;  %v3983_v55 = vadd.f32 %v3982_v10, %v8499_v60 }
 0x47c   : > { %v3984_v58 = vpop.f32.mrf.mxu0  ;;  %v4177_v17 = vpop.f32.mrf.mxu1 }
 0x47d   : > { %v4348_v52 = vpack.c.bf16 %v4296_v16, %v4294_v4  ;;  %v4297_v20 = vmax.f32 %v4172_v2, 0.0  ;;  %v3985_v62 = vadd.f32 %v3984_v58, %v8502_v32  ;;  %v4176_v19 = vadd.f32 %v4175_v61, %v3983_v55 }
 0x47e   : > { %v3986_v41 = vpop.f32.mrf.mxu0  ;;  %v4179_v59 = vpop.f32.mrf.mxu1  ;;  %v3816_v55 = vadd.f32 %v8533_v21, %v3623_v35  ;;  %v9070_v21 = vld [vmem:[#allocation30_spill] sm:$0xff] }
 0x47f   : > { %v4349_v33 = vpack.c.bf16 %v4297_v20, %v4295_v49  ;;  %v3987_v57 = vadd.f32 %v3986_v41, %v8509_v9  ;;  %v4178_v38 = vadd.f32 %v4177_v17, %v3985_v62  ;;  %v4298_v32 = vmax.f32 %v4176_v19, 0.0 }
 0x480   : > { %v3988_v27 = vpop.f32.mrf.mxu0  ;;  %v4181_v26 = vpop.f32.mrf.mxu1  ;;  %v3633_v41 = vadd.f32 %v8544_v31, %v8310_v6 }
 0x481   : > { %v4180_v54 = vadd.f32 %v4179_v59, %v3987_v57  ;;  %v3989_v60 = vadd.f32 %v3988_v27, %v3796_v12  ;;  %4577 = vmatprep.mubr.bf16.mxu0 %v4349_v33  ;;  %v4299_v9 = vmax.f32 %v4178_v38, 0.0 }
 0x482   : > { %v3992_v63 = vpop.f32.mrf.mxu0  ;;  %v4185_v25 = vpop.f32.mrf.mxu1  ;;  %4578 = vmatmul.mubr.bf16.gmra.mxu0 %v4348_v52 }
 0x483   : > { %v4300_v28 = vmax.f32 %v4180_v54, 0.0  ;;  %v4182_v44 = vadd.f32 %v4181_v26, %v3989_v60  ;;  %v3993_v30 = vadd.f32 %v3992_v63, %v8512_v47  ;;  %v9071_v60 = vld [vmem:[#allocation22_spill] sm:$0xff] }
 0x484   : > { %v3994_v48 = vpop.f32.mrf.mxu0  ;;  %v4187_v37 = vpop.f32.mrf.mxu1 }
 0x485   : > { %v4350_v22 = vpack.c.bf16 %v4300_v28, %v4298_v32  ;;  %v4301_v42 = vmax.f32 %v4182_v44, 0.0  ;;  %v3995_v29 = vadd.f32 %v3994_v48, %v8515_v46  ;;  %v4186_v15 = vadd.f32 %v4185_v25, %v3993_v30  ;;  %v9072_v32 = vld [vmem:[#allocation25_spill] sm:$0xff]  ;;  %v9073_v30 = vld [vmem:[#allocation26_spill] sm:$0xff] }
 0x486   : > { %v3996_v18 = vpop.f32.mrf.mxu0  ;;  %v4189_v45 = vpop.f32.mrf.mxu1  ;;  %v3826_v28 = vadd.f32 %v9072_v32, %v3633_v41 }
 0x487   : > { %v4351_v0 = vpack.c.bf16 %v4301_v42, %v4299_v9  ;;  %v3997_v39 = vadd.f32 %v3996_v18, %v8522_v24  ;;  %v4188_v53 = vadd.f32 %v4187_v37, %v3995_v29  ;;  %v4302_v46 = vmax.f32 %v4186_v15, 0.0  ;;  %v9074_v18 = vld [vmem:[#allocation37_spill] sm:$0xff] }
 0x488   : > { %v3998_v51 = vpop.f32.mrf.mxu0  ;;  %v4191_v11 = vpop.f32.mrf.mxu1 }
 0x489   : > { %v4190_v36 = vadd.f32 %v4189_v45, %v3997_v39  ;;  %v3999_v47 = vadd.f32 %v3998_v51, %v3806_v1  ;;  %4585 = vmatprep.mubr.bf16.mxu0 %v4351_v0  ;;  %v4303_v24 = vmax.f32 %v4188_v53, 0.0  ;;  %v3643_v45 = vadd.f32 %v9074_v18, %v8310_v6 }
 0x48a   : > { %v4002_v43 = vpop.f32.mrf.mxu0  ;;  %v4195_v8 = vpop.f32.mrf.mxu1  ;;  %4586 = vmatmul.mubr.bf16.gmra.mxu0 %v4350_v22 }
 0x48b   : > { %v4304_v14 = vmax.f32 %v4190_v36, 0.0  ;;  %v4192_v23 = vadd.f32 %v4191_v11, %v3999_v47  ;;  %v4003_v7 = vadd.f32 %v4002_v43, %v8525_v5  ;;  %v9075_v11 = vld [vmem:[#allocation35_spill] sm:$0xff] }
 0x48c   : > { %v4004_v13 = vpop.f32.mrf.mxu0  ;;  %v4197_v34 = vpop.f32.mrf.mxu1 }
 0x48d   : > { %v4352_v10 = vpack.c.bf16 %v4304_v14, %v4302_v46  ;;  %v4305_v61 = vmax.f32 %v4192_v23, 0.0  ;;  %v4005_v4 = vadd.f32 %v4004_v13, %v8528_v50  ;;  %v4196_v58 = vadd.f32 %v4195_v8, %v4003_v7  ;;  %v9076_v46 = vld [vmem:[#allocation33_spill] sm:$0xff]  ;;  %v9077_v13 = vld [vmem:[#allocation27_spill] sm:$0xff] }
 0x48e   : > { %v4006_v16 = vpop.f32.mrf.mxu0  ;;  %v4199_v2 = vpop.f32.mrf.mxu1 }
 0x48f   : > { %v4353_v3 = vpack.c.bf16 %v4305_v61, %v4303_v24  ;;  %v4007_v17 = vadd.f32 %v4006_v16, %v8535_v40  ;;  %v4198_v20 = vadd.f32 %v4197_v34, %v4005_v4  ;;  %v4306_v50 = vmax.f32 %v4196_v58, 0.0  ;;  %v9078_v61 = vld [vmem:[#allocation34_spill] sm:$0xff] }
 0x490   : > { %v4008_v49 = vpop.f32.mrf.mxu0  ;;  %v4201_v52 = vpop.f32.mrf.mxu1  ;;  %v3836_v34 = vadd.f32 %v9077_v13, %v3643_v45 }
 0x491   : > { %v4200_v62 = vadd.f32 %v4199_v2, %v4007_v17  ;;  %v4009_v5 = vadd.f32 %v4008_v49, %v3816_v55  ;;  %4593 = vmatprep.mubr.bf16.mxu0 %v4353_v3  ;;  %v4307_v40 = vmax.f32 %v4198_v20, 0.0  ;;  %v6226_v55 = vld [vmem:[#allocation10 + $0x18] sm:$0xff]   ;;  %v9079_v49 = vld [vmem:[#allocation31_spill] sm:$0xff] }
 0x492   : > { %v4012_v59 = vpop.f32.mrf.mxu0  ;;  %v4205_v12 = vpop.f32.mrf.mxu1  ;;  %4594 = vmatmul.mubr.bf16.gmra.mxu0 %v4352_v10  ;;  %5867 = vmatprep.subr.bf16.mxu1 %v6226_v55 }
 0x493   : > { %v4308_v33 = vmax.f32 %v4200_v62, 0.0  ;;  %v4202_v19 = vadd.f32 %v4201_v52, %v4009_v5  ;;  %v4013_v57 = vadd.f32 %v4012_v59, %v9070_v21  ;;  %v3653_v52 = vadd.f32 %v9079_v49, %v8310_v6  ;;  %5868 = vmatpush3.bf16.msra.mxu1 %v6226_v55  ;;  %v6227_v21 = vld [vmem:[#allocation10 + $0x10] sm:$0xff]  }
 0x494   : > { %v4014_v27 = vpop.f32.mrf.mxu0  ;;  %v4207_v26 = vpop.f32.mrf.mxu1  ;;  %5869 = vmatprep.subr.bf16.mxu1 %v6227_v21 }
 0x495   : > { %v4354_v38 = vpack.c.bf16 %v4308_v33, %v4306_v50  ;;  %v4309_v54 = vmax.f32 %v4202_v19, 0.0  ;;  %v4015_v56 = vadd.f32 %v4014_v27, %v9071_v60  ;;  %v4206_v44 = vadd.f32 %v4205_v12, %v4013_v57  ;;  %v9080_v12 = vld [vmem:[#allocation36_spill] sm:$0xff] }
 0x496   : > { %v4016_v63 = vpop.f32.mrf.mxu0  ;;  %v4209_v25 = vpop.f32.mrf.mxu1 }
 0x497   : > { %v4355_v31 = vpack.c.bf16 %v4309_v54, %v4307_v40  ;;  %v4017_v48 = vadd.f32 %v4016_v63, %v9073_v30  ;;  %v4208_v22 = vadd.f32 %v4207_v26, %v4015_v56  ;;  %v4310_v15 = vmax.f32 %v4206_v44, 0.0  ;;  %v9081_v40 = vld [vmem:[#allocation24_spill] sm:$0xff]  ;;  %5870 = vmatpush3.bf16.msra.mxu1 %v6227_v21 }
 0x498   : > { %v4018_v37 = vpop.f32.mrf.mxu0  ;;  %v4211_v9 = vpop.f32.mrf.mxu1  ;;  %v9082_v56 = vld [vmem:[#allocation32_spill] sm:$0xff] }
 0x499   : > { %v4210_v42 = vadd.f32 %v4209_v25, %v4017_v48  ;;  %v4019_v29 = vadd.f32 %v4018_v37, %v3826_v28  ;;  %4601 = vmatprep.mubr.bf16.mxu0 %v4355_v31  ;;  %v4311_v35 = vmax.f32 %v4208_v22, 0.0  ;;  %v3846_v63 = vadd.f32 %v9082_v56, %v3653_v52  ;;  %v9083_v28 = vld [vmem:[#allocation29_spill] sm:$0xff]  ;;  %v6228_v48 = vld [vmem:[#allocation10 + $0x8] sm:$0xff]  }
 0x49a   : > { %v4022_v1 = vpop.f32.mrf.mxu0  ;;  %v4215_v0 = vpop.f32.mrf.mxu1  ;;  %4602 = vmatmul.mubr.bf16.gmra.mxu0 %v4354_v38  ;;  %5871 = vmatprep.subr.bf16.mxu1 %v6228_v48 }
 0x49b   : > { %v4312_v39 = vmax.f32 %v4210_v42, 0.0  ;;  %v4212_v51 = vadd.f32 %v4211_v9, %v4019_v29  ;;  %v4023_v53 = vadd.f32 %v4022_v1, %v9075_v11  ;;  %v9084_v42 = vld [vmem:[#allocation38_spill] sm:$0xff]  ;;  %5872 = vmatpush3.bf16.msra.mxu1 %v6228_v48  ;;  %v9094_v48 = vld [vmem:[#allocation48_spill] sm:$0xff] }
 0x49c   : > { %v4024_v36 = vpop.f32.mrf.mxu0  ;;  %v4217_v47 = vpop.f32.mrf.mxu1  ;;  %v3663_v29 = vadd.f32 %v9084_v42, %v8310_v6 }
 0x49d   : > { %v4356_v43 = vpack.c.bf16 %v4312_v39, %v4310_v15  ;;  %v4313_v8 = vmax.f32 %v4212_v51, 0.0  ;;  %v4025_v14 = vadd.f32 %v4024_v36, %v9076_v46  ;;  %v4216_v10 = vadd.f32 %v4215_v0, %v4023_v53  ;;  %v9085_v39 = vld [vmem:[#allocation28_spill] sm:$0xff]  ;;  %v6229_v36 = vld [vmem:[#allocation10] sm:$0xff]  }
 0x49e   : > { %v4026_v23 = vpop.f32.mrf.mxu0  ;;  %v4219_v7 = vpop.f32.mrf.mxu1  ;;  %5873 = vmatprep.subr.bf16.mxu1 %v6229_v36 }
 0x49f   : > { %v4357_v24 = vpack.c.bf16 %v4313_v8, %v4311_v35  ;;  %v4027_v4 = vadd.f32 %v4026_v23, %v9078_v61  ;;  %v4218_v3 = vadd.f32 %v4217_v47, %v4025_v14  ;;  %v4314_v5 = vmax.f32 %v4216_v10, 0.0  ;;  %v9086_v8 = vld [vmem:[#allocation23_spill] sm:$0xff]  ;;  %v9088_v10 = vld [vmem:[#allocation40_spill] sm:$0xff]  ;;  %5874 = vmatpush3.bf16.msra.mxu1 %v6229_v36 }
 0x4a0   : > { %v4028_v16 = vpop.f32.mrf.mxu0  ;;  %v4221_v2 = vpop.f32.mrf.mxu1 }
 0x4a1   : > { %v4220_v58 = vadd.f32 %v4219_v7, %v4027_v4  ;;  %v4029_v17 = vadd.f32 %v4028_v16, %v3836_v34  ;;  %4609 = vmatprep.mubr.bf16.mxu0 %v4357_v24  ;;  %v4315_v57 = vmax.f32 %v4218_v3, 0.0  ;;  %v9087_v7 = vld [vmem:[#allocation39_spill] sm:$0xff] }
 0x4a2   : > { %v4032_v20 = vpop.f32.mrf.mxu0  ;;  %v4225_v62 = vpop.f32.mrf.mxu1  ;;  %4610 = vmatmul.mubr.bf16.gmra.mxu0 %v4356_v43  ;;  %v3856_v13 = vadd.f32 %v9087_v7, %v3663_v29 }
 0x4a3   : > { %v4316_v41 = vmax.f32 %v4220_v58, 0.0  ;;  %v4222_v59 = vadd.f32 %v4221_v2, %v4029_v17  ;;  %v4033_v50 = vadd.f32 %v4032_v20, %v9080_v12  ;;  %v9089_v58 = vld [vmem:[#allocation43_spill] sm:$0xff] }
 0x4a4   : > { %v4034_v33 = vpop.f32.mrf.mxu0  ;;  %v4227_v19 = vpop.f32.mrf.mxu1  ;;  %v3673_v17 = vadd.f32 %v9089_v58, %v8310_v6 }
 0x4a5   : > { %v4358_v27 = vpack.c.bf16 %v4316_v41, %v4314_v5  ;;  %v4317_v26 = vmax.f32 %v4222_v59, 0.0  ;;  %v4035_v38 = vadd.f32 %v4034_v33, %v9081_v40  ;;  %v4226_v32 = vadd.f32 %v4225_v62, %v4033_v50  ;;  %v9090_v41 = vld [vmem:[#allocation41_spill] sm:$0xff] }
 0x4a6   : > { %v4036_v54 = vpop.f32.mrf.mxu0  ;;  %v4229_v60 = vpop.f32.mrf.mxu1 }
 0x4a7   : > { %v4359_v25 = vpack.c.bf16 %v4317_v26, %v4315_v57  ;;  %v4037_v31 = vadd.f32 %v4036_v54, %v9083_v28  ;;  %v4228_v37 = vadd.f32 %v4227_v19, %v4035_v38  ;;  %v4318_v1 = vmax.f32 %v4226_v32, 0.0  ;;  %v9091_v57 = vld [vmem:[#allocation42_spill] sm:$0xff]  ;;  %v9092_v38 = vld [vmem:[#allocation44_spill] sm:$0xff] }
 0x4a8   : > { %v4038_v44 = vpop.f32.mrf.mxu0  ;;  %v4231_v30 = vpop.f32.mrf.mxu1  ;;  %v3866_v54 = vadd.f32 %v9092_v38, %v3673_v17 }
 0x4a9   : > { %v4230_v9 = vadd.f32 %v4229_v60, %v4037_v31  ;;  %v4039_v22 = vadd.f32 %v4038_v44, %v3846_v63  ;;  %4617 = vmatprep.mubr.bf16.mxu0 %v4359_v25  ;;  %v4319_v47 = vmax.f32 %v4228_v37, 0.0  ;;  %v9093_v63 = vld [vmem:[#allocation45_spill] sm:$0xff]  ;;  %v3683_v37 = vadd.f32 %v9094_v48, %v8310_v6 }
 0x4aa   : > { %v4042_v18 = vpop.f32.mrf.mxu0  ;;  %v4235_v45 = vpop.f32.mrf.mxu1  ;;  %4618 = vmatmul.mubr.bf16.gmra.mxu0 %v4358_v27 }
 0x4ab   : > { %v4320_v0 = vmax.f32 %v4230_v9, 0.0  ;;  %v4232_v15 = vadd.f32 %v4231_v30, %v4039_v22  ;;  %v4043_v51 = vadd.f32 %v4042_v18, %v9085_v39 }
 0x4ac   : > { %v4044_v11 = vpop.f32.mrf.mxu0  ;;  %v4237_v53 = vpop.f32.mrf.mxu1 }
 0x4ad   : > { %v4360_v35 = vpack.c.bf16 %v4320_v0, %v4318_v1  ;;  %v4321_v43 = vmax.f32 %v4232_v15, 0.0  ;;  %v4045_v46 = vadd.f32 %v4044_v11, %v9086_v8  ;;  %v4236_v24 = vadd.f32 %v4235_v45, %v4043_v51  ;;  %v9095_v45 = vld [vmem:[#allocation46_spill] sm:$0xff] }
 0x4ae   : > { %v4046_v14 = vpop.f32.mrf.mxu0  ;;  %v4239_v23 = vpop.f32.mrf.mxu1 }
 0x4af   : > { %v4361_v34 = vpack.c.bf16 %v4321_v43, %v4319_v47  ;;  %v4047_v61 = vadd.f32 %v4046_v14, %v9088_v10  ;;  %v4238_v2 = vadd.f32 %v4237_v53, %v4045_v46  ;;  %v4322_v20 = vmax.f32 %v4236_v24, 0.0  ;;  %v9096_v53 = vld [vmem:[#allocation47_spill] sm:$0xff]  ;;  %v9097_v43 = vld [vmem:[#allocation49_spill] sm:$0xff] }
 0x4b0   : > { %v4048_v4 = vpop.f32.mrf.mxu0  ;;  %v4241_v16 = vpop.f32.mrf.mxu1  ;;  %v3876_v8 = vadd.f32 %v9097_v43, %v3683_v37 }
 0x4b1   : > { %v4240_v55 = vadd.f32 %v4239_v23, %v4047_v61  ;;  %v4049_v3 = vadd.f32 %v4048_v4, %v3856_v13  ;;  %4625 = vmatprep.mubr.bf16.mxu0 %v4361_v34  ;;  %v4323_v33 = vmax.f32 %v4238_v2, 0.0  ;;  %v9098_v23 = vld [vmem:[#allocation50_spill] sm:$0xff]  ;;  %v9099_v4 = vld [vmem:[#allocation53_spill] sm:$0xff] }
 0x4b2   : > { %v4052_v49 = vpop.f32.mrf.mxu0  ;;  %v4245_v52 = vpop.f32.mrf.mxu1  ;;  %4626 = vmatmul.mubr.bf16.gmra.mxu0 %v4360_v35 }
 0x4b3   : > { %v4324_v62 = vmax.f32 %v4240_v55, 0.0  ;;  %v4242_v5 = vadd.f32 %v4241_v16, %v4049_v3  ;;  %v4053_v59 = vadd.f32 %v4052_v49, %v9090_v41  ;;  %v3693_v16 = vadd.f32 %v9099_v4, %v8310_v6  ;;  %v9100_v49 = vld [vmem:[#allocation51_spill] sm:$0xff] }
 0x4b4   : > { %v4054_v12 = vpop.f32.mrf.mxu0  ;;  %v4247_v50 = vpop.f32.mrf.mxu1 }
 0x4b5   : > { %v4362_v19 = vpack.c.bf16 %v4324_v62, %v4322_v20  ;;  %v4325_v21 = vmax.f32 %v4242_v5, 0.0  ;;  %v4055_v27 = vadd.f32 %v4054_v12, %v9091_v57  ;;  %v4246_v56 = vadd.f32 %v4245_v52, %v4053_v59  ;;  %v9101_v12 = vld [vmem:[#allocation52_spill] sm:$0xff] }
 0x4b6   : > { %v4056_v26 = vpop.f32.mrf.mxu0  ;;  %v4249_v40 = vpop.f32.mrf.mxu1 }
 0x4b7   : > { %v4363_v60 = vpack.c.bf16 %v4325_v21, %v4323_v33  ;;  %v4057_v25 = vadd.f32 %v4056_v26, %v9093_v63  ;;  %v4248_v31 = vadd.f32 %v4247_v50, %v4055_v27  ;;  %v4326_v42 = vmax.f32 %v4246_v56, 0.0  ;;  %v9102_v21 = vld [vmem:[#allocation54_spill] sm:$0xff]  ;;  %v9103_v26 = vld [vmem:[#allocation55_spill] sm:$0xff] }
 0x4b8   : > { %v4058_v32 = vpop.f32.mrf.mxu0  ;;  %v4251_v28 = vpop.f32.mrf.mxu1  ;;  %v3886_v57 = vadd.f32 %v9102_v21, %v3693_v16 }
 0x4b9   : > { %v4250_v44 = vadd.f32 %v4249_v40, %v4057_v25  ;;  %v4059_v30 = vadd.f32 %v4058_v32, %v3866_v54  ;;  %4633 = vmatprep.mubr.bf16.mxu0 %v4363_v60  ;;  %v4327_v39 = vmax.f32 %v4248_v31, 0.0 }
 0x4ba   : > { %v4062_v9 = vpop.f32.mrf.mxu0  ;;  %v4255_v22 = vpop.f32.mrf.mxu1  ;;  %4634 = vmatmul.mubr.bf16.gmra.mxu0 %v4362_v19 }
 0x4bb   : > { %v4328_v29 = vmax.f32 %v4250_v44, 0.0  ;;  %v4252_v18 = vadd.f32 %v4251_v28, %v4059_v30  ;;  %v4063_v1 = vadd.f32 %v4062_v9, %v9095_v45 }
 0x4bc   : > { %v4064_v0 = vpop.f32.mrf.mxu0  ;;  %v4257_v15 = vpop.f32.mrf.mxu1 }
 0x4bd   : > { %v4364_v51 = vpack.c.bf16 %v4328_v29, %v4326_v42  ;;  %v4329_v11 = vmax.f32 %v4252_v18, 0.0  ;;  %v4065_v36 = vadd.f32 %v4064_v0, %v9096_v53  ;;  %v4256_v14 = vadd.f32 %v4255_v22, %v4063_v1  ;;  %v8719_v42 = vld [vmem:[%s8888_s10] ss:$0 sm:$0xff] }
 0x4be   : > { %v4066_v47 = vpop.f32.mrf.mxu0  ;;  %v4259_v35 = vpop.f32.mrf.mxu1 }
 0x4bf   : > { %v4365_v46 = vpack.c.bf16 %v4329_v11, %v4327_v39  ;;  %v4067_v7 = vadd.f32 %v4066_v47, %v9098_v23  ;;  %v4258_v24 = vadd.f32 %v4257_v15, %v4065_v36  ;;  %v4330_v3 = vmax.f32 %v4256_v14, 0.0 }
 0x4c0   : > { %v4068_v13 = vpop.f32.mrf.mxu0  ;;  %v4261_v34 = vpop.f32.mrf.mxu1 }
 0x4c1   : > { %v4260_v10 = vadd.f32 %v4259_v35, %v4067_v7  ;;  %v4069_v61 = vadd.f32 %v4068_v13, %v3876_v8  ;;  %4641 = vmatprep.mubr.bf16.mxu0 %v4365_v46  ;;  %v4331_v5 = vmax.f32 %v4258_v24, 0.0 }
 0x4c2   : > { %v4072_v2 = vpop.f32.mrf.mxu0  ;;  %v4265_v55 = vpop.f32.mrf.mxu1  ;;  %4642 = vmatmul.mubr.bf16.gmra.mxu0 %v4364_v51 }
 0x4c3   : > { %v4332_v58 = vmax.f32 %v4260_v10, 0.0  ;;  %v4262_v17 = vadd.f32 %v4261_v34, %v4069_v61  ;;  %v4073_v52 = vadd.f32 %v4072_v2, %v9100_v49 }
 0x4c4   : > { %v4074_v20 = vpop.f32.mrf.mxu0  ;;  %v4267_v62 = vpop.f32.mrf.mxu1 }
 0x4c5   : > { %v4366_v41 = vpack.c.bf16 %v4332_v58, %v4330_v3  ;;  %v4333_v59 = vmax.f32 %v4262_v17, 0.0  ;;  %v4075_v50 = vadd.f32 %v4074_v20, %v9101_v12  ;;  %v4266_v27 = vadd.f32 %v4265_v55, %v4073_v52 }
 0x4c6   : > { %v4076_v33 = vpop.f32.mrf.mxu0  ;;  %v4269_v19 = vpop.f32.mrf.mxu1 }
 0x4c7   : > { %v4367_v6 = vpack.c.bf16 %v4333_v59, %v4331_v5  ;;  %v4077_v40 = vadd.f32 %v4076_v33, %v9103_v26  ;;  %v4268_v54 = vadd.f32 %v4267_v62, %v4075_v50  ;;  %v4334_v25 = vmax.f32 %v4266_v27, 0.0 }
 0x4c8   : > { %v4078_v38 = vpop.f32.mrf.mxu0  ;;  %v4271_v63 = vpop.f32.mrf.mxu1 }
 0x4c9   : > { %v4270_v60 = vadd.f32 %v4269_v19, %v4077_v40  ;;  %v4079_v56 = vadd.f32 %v4078_v38, %v3886_v57  ;;  %4649 = vmatprep.mubr.bf16.mxu0 %v4367_v6  ;;  %v4335_v31 = vmax.f32 %v4268_v54, 0.0 }
 0x4ca   : > { %4650 = vmatmul.mubr.bf16.gmra.mxu0 %v4366_v41 }
 0x4cb   : > { %v4336_v32 = vmax.f32 %v4270_v60, 0.0  ;;  %v4272_v28 = vadd.f32 %v4271_v63, %v4079_v56 }
 0x4cd   : > { %v4368_v44 = vpack.c.bf16 %v4336_v32, %v4334_v25  ;;  %v4337_v30 = vmax.f32 %v4272_v28, 0.0 }
 0x4cf   : > { %v4369_v48 = vpack.c.bf16 %v4337_v30, %v4335_v31 }
 0x4d1   : > { %4657 = vmatprep.mubr.bf16.mxu0 %v4369_v48 }
 0x4d2   : > { %4658 = vmatmul.mubr.bf16.gmra.mxu0 %v4368_v44 }
 0x51a   : > { %v5663_v37 = vpop.f32.mrf.mxu0 }
 0x51c   : > { %v5664_v9 = vpop.f32.mrf.mxu0 }
 0x51d   : > { %v5665_v22 = vadd.f32 %v5664_v9, %v5663_v37 }
 0x51e   : > { %v5666_v29 = vpop.f32.mrf.mxu0 }
 0x51f   : > { %v4540_v45 = vadd.f32 %v5665_v22, %v8719_v42 }
 0x520   : > { %v5667_v18 = vpop.f32.mrf.mxu0 }
 0x521   : > { %v5668_v1 = vadd.f32 %v5667_v18, %v5666_v29  ;;  %v4666_v51 = vmax.f32 %v4540_v45, 0.0 }
 0x522   : > { %v5669_v0 = vpop.f32.mrf.mxu0 }
 0x523   : > { %v4543_v15 = vadd.f32 %v5668_v1, %v8719_v42 }
 0x524   : > { %v5670_v39 = vpop.f32.mrf.mxu0 }
 0x525   : > { %v4667_v11 = vmax.f32 %v4543_v15, 0.0  ;;  %v5671_v53 = vadd.f32 %v5670_v39, %v5669_v0 }
 0x526   : > { %v5672_v36 = vpop.f32.mrf.mxu0 }
 0x527   : > { %v4698_v47 = vpack.c.bf16 %v4667_v11, %v4666_v51  ;;  %v4548_v43 = vadd.f32 %v5671_v53, %v8719_v42 }
 0x528   : > { %v5673_v35 = vpop.f32.mrf.mxu0 }
 0x529   : > { %v5674_v8 = vadd.f32 %v5673_v35, %v5672_v36  ;;  %5875 = vmatprep.mubr.bf16.mxu1 %v4698_v47  ;;  %v4668_v7 = vmax.f32 %v4548_v43, 0.0 }
 0x52a   : > { %v5675_v46 = vpop.f32.mrf.mxu0 }
 0x52b   : > { %v4551_v14 = vadd.f32 %v5674_v8, %v8719_v42 }
 0x52c   : > { %v5676_v23 = vpop.f32.mrf.mxu0 }
 0x52d   : > { %v4669_v13 = vmax.f32 %v4551_v14, 0.0  ;;  %v5677_v34 = vadd.f32 %v5676_v23, %v5675_v46 }
 0x52e   : > { %v5678_v24 = vpop.f32.mrf.mxu0 }
 0x52f   : > { %v4699_v10 = vpack.c.bf16 %v4669_v13, %v4668_v7  ;;  %v4556_v4 = vadd.f32 %v5677_v34, %v8719_v42 }
 0x530   : > { %v5679_v61 = vpop.f32.mrf.mxu0 }
 0x531   : > { %v5680_v16 = vadd.f32 %v5679_v61, %v5678_v24  ;;  %5876 = vmatmul.mubr.bf16.vlgmr.msra.gmra.mxu1 %v4699_v10  ;;  %v4670_v58 = vmax.f32 %v4556_v4, 0.0 }
 0x532   : > { %v5681_v2 = vpop.f32.mrf.mxu0 }
 0x533   : > { %v4559_v55 = vadd.f32 %v5680_v16, %v8719_v42 }
 0x534   : > { %v5682_v3 = vpop.f32.mrf.mxu0 }
 0x535   : > { %v4671_v17 = vmax.f32 %v4559_v55, 0.0  ;;  %v5683_v49 = vadd.f32 %v5682_v3, %v5681_v2 }
 0x536   : > { %v5684_v52 = vpop.f32.mrf.mxu0 }
 0x537   : > { %v4700_v20 = vpack.c.bf16 %v4671_v17, %v4670_v58  ;;  %v4564_v5 = vadd.f32 %v5683_v49, %v8719_v42 }
 0x538   : > { %v5685_v62 = vpop.f32.mrf.mxu0 }
 0x539   : > { %v5686_v41 = vadd.f32 %v5685_v62, %v5684_v52  ;;  %5879 = vmatprep.mubr.bf16.mxu1 %v4700_v20  ;;  %v4672_v33 = vmax.f32 %v4564_v5, 0.0 }
 0x53a   : > { %v5687_v59 = vpop.f32.mrf.mxu0 }
 0x53b   : > { %v4567_v12 = vadd.f32 %v5686_v41, %v8719_v42 }
 0x53c   : > { %v5688_v50 = vpop.f32.mrf.mxu0 }
 0x53d   : > { %v4673_v19 = vmax.f32 %v4567_v12, 0.0  ;;  %v5689_v21 = vadd.f32 %v5688_v50, %v5687_v59 }
 0x53e   : > { %v5690_v57 = vpop.f32.mrf.mxu0 }
 0x53f   : > { %v4701_v6 = vpack.c.bf16 %v4673_v19, %v4672_v33  ;;  %v4572_v26 = vadd.f32 %v5689_v21, %v8719_v42 }
 0x540   : > { %v5691_v27 = vpop.f32.mrf.mxu0 }
 0x541   : > { %v5692_v40 = vadd.f32 %v5691_v27, %v5690_v57  ;;  %5880 = vmatmul.mubr.bf16.gmra.mxu1 %v4701_v6  ;;  %v4674_v56 = vmax.f32 %v4572_v26, 0.0 }
 0x542   : > { %v5693_v38 = vpop.f32.mrf.mxu0 }
 0x543   : > { %v4575_v54 = vadd.f32 %v5692_v40, %v8719_v42 }
 0x544   : > { %v5694_v60 = vpop.f32.mrf.mxu0 }
 0x545   : > { %v4675_v63 = vmax.f32 %v4575_v54, 0.0  ;;  %v5695_v25 = vadd.f32 %v5694_v60, %v5693_v38 }
 0x546   : > { %v5696_v32 = vpop.f32.mrf.mxu0 }
 0x547   : > { %v4702_v28 = vpack.c.bf16 %v4675_v63, %v4674_v56  ;;  %v4580_v44 = vadd.f32 %v5695_v25, %v8719_v42 }
 0x548   : > { %v5697_v31 = vpop.f32.mrf.mxu0 }
 0x549   : > { %v5698_v30 = vadd.f32 %v5697_v31, %v5696_v32  ;;  %5883 = vmatprep.mubr.bf16.mxu1 %v4702_v28  ;;  %v4676_v22 = vmax.f32 %v4580_v44, 0.0 }
 0x54a   : > { %v5699_v48 = vpop.f32.mrf.mxu0 }
 0x54b   : > { %v4583_v37 = vadd.f32 %v5698_v30, %v8719_v42 }
 0x54c   : > { %v5700_v9 = vpop.f32.mrf.mxu0 }
 0x54d   : > { %v4677_v29 = vmax.f32 %v4583_v37, 0.0  ;;  %v5701_v18 = vadd.f32 %v5700_v9, %v5699_v48 }
 0x54e   : > { %v5702_v45 = vpop.f32.mrf.mxu0 }
 0x54f   : > { %v4703_v1 = vpack.c.bf16 %v4677_v29, %v4676_v22  ;;  %v4588_v15 = vadd.f32 %v5701_v18, %v8719_v42 }
 0x550   : > { %v5703_v0 = vpop.f32.mrf.mxu0 }
 0x551   : > { %v5704_v39 = vadd.f32 %v5703_v0, %v5702_v45  ;;  %5884 = vmatmul.mubr.bf16.gmra.mxu1 %v4703_v1  ;;  %v4678_v36 = vmax.f32 %v4588_v15, 0.0 }
 0x552   : > { %v5705_v51 = vpop.f32.mrf.mxu0 }
 0x553   : > { %v4591_v11 = vadd.f32 %v5704_v39, %v8719_v42 }
 0x554   : > { %v5706_v53 = vpop.f32.mrf.mxu0 }
 0x555   : > { %v4679_v47 = vmax.f32 %v4591_v11, 0.0  ;;  %v5707_v35 = vadd.f32 %v5706_v53, %v5705_v51 }
 0x556   : > { %v5708_v43 = vpop.f32.mrf.mxu0 }
 0x557   : > { %v4704_v8 = vpack.c.bf16 %v4679_v47, %v4678_v36  ;;  %v4596_v14 = vadd.f32 %v5707_v35, %v8719_v42 }
 0x558   : > { %v5709_v46 = vpop.f32.mrf.mxu0 }
 0x559   : > { %v5710_v23 = vadd.f32 %v5709_v46, %v5708_v43  ;;  %5887 = vmatprep.mubr.bf16.mxu1 %v4704_v8  ;;  %v4680_v24 = vmax.f32 %v4596_v14, 0.0 }
 0x55a   : > { %v5711_v7 = vpop.f32.mrf.mxu0 }
 0x55b   : > { %v4599_v13 = vadd.f32 %v5710_v23, %v8719_v42 }
 0x55c   : > { %v5712_v34 = vpop.f32.mrf.mxu0 }
 0x55d   : > { %v4681_v10 = vmax.f32 %v4599_v13, 0.0  ;;  %v5713_v61 = vadd.f32 %v5712_v34, %v5711_v7 }
 0x55e   : > { %v5714_v4 = vpop.f32.mrf.mxu0 }
 0x55f   : > { %v4705_v16 = vpack.c.bf16 %v4681_v10, %v4680_v24  ;;  %v4604_v55 = vadd.f32 %v5713_v61, %v8719_v42 }
 0x560   : > { %v5715_v2 = vpop.f32.mrf.mxu0 }
 0x561   : > { %v5716_v3 = vadd.f32 %v5715_v2, %v5714_v4  ;;  %5888 = vmatmul.mubr.bf16.gmra.mxu1 %v4705_v16  ;;  %v4682_v52 = vmax.f32 %v4604_v55, 0.0 }
 0x562   : > { %v5717_v58 = vpop.f32.mrf.mxu0 }
 0x563   : > { %v4607_v17 = vadd.f32 %v5716_v3, %v8719_v42 }
 0x564   : > { %v5718_v49 = vpop.f32.mrf.mxu0 }
 0x565   : > { %v4683_v20 = vmax.f32 %v4607_v17, 0.0  ;;  %v5719_v62 = vadd.f32 %v5718_v49, %v5717_v58 }
 0x566   : > { %v5720_v5 = vpop.f32.mrf.mxu0 }
 0x567   : > { %v4706_v41 = vpack.c.bf16 %v4683_v20, %v4682_v52  ;;  %v4612_v12 = vadd.f32 %v5719_v62, %v8719_v42 }
 0x568   : > { %v5721_v59 = vpop.f32.mrf.mxu0 }
 0x569   : > { %v5722_v50 = vadd.f32 %v5721_v59, %v5720_v5  ;;  %5891 = vmatprep.mubr.bf16.mxu1 %v4706_v41  ;;  %v4684_v57 = vmax.f32 %v4612_v12, 0.0 }
 0x56a   : > { %v5723_v33 = vpop.f32.mrf.mxu0 }
 0x56b   : > { %v4615_v19 = vadd.f32 %v5722_v50, %v8719_v42 }
 0x56c   : > { %v5724_v21 = vpop.f32.mrf.mxu0 }
 0x56d   : > { %v4685_v6 = vmax.f32 %v4615_v19, 0.0  ;;  %v5725_v27 = vadd.f32 %v5724_v21, %v5723_v33 }
 0x56e   : > { %v5726_v26 = vpop.f32.mrf.mxu0 }
 0x56f   : > { %v4707_v40 = vpack.c.bf16 %v4685_v6, %v4684_v57  ;;  %v4620_v54 = vadd.f32 %v5725_v27, %v8719_v42 }
 0x570   : > { %v5727_v38 = vpop.f32.mrf.mxu0 }
 0x571   : > { %v5728_v60 = vadd.f32 %v5727_v38, %v5726_v26  ;;  %5892 = vmatmul.mubr.bf16.gmra.mxu1 %v4707_v40  ;;  %v4686_v32 = vmax.f32 %v4620_v54, 0.0  ;;  %v8756_v40 = vld [vmem:[%s8890_s12] ss:$0 sm:$0xff] }
 0x572   : > { %v5729_v56 = vpop.f32.mrf.mxu0 }
 0x573   : > { %v4623_v63 = vadd.f32 %v5728_v60, %v8719_v42 }
 0x574   : > { %v5730_v25 = vpop.f32.mrf.mxu0 }
 0x575   : > { %v4687_v28 = vmax.f32 %v4623_v63, 0.0  ;;  %v5731_v31 = vadd.f32 %v5730_v25, %v5729_v56 }
 0x576   : > { %v5732_v44 = vpop.f32.mrf.mxu0 }
 0x577   : > { %v4708_v30 = vpack.c.bf16 %v4687_v28, %v4686_v32  ;;  %v4628_v37 = vadd.f32 %v5731_v31, %v8719_v42 }
 0x578   : > { %v5733_v48 = vpop.f32.mrf.mxu0 }
 0x579   : > { %v5734_v9 = vadd.f32 %v5733_v48, %v5732_v44  ;;  %5895 = vmatprep.mubr.bf16.mxu1 %v4708_v30  ;;  %v4688_v45 = vmax.f32 %v4628_v37, 0.0 }
 0x57a   : > { %v5735_v22 = vpop.f32.mrf.mxu0 }
 0x57b   : > { %v4631_v29 = vadd.f32 %v5734_v9, %v8719_v42 }
 0x57c   : > { %v5736_v18 = vpop.f32.mrf.mxu0 }
 0x57d   : > { %v4689_v1 = vmax.f32 %v4631_v29, 0.0  ;;  %v5737_v0 = vadd.f32 %v5736_v18, %v5735_v22 }
 0x57e   : > { %v5738_v15 = vpop.f32.mrf.mxu0 }
 0x57f   : > { %v4709_v39 = vpack.c.bf16 %v4689_v1, %v4688_v45  ;;  %v4636_v11 = vadd.f32 %v5737_v0, %v8719_v42 }
 0x580   : > { %v5739_v51 = vpop.f32.mrf.mxu0 }
 0x581   : > { %v5740_v53 = vadd.f32 %v5739_v51, %v5738_v15  ;;  %5896 = vmatmul.mubr.bf16.gmra.mxu1 %v4709_v39  ;;  %v4690_v43 = vmax.f32 %v4636_v11, 0.0 }
 0x582   : > { %v5741_v36 = vpop.f32.mrf.mxu0 }
 0x583   : > { %v4639_v47 = vadd.f32 %v5740_v53, %v8719_v42 }
 0x584   : > { %v5742_v35 = vpop.f32.mrf.mxu0 }
 0x585   : > { %v4691_v8 = vmax.f32 %v4639_v47, 0.0  ;;  %v5743_v46 = vadd.f32 %v5742_v35, %v5741_v36 }
 0x586   : > { %v5744_v14 = vpop.f32.mrf.mxu0 }
 0x587   : > { %v4710_v23 = vpack.c.bf16 %v4691_v8, %v4690_v43  ;;  %v4644_v13 = vadd.f32 %v5743_v46, %v8719_v42 }
 0x588   : > { %v5745_v7 = vpop.f32.mrf.mxu0 }
 0x589   : > { %v5746_v34 = vadd.f32 %v5745_v7, %v5744_v14  ;;  %5899 = vmatprep.mubr.bf16.mxu1 %v4710_v23  ;;  %v4692_v4 = vmax.f32 %v4644_v13, 0.0 }
 0x58a   : > { %v5747_v24 = vpop.f32.mrf.mxu0 }
 0x58b   : > { %v4647_v10 = vadd.f32 %v5746_v34, %v8719_v42 }
 0x58c   : > { %v5748_v61 = vpop.f32.mrf.mxu0 }
 0x58d   : > { %v4693_v16 = vmax.f32 %v4647_v10, 0.0  ;;  %v5749_v2 = vadd.f32 %v5748_v61, %v5747_v24 }
 0x58e   : > { %v5750_v55 = vpop.f32.mrf.mxu0 }
 0x58f   : > { %v4711_v3 = vpack.c.bf16 %v4693_v16, %v4692_v4  ;;  %v4652_v17 = vadd.f32 %v5749_v2, %v8719_v42 }
 0x590   : > { %v5751_v58 = vpop.f32.mrf.mxu0 }
 0x591   : > { %v5752_v49 = vadd.f32 %v5751_v58, %v5750_v55  ;;  %5900 = vmatmul.mubr.bf16.gmra.mxu1 %v4711_v3  ;;  %v4694_v5 = vmax.f32 %v4652_v17, 0.0 }
 0x592   : > { %v5753_v52 = vpop.f32.mrf.mxu0 }
 0x593   : > { %v4655_v20 = vadd.f32 %v5752_v49, %v8719_v42 }
 0x594   : > { %v5754_v62 = vpop.f32.mrf.mxu0 }
 0x595   : > { %v4695_v41 = vmax.f32 %v4655_v20, 0.0  ;;  %v5755_v59 = vadd.f32 %v5754_v62, %v5753_v52 }
 0x596   : > { %v5756_v12 = vpop.f32.mrf.mxu0 }
 0x597   : > { %v4712_v50 = vpack.c.bf16 %v4695_v41, %v4694_v5  ;;  %v4660_v19 = vadd.f32 %v5755_v59, %v8719_v42 }
 0x598   : > { %v5757_v33 = vpop.f32.mrf.mxu0 }
 0x599   : > { %v5758_v21 = vadd.f32 %v5757_v33, %v5756_v12  ;;  %5903 = vmatprep.mubr.bf16.mxu1 %v4712_v50  ;;  %v4696_v6 = vmax.f32 %v4660_v19, 0.0 }
 0x59b   : > { %v4663_v57 = vadd.f32 %v5758_v21, %v8719_v42 }
 0x59d   : > { %v4697_v27 = vmax.f32 %v4663_v57, 0.0 }
 0x59f   : > { %v4713_v26 = vpack.c.bf16 %v4697_v27, %v4696_v6 }
 0x5a1   : > { %5904 = vmatmul.mubr.bf16.gmra.mxu1 %v4713_v26 }
 0x5f1   : > { %v5877_v38 = vpop.f32.mrf.mxu1 }
 0x5f2   : > { %v4828_v54 = vadd.f32 %v5877_v38, %v8756_v40 }
 0x5f3   : > { %v4819_v60 = vpop.f32.mrf.mxu1 }
 0x5f4   : > { %v5573_v56 = vmul.f32 -1.442695, %v4828_v54  ;;  %v4820_v63 = vadd.f32 %v8756_v40, %v4819_v60 }
 0x5f5   : > { %v5878_v25 = vpop.f32.mrf.mxu1 }
 0x5f6   : > { %6230 = vpow2.f32 %v5573_v56  ;;  %v5571_v32 = vmul.f32 -1.442695, %v4820_v63  ;;  %v4831_v42 = vadd.f32 %v5878_v25, %v8756_v40 }
 0x5f7   : > { %v4822_v28 = vpop.f32.mrf.mxu1 }
 0x5f8   : > { %6232 = vpow2.f32 %v5571_v32  ;;  %v5574_v31 = vmul.f32 -1.442695, %v4831_v42  ;;  %v4823_v44 = vadd.f32 %v8756_v40, %v4822_v28 }
 0x5fa   : > { %6234 = vpow2.f32 %v5574_v31  ;;  %v5572_v30 = vmul.f32 -1.442695, %v4823_v44 }
 0x5fc   : > { %6236 = vpow2.f32 %v5572_v30 }
 0x601   : > { %v5881_v48 = vpop.f32.mrf.mxu1 }
 0x602   : > { %v4844_v37 = vadd.f32 %v5881_v48, %v8756_v40 }
 0x603   : > { %v6231_v9 = vpop.eup %6230  ;;  %v4835_v22 = vpop.f32.mrf.mxu1 }
 0x604   : > { %v5044_v29 = vadd.f32 1.0, %v6231_v9  ;;  %v5577_v18 = vmul.f32 -1.442695, %v4844_v37  ;;  %v4836_v45 = vadd.f32 %v8756_v40, %v4835_v22 }
 0x605   : > { %v6233_v1 = vpop.eup %6232  ;;  %v5882_v0 = vpop.f32.mrf.mxu1 }
 0x606   : > { %6238 = vrcp.f32 %v5044_v29  ;;  %v5042_v15 = vadd.f32 1.0, %v6233_v1  ;;  %v5575_v39 = vmul.f32 -1.442695, %v4836_v45  ;;  %v4847_v51 = vadd.f32 %v5882_v0, %v8756_v40 }
 0x607   : > { %v6235_v11 = vpop.eup %6234  ;;  %6240 = vpow2.f32 %v5577_v18  ;;  %v4838_v53 = vpop.f32.mrf.mxu1 }
 0x608   : > { %6242 = vrcp.f32 %v5042_v15  ;;  %v5045_v36 = vadd.f32 1.0, %v6235_v11  ;;  %v5578_v47 = vmul.f32 -1.442695, %v4847_v51  ;;  %v4839_v35 = vadd.f32 %v8756_v40, %v4838_v53 }
 0x609   : > { %v6237_v43 = vpop.eup %6236  ;;  %6244 = vpow2.f32 %v5575_v39 }
 0x60a   : > { %6246 = vrcp.f32 %v5045_v36  ;;  %v5043_v8 = vadd.f32 1.0, %v6237_v43  ;;  %v5576_v46 = vmul.f32 -1.442695, %v4839_v35 }
 0x60b   : > { %6248 = vpow2.f32 %v5578_v47 }
 0x60c   : > { %6250 = vrcp.f32 %v5043_v8 }
 0x60d   : > { %6252 = vpow2.f32 %v5576_v46 }
 0x611   : > { %v5885_v14 = vpop.f32.mrf.mxu1 }
 0x612   : > { %v4860_v23 = vadd.f32 %v5885_v14, %v8756_v40 }
 0x613   : > { %v6239_v7 = vpop.eup %6238  ;;  %v4851_v13 = vpop.f32.mrf.mxu1 }
 0x614   : > { %v6241_v34 = vpop.eup %6240  ;;  %5140 = vst [vmem:[%s8770_s14 + $0x10] sm:$0xff] %v6239_v7  ;;  %v5581_v24 = vmul.f32 -1.442695, %v4860_v23  ;;  %v4852_v10 = vadd.f32 %v8756_v40, %v4851_v13 }
 0x615   : > { %v6243_v61 = vpop.eup %6242  ;;  %v5048_v4 = vadd.f32 1.0, %v6241_v34  ;;  %v5886_v16 = vpop.f32.mrf.mxu1 }
 0x616   : > { %v6245_v2 = vpop.eup %6244  ;;  %5138 = vst [vmem:[%s8770_s14] sm:$0xff] %v6243_v61  ;;  %6254 = vpow2.f32 %v5581_v24  ;;  %v5579_v55 = vmul.f32 -1.442695, %v4852_v10  ;;  %v4863_v3 = vadd.f32 %v5886_v16, %v8756_v40 }
 0x617   : > { %v6247_v58 = vpop.eup %6246  ;;  %6256 = vrcp.f32 %v5048_v4  ;;  %v5046_v17 = vadd.f32 1.0, %v6245_v2  ;;  %v4854_v49 = vpop.f32.mrf.mxu1 }
 0x618   : > { %v6249_v52 = vpop.eup %6248  ;;  %5141 = vst [vmem:[%s8770_s14 + $0x18] sm:$0xff] %v6247_v58  ;;  %6258 = vpow2.f32 %v5579_v55  ;;  %v5582_v20 = vmul.f32 -1.442695, %v4863_v3  ;;  %v4855_v62 = vadd.f32 %v8756_v40, %v4854_v49 }
 0x619   : > { %v6251_v5 = vpop.eup %6250  ;;  %6260 = vrcp.f32 %v5046_v17  ;;  %v5049_v41 = vadd.f32 1.0, %v6249_v52 }
 0x61a   : > { %v6253_v59 = vpop.eup %6252  ;;  %5139 = vst [vmem:[%s8770_s14 + $0x8] sm:$0xff] %v6251_v5  ;;  %6262 = vpow2.f32 %v5582_v20  ;;  %v5580_v12 = vmul.f32 -1.442695, %v4855_v62 }
 0x61b   : > { %6264 = vrcp.f32 %v5049_v41  ;;  %v5047_v50 = vadd.f32 1.0, %v6253_v59 }
 0x61c   : > { %6266 = vpow2.f32 %v5580_v12 }
 0x61d   : > { %6268 = vrcp.f32 %v5047_v50 }
 0x621   : > { %v5889_v33 = vpop.f32.mrf.mxu1 }
 0x622   : > { %v4876_v19 = vadd.f32 %v5889_v33, %v8756_v40 }
 0x623   : > { %v6255_v21 = vpop.eup %6254  ;;  %v4867_v57 = vpop.f32.mrf.mxu1 }
 0x624   : > { %v6257_v6 = vpop.eup %6256  ;;  %v5052_v27 = vadd.f32 1.0, %v6255_v21  ;;  %v5585_v26 = vmul.f32 -1.442695, %v4876_v19  ;;  %v4868_v38 = vadd.f32 %v8756_v40, %v4867_v57 }
 0x625   : > { %v6259_v54 = vpop.eup %6258  ;;  %5144 = vst [vmem:[%s8770_s14 + $0x30] sm:$0xff] %v6257_v6  ;;  %v5890_v60 = vpop.f32.mrf.mxu1 }
 0x626   : > { %v6261_v56 = vpop.eup %6260  ;;  %6270 = vrcp.f32 %v5052_v27  ;;  %v5050_v63 = vadd.f32 1.0, %v6259_v54  ;;  %v5583_v25 = vmul.f32 -1.442695, %v4868_v38  ;;  %v4879_v32 = vadd.f32 %v5890_v60, %v8756_v40 }
 0x627   : > { %v6263_v42 = vpop.eup %6262  ;;  %5142 = vst [vmem:[%s8770_s14 + $0x20] sm:$0xff] %v6261_v56  ;;  %6272 = vpow2.f32 %v5585_v26  ;;  %v4870_v28 = vpop.f32.mrf.mxu1 }
 0x628   : > { %v6265_v31 = vpop.eup %6264  ;;  %6274 = vrcp.f32 %v5050_v63  ;;  %v5053_v44 = vadd.f32 1.0, %v6263_v42  ;;  %v5586_v30 = vmul.f32 -1.442695, %v4879_v32  ;;  %v4871_v48 = vadd.f32 %v8756_v40, %v4870_v28 }
 0x629   : > { %v6267_v37 = vpop.eup %6266  ;;  %5145 = vst [vmem:[%s8770_s14 + $0x38] sm:$0xff] %v6265_v31  ;;  %6276 = vpow2.f32 %v5583_v25 }
 0x62a   : > { %v6269_v9 = vpop.eup %6268  ;;  %6278 = vrcp.f32 %v5053_v44  ;;  %v5051_v22 = vadd.f32 1.0, %v6267_v37  ;;  %v5584_v29 = vmul.f32 -1.442695, %v4871_v48 }
 0x62b   : > { %5143 = vst [vmem:[%s8770_s14 + $0x28] sm:$0xff] %v6269_v9  ;;  %6280 = vpow2.f32 %v5586_v30 }
 0x62c   : > { %6282 = vrcp.f32 %v5051_v22 }
 0x62d   : > { %6284 = vpow2.f32 %v5584_v29 }
 0x631   : > { %v5893_v18 = vpop.f32.mrf.mxu1 }
 0x632   : > { %v4892_v45 = vadd.f32 %v5893_v18, %v8756_v40 }
 0x633   : > { %v6271_v1 = vpop.eup %6270  ;;  %v4883_v0 = vpop.f32.mrf.mxu1 }
 0x634   : > { %v6273_v15 = vpop.eup %6272  ;;  %5148 = vst [vmem:[%s8770_s14 + $0x50] sm:$0xff] %v6271_v1  ;;  %v5589_v39 = vmul.f32 -1.442695, %v4892_v45  ;;  %v4884_v51 = vadd.f32 %v8756_v40, %v4883_v0 }
 0x635   : > { %v6275_v11 = vpop.eup %6274  ;;  %v5056_v53 = vadd.f32 1.0, %v6273_v15  ;;  %v5894_v36 = vpop.f32.mrf.mxu1 }
 0x636   : > { %v6277_v47 = vpop.eup %6276  ;;  %5146 = vst [vmem:[%s8770_s14 + $0x40] sm:$0xff] %v6275_v11  ;;  %6286 = vpow2.f32 %v5589_v39  ;;  %v5587_v35 = vmul.f32 -1.442695, %v4884_v51  ;;  %v4895_v43 = vadd.f32 %v5894_v36, %v8756_v40 }
 0x637   : > { %v6279_v8 = vpop.eup %6278  ;;  %6288 = vrcp.f32 %v5056_v53  ;;  %v5054_v46 = vadd.f32 1.0, %v6277_v47  ;;  %v4886_v14 = vpop.f32.mrf.mxu1 }
 0x638   : > { %v6281_v23 = vpop.eup %6280  ;;  %5149 = vst [vmem:[%s8770_s14 + $0x58] sm:$0xff] %v6279_v8  ;;  %6290 = vpow2.f32 %v5587_v35  ;;  %v5590_v7 = vmul.f32 -1.442695, %v4895_v43  ;;  %v4887_v13 = vadd.f32 %v8756_v40, %v4886_v14 }
 0x639   : > { %v6283_v34 = vpop.eup %6282  ;;  %6292 = vrcp.f32 %v5054_v46  ;;  %v5057_v24 = vadd.f32 1.0, %v6281_v23 }
 0x63a   : > { %v6285_v10 = vpop.eup %6284  ;;  %5147 = vst [vmem:[%s8770_s14 + $0x48] sm:$0xff] %v6283_v34  ;;  %6294 = vpow2.f32 %v5590_v7  ;;  %v5588_v61 = vmul.f32 -1.442695, %v4887_v13 }
 0x63b   : > { %6296 = vrcp.f32 %v5057_v24  ;;  %v5055_v4 = vadd.f32 1.0, %v6285_v10 }
 0x63c   : > { %6298 = vpow2.f32 %v5588_v61 }
 0x63d   : > { %6300 = vrcp.f32 %v5055_v4 }
 0x641   : > { %v5897_v16 = vpop.f32.mrf.mxu1 }
 0x642   : > { %v4908_v2 = vadd.f32 %v5897_v16, %v8756_v40 }
 0x643   : > { %v6287_v55 = vpop.eup %6286  ;;  %v4899_v3 = vpop.f32.mrf.mxu1 }
 0x644   : > { %v6289_v58 = vpop.eup %6288  ;;  %v5060_v17 = vadd.f32 1.0, %v6287_v55  ;;  %v5593_v49 = vmul.f32 -1.442695, %v4908_v2  ;;  %v4900_v52 = vadd.f32 %v8756_v40, %v4899_v3 }
 0x645   : > { %v6291_v20 = vpop.eup %6290  ;;  %5152 = vst [vmem:[%s8770_s14 + $0x70] sm:$0xff] %v6289_v58  ;;  %v5898_v62 = vpop.f32.mrf.mxu1 }
 0x646   : > { %v6293_v5 = vpop.eup %6292  ;;  %6302 = vrcp.f32 %v5060_v17  ;;  %v5058_v41 = vadd.f32 1.0, %v6291_v20  ;;  %v5591_v59 = vmul.f32 -1.442695, %v4900_v52  ;;  %v4911_v12 = vadd.f32 %v5898_v62, %v8756_v40 }
 0x647   : > { %v6295_v50 = vpop.eup %6294  ;;  %5150 = vst [vmem:[%s8770_s14 + $0x60] sm:$0xff] %v6293_v5  ;;  %6304 = vpow2.f32 %v5593_v49  ;;  %v4902_v33 = vpop.f32.mrf.mxu1 }
 0x648   : > { %v6297_v19 = vpop.eup %6296  ;;  %6306 = vrcp.f32 %v5058_v41  ;;  %v5061_v21 = vadd.f32 1.0, %v6295_v50  ;;  %v5594_v57 = vmul.f32 -1.442695, %v4911_v12  ;;  %v4903_v6 = vadd.f32 %v8756_v40, %v4902_v33 }
 0x649   : > { %v6299_v27 = vpop.eup %6298  ;;  %5153 = vst [vmem:[%s8770_s14 + $0x78] sm:$0xff] %v6297_v19  ;;  %6308 = vpow2.f32 %v5591_v59 }
 0x64a   : > { %v6301_v26 = vpop.eup %6300  ;;  %6310 = vrcp.f32 %v5061_v21  ;;  %v5059_v38 = vadd.f32 1.0, %v6299_v27  ;;  %v5592_v54 = vmul.f32 -1.442695, %v4903_v6 }
 0x64b   : > { %5151 = vst [vmem:[%s8770_s14 + $0x68] sm:$0xff] %v6301_v26  ;;  %6312 = vpow2.f32 %v5594_v57 }
 0x64c   : > { %6314 = vrcp.f32 %v5059_v38 }
 0x64d   : > { %6316 = vpow2.f32 %v5592_v54 }
 0x651   : > { %v5901_v60 = vpop.f32.mrf.mxu1 }
 0x652   : > { %v4924_v56 = vadd.f32 %v5901_v60, %v8756_v40 }
 0x653   : > { %v6303_v63 = vpop.eup %6302  ;;  %v4915_v25 = vpop.f32.mrf.mxu1 }
 0x654   : > { %v6305_v32 = vpop.eup %6304  ;;  %5156 = vst [vmem:[%s8770_s14 + $0x90] sm:$0xff] %v6303_v63  ;;  %v5597_v42 = vmul.f32 -1.442695, %v4924_v56  ;;  %v4916_v28 = vadd.f32 %v8756_v40, %v4915_v25 }
 0x655   : > { %v6307_v31 = vpop.eup %6306  ;;  %v5064_v44 = vadd.f32 1.0, %v6305_v32  ;;  %v5902_v30 = vpop.f32.mrf.mxu1 }
 0x656   : > { %v6309_v48 = vpop.eup %6308  ;;  %5154 = vst [vmem:[%s8770_s14 + $0x80] sm:$0xff] %v6307_v31  ;;  %6318 = vpow2.f32 %v5597_v42  ;;  %v5595_v37 = vmul.f32 -1.442695, %v4916_v28  ;;  %v4927_v9 = vadd.f32 %v5902_v30, %v8756_v40 }
 0x657   : > { %v6311_v22 = vpop.eup %6310  ;;  %6320 = vrcp.f32 %v5064_v44  ;;  %v5062_v29 = vadd.f32 1.0, %v6309_v48  ;;  %v4918_v18 = vpop.f32.mrf.mxu1 }
 0x658   : > { %v6313_v45 = vpop.eup %6312  ;;  %5157 = vst [vmem:[%s8770_s14 + $0x98] sm:$0xff] %v6311_v22  ;;  %6322 = vpow2.f32 %v5595_v37  ;;  %v5598_v1 = vmul.f32 -1.442695, %v4927_v9  ;;  %v4919_v0 = vadd.f32 %v8756_v40, %v4918_v18 }
 0x659   : > { %v6315_v15 = vpop.eup %6314  ;;  %6324 = vrcp.f32 %v5062_v29  ;;  %v5065_v39 = vadd.f32 1.0, %v6313_v45 }
 0x65a   : > { %v6317_v51 = vpop.eup %6316  ;;  %5155 = vst [vmem:[%s8770_s14 + $0x88] sm:$0xff] %v6315_v15  ;;  %6326 = vpow2.f32 %v5598_v1  ;;  %v5596_v11 = vmul.f32 -1.442695, %v4919_v0 }
 0x65b   : > { %6328 = vrcp.f32 %v5065_v39  ;;  %v5063_v53 = vadd.f32 1.0, %v6317_v51 }
 0x65c   : > { %6330 = vpow2.f32 %v5596_v11 }
 0x65d   : > { %6332 = vrcp.f32 %v5063_v53 }
 0x661   : > { %v5905_v36 = vpop.f32.mrf.mxu1 }
 0x662   : > { %v4940_v47 = vadd.f32 %v5905_v36, %v8756_v40 }
 0x663   : > { %v6319_v35 = vpop.eup %6318  ;;  %v4931_v43 = vpop.f32.mrf.mxu1 }
 0x664   : > { %v6321_v8 = vpop.eup %6320  ;;  %v5068_v46 = vadd.f32 1.0, %v6319_v35  ;;  %v5601_v14 = vmul.f32 -1.442695, %v4940_v47  ;;  %v4932_v23 = vadd.f32 %v8756_v40, %v4931_v43 }
 0x665   : > { %v6323_v7 = vpop.eup %6322  ;;  %5160 = vst [vmem:[%s8770_s14 + $0xb0] sm:$0xff] %v6321_v8  ;;  %v5906_v13 = vpop.f32.mrf.mxu1 }
 0x666   : > { %v6325_v34 = vpop.eup %6324  ;;  %6334 = vrcp.f32 %v5068_v46  ;;  %v5066_v24 = vadd.f32 1.0, %v6323_v7  ;;  %v5599_v10 = vmul.f32 -1.442695, %v4932_v23  ;;  %v4943_v61 = vadd.f32 %v5906_v13, %v8756_v40 }
 0x667   : > { %v6327_v4 = vpop.eup %6326  ;;  %5158 = vst [vmem:[%s8770_s14 + $0xa0] sm:$0xff] %v6325_v34  ;;  %6336 = vpow2.f32 %v5601_v14  ;;  %v4934_v16 = vpop.f32.mrf.mxu1 }
 0x668   : > { %v6329_v2 = vpop.eup %6328  ;;  %6338 = vrcp.f32 %v5066_v24  ;;  %v5069_v55 = vadd.f32 1.0, %v6327_v4  ;;  %v5602_v3 = vmul.f32 -1.442695, %v4943_v61  ;;  %v4935_v58 = vadd.f32 %v8756_v40, %v4934_v16 }
 0x669   : > { %v6331_v17 = vpop.eup %6330  ;;  %5161 = vst [vmem:[%s8770_s14 + $0xb8] sm:$0xff] %v6329_v2  ;;  %6340 = vpow2.f32 %v5599_v10 }
 0x66a   : > { %v6333_v49 = vpop.eup %6332  ;;  %6342 = vrcp.f32 %v5069_v55  ;;  %v5067_v52 = vadd.f32 1.0, %v6331_v17  ;;  %v5600_v20 = vmul.f32 -1.442695, %v4935_v58 }
 0x66b   : > { %5159 = vst [vmem:[%s8770_s14 + $0xa8] sm:$0xff] %v6333_v49  ;;  %6344 = vpow2.f32 %v5602_v3 }
 0x66c   : > { %6346 = vrcp.f32 %v5067_v52 }
 0x66d   : > { %6348 = vpow2.f32 %v5600_v20 }
 0x673   : > { %v6335_v62 = vpop.eup %6334 }
 0x674   : > { %v6337_v5 = vpop.eup %6336  ;;  %5164 = vst [vmem:[%s8770_s14 + $0xd0] sm:$0xff] %v6335_v62 }
 0x675   : > { %v6339_v41 = vpop.eup %6338  ;;  %v5072_v59 = vadd.f32 1.0, %v6337_v5 }
 0x676   : > { %v6341_v40 = vpop.eup %6340  ;;  %5162 = vst [vmem:[%s8770_s14 + $0xc0] sm:$0xff] %v6339_v41 }
 0x677   : > { %v6343_v12 = vpop.eup %6342  ;;  %6350 = vrcp.f32 %v5072_v59  ;;  %v5070_v50 = vadd.f32 1.0, %v6341_v40 }
 0x678   : > { %v6345_v33 = vpop.eup %6344  ;;  %5165 = vst [vmem:[%s8770_s14 + $0xd8] sm:$0xff] %v6343_v12 }
 0x679   : > { %v6347_v19 = vpop.eup %6346  ;;  %6352 = vrcp.f32 %v5070_v50  ;;  %v5073_v21 = vadd.f32 1.0, %v6345_v33 }
 0x67a   : > { %v6349_v57 = vpop.eup %6348  ;;  %5163 = vst [vmem:[%s8770_s14 + $0xc8] sm:$0xff] %v6347_v19 }
 0x67b   : > { %6354 = vrcp.f32 %v5073_v21  ;;  %v5071_v6 = vadd.f32 1.0, %v6349_v57 }
 0x67d   : > { %6356 = vrcp.f32 %v5071_v6 }
 0x684   : > { %v6351_v27 = vpop.eup %6350 }
 0x685   : > { %5168 = vst [vmem:[%s8770_s14 + $0xf0] sm:$0xff] %v6351_v27 }
 0x686   : > { %v6353_v26 = vpop.eup %6352 }
 0x687   : > { %5166 = vst [vmem:[%s8770_s14 + $0xe0] sm:$0xff] %v6353_v26 }
 0x688   : > { %v6355_v38 = vpop.eup %6354 }
 0x689   : > { %5169 = vst [vmem:[%s8770_s14 + $0xf8] sm:$0xff] %v6355_v38 }
 0x68a   : > { %v6357_v54 = vpop.eup %6356 }
 0x68b   : > { %5167 = vst [vmem:[%s8770_s14 + $0xe8] sm:$0xff] %v6357_v54 }
 0x68c   : > { %6502 = shalt.err (!%p6499_p13)
}
 0x68d   : > { %s6503_s24 = scalar_lea.hbm %s8830_s15, 4096  ;;  %s6507_s17 = scalar_lea.hbm %s8891_s13, 8192 }
 0x68e   : > { %p6504_p1 = scmp.ne.s32.totalorder %s8830_s15, %s6503_s24  ;;  %p6508_p3 = scmp.lt.s32.totalorder %s8830_s15, %s8891_s13 }
 0x68f   : > { %p6509_p12 = scmp.lt.s32.totalorder %s6507_s17, %s6503_s24 }
 0x690   : > { %p6505_p6 = pnand %p6504_p1, %p6684_p5 }
 0x691   : > { %p6510_p10 = por %p6509_p12, %p6508_p3 }
 0x692   : > { %p6506_p0 = pneg %p6505_p6 }
 0x694   : > { %p6511_p2 = pnand %p6510_p10, %p6506_p0 }
 0x696   : > { %6514 = shalt.err (!%p6511_p2)
}
 0x697   : > { %s6574_s20 = smov 128   ;;  %s6575_s23 = smov 8  }
 0x698   : > { %5931 = dma.vmem_to_hbm [thread:$0]  (%p6684_p5), %s8832_s21, 4096, %s8830_s15, %s8838_s25, %s6574_s20, %s6574_s20, %s6575_s23  }
 0x699 PF: > { %s9104_s29 = sld [smem:[#allocation18_spill]] }
 0x69a   : > { %s9105_s28 = sld [smem:[#allocation16_spill]] }
 0x69b   : > { %s9106_s30 = sld [smem:[#allocation21_spill]] }
 0x69f   : > { %p5963_p4 = scmp.ge.s32.totalorder %s9104_s29, 2 }
 0x6a0   : > { %s5199_s16 = sand.u32 1, %s9105_s28  }
 0x6a1   : > { %p9107_p7 = scmp.ne.s32.totalorder %s9106_s30, 0  ;;  %s5200_s24 = scalar_lea.sflag [#allocation4], %s5199_s16 }
 0x6a3   : > { %p5950_p8 = pnand %p5963_p4, %p9107_p7 }
 0x6a5   : > { %p5951_p9 = pneg %p5950_p8 }
 0x6a7   : > { %6544 = dma.done.wait (%p5951_p9), %s5200_s24, 4096  }
 0x6a8   : > { %6546 = vsyncadd (%p5951_p9), %s5200_s24, 4294963200  ;;  %s9108_s28 = sld [smem:[#allocation19_spill]]  ;;  %s9111_s25 = smov %s6553_s26 }
 0x6a9   : > { %s9109_s27 = sld [smem:[#allocation17_spill]] }
 0x6aa   : > { %s9110_s22 = sld [smem:[#allocation20_spill]] }
 0x6ae   : > { %p26_p11 = scmp.ge.s32.totalorder %s9108_s28, 4  }
 0x6af   : > { %s9112_s26 = smov %s9109_s27 }
 0x6b0   : > { %s9113_s27 = smov %s9110_s22  ;;  %28 = sbr.rel (!%p26_p11) target bundleno = 6 (0x6), region = 128 }
 0x6b5   :  { %5205 = vsyncpa [#allocation3], 1 }
 0x6b6   :  { %5207 = vsyncpa [#allocation3 + $0x1], 1 }
 0x6b7   :  { %5208 = vsyncpa [#allocation6], 1 }
 0x6b8   :  { %5209 = vsyncpa [#allocation9], 1 }
 0x6b9   :  { %5210 = vsyncpa [#allocation4], 1 }
 0x6ba   :  { %5212 = vsyncpa [#allocation4 + $0x1], 1 }

</bundles_post_ra>
